<compile_context>
chip_gen: v5e
topology: v5e:2x2
jax: 0.10.0
libtpu: 0.0.40
codegen_flags: <defaults>
</compile_context>

<pallas_src>
import functools

import jax
import jax.numpy as jnp
import numpy as np
from jax import lax
from jax.experimental import pallas as pl
from jax.experimental.pallas import tpu as pltpu

CPAD = 8  # left/right column padding of VMEM scratches (sublane-aligned stores)


# ----------------------------------------------------------------------------
# Fused kernel: [pad + conv0 + BN + ReLU] -> VMEM -> [pad + conv1 + BN + ReLU]
# ----------------------------------------------------------------------------
def _decoder_block_kernel(xu_ref, xe_ref, w0x_ref, w0e_ref, b0_ref,
                          w1_ref, b1_ref, o_ref,
                          xpad_ref, epad_ref, mpad_ref, *, row_tile):
    # xu_ref:   (1, 2H, 2W, C_x)     upsampled low-res input
    # xe_ref:   (1, 2H, 2W, C_enc)   encoder skip
    # w0x_ref:  (3, 3, C_x,  Cmid)   BN-folded conv0 weights, x-channel slice
    # w0e_ref:  (3, 3, C_enc, Cmid)  BN-folded conv0 weights, enc-channel slice
    # b0_ref:   (1, Cmid)            folded conv0 bias
    # w1_ref:   (3, 3, Cmid, Cout)   BN-folded conv1 weights
    # b1_ref:   (1, Cout)            folded conv1 bias
    # o_ref:    (1, 2H, 2W, Cout)
    # *_pad_ref: zero-halo scratches; interior at [1:1+2H, CPAD:CPAD+2W, :]
    Ho = o_ref.shape[1]
    Wo = o_ref.shape[2]
    Cout = o_ref.shape[3]
    Cmid = mpad_ref.shape[2]
    R = row_tile
    n_strips = Ho // R

    # --- zero the halo of the padded scratches (re-done every grid step so
    #     megacore sharding of the batch axis stays correct) ------------------
    for ref in (xpad_ref, epad_ref, mpad_ref):
        h, w, c = ref.shape
        zrow = jnp.zeros((1, w, c), ref.dtype)
        ref[0:1, :, :] = zrow
        ref[h - 1:h, :, :] = zrow
        ref[:, 0:CPAD, :] = jnp.zeros((h, CPAD, c), ref.dtype)
        ref[:, CPAD + Wo:, :] = jnp.zeros((h, w - CPAD - Wo, c), ref.dtype)

    # --- copy inputs into the padded scratches, one row strip at a time ------
    def copy_body(s, carry):
        r0 = pl.multiple_of(s * R, R)
        xpad_ref[pl.ds(r0 + 1, R), CPAD:CPAD + Wo, :] = \
            xu_ref[0, pl.ds(r0, R), :, :]
        epad_ref[pl.ds(r0 + 1, R), CPAD:CPAD + Wo, :] = \
            xe_ref[0, pl.ds(r0, R), :, :]
        return carry

    lax.fori_loop(0, n_strips, copy_body, 0)

    def conv_strip(r0, srcs_and_weights, bias, n_out):
        """3x3 conv (+bias, ReLU) on one row strip; 9 shifted MXU matmuls."""
        acc = jnp.zeros((R, Wo, n_out), jnp.float32)
        for src_ref, w_ref in srcs_and_weights:
            for ky in range(3):
                for kx in range(3):
                    patch = src_ref[pl.ds(r0 + ky, R),
                                    CPAD - 1 + kx:CPAD - 1 + kx + Wo, :]
                    acc = acc + lax.dot_general(
                        patch, w_ref[ky, kx],
                        dimension_numbers=(((2,), (0,)), ((), ())),
                        preferred_element_type=jnp.float32)
        return jnp.maximum(acc + bias, 0.0)

    # --- conv0 + folded-BN bias + ReLU -> mid scratch (strip by strip) -------
    def conv0_body(s, carry):
        r0 = pl.multiple_of(s * R, R)
        y = conv_strip(r0, ((xpad_ref, w0x_ref), (epad_ref, w0e_ref)),
                       b0_ref[0], Cmid)
        mpad_ref[pl.ds(r0 + 1, R), CPAD:CPAD + Wo, :] = y
        return carry

    lax.fori_loop(0, n_strips, conv0_body, 0)

    # --- conv1 + folded-BN bias + ReLU -> output (strip by strip) ------------
    def conv1_body(s, carry):
        r0 = pl.multiple_of(s * R, R)
        y = conv_strip(r0, ((mpad_ref, w1_ref),), b1_ref[0], Cout)
        o_ref[0, pl.ds(r0, R), :, :] = y.astype(o_ref.dtype)
        return carry

    lax.fori_loop(0, n_strips, conv1_body, 0)


# ----------------------------------------------------------------------------
# Wrapper: BN folding, weight split (concat elimination), upsample, pallas_call
# ----------------------------------------------------------------------------
def _fold_bn(w, b, gamma, beta, mean, var, eps):
    scale = gamma / jnp.sqrt(var + eps)           # (Cout,)
    return w * scale, (b - mean) * scale + beta   # weights scaled over Cout


def decoder_block_forward(params, x, x_enc=None, *, eps=1e-5, row_tile=8):
    B, H, W, C_x = x.shape
    Cmid = params["w0"].shape[-1]
    Cout = params["w1"].shape[-1]

    # Nearest-neighbour 2x upsample (plain JAX copy).
    # TODO(synk): move the upsample into the kernel (strided VMEM stores) to
    # drop this last remaining HBM round trip of the activation.
    x_up = jnp.repeat(jnp.repeat(x, 2, axis=1), 2, axis=2)   # (B, 2H, 2W, C_x)

    if x_enc is None:
        # No skip connection: dummy zero skip paired with zero weights.
        x_enc = jnp.zeros((B, 2 * H, 2 * W, 1), x.dtype)
        w0 = jnp.concatenate(
            [params["w0"], jnp.zeros((3, 3, 1, Cmid), params["w0"].dtype)],
            axis=2)
    else:
        w0 = params["w0"]
    C_enc = x_enc.shape[-1]

    # Fold eval-mode BatchNorm (and conv bias) into weights/bias.
    w0f, b0f = _fold_bn(w0, params["b0"], params["g0"], params["be0"],
                        params["m0"], params["v0"], eps)
    w1f, b1f = _fold_bn(params["w1"], params["b1"], params["g1"], params["be1"],
                        params["m1"], params["v1"], eps)

    # Split conv0 weights along Cin so the channel concat never materializes.
    w0x = w0f[:, :, :C_x, :]
    w0e = w0f[:, :, C_x:, :]

    Ho, Wo = 2 * H, 2 * W
    assert Ho % row_tile == 0, "row_tile must divide 2*H"
    pad_cols = Wo + 2 * CPAD

    kernel = functools.partial(_decoder_block_kernel, row_tile=row_tile)

    return pl.pallas_call(
        kernel,
        out_shape=jax.ShapeDtypeStruct((B, Ho, Wo, Cout), x.dtype),
        grid_spec=pltpu.PrefetchScalarGridSpec(
            num_scalar_prefetch=0,
            grid=(B,),
            in_specs=[
                pl.BlockSpec((1, Ho, Wo, C_x), lambda b: (b, 0, 0, 0)),
                pl.BlockSpec((1, Ho, Wo, C_enc), lambda b: (b, 0, 0, 0)),
                pl.BlockSpec((3, 3, C_x, Cmid), lambda b: (0, 0, 0, 0)),
                pl.BlockSpec((3, 3, C_enc, Cmid), lambda b: (0, 0, 0, 0)),
                pl.BlockSpec((1, Cmid), lambda b: (0, 0)),
                pl.BlockSpec((3, 3, Cmid, Cout), lambda b: (0, 0, 0, 0)),
                pl.BlockSpec((1, Cout), lambda b: (0, 0)),
            ],
            out_specs=pl.BlockSpec((1, Ho, Wo, Cout), lambda b: (b, 0, 0, 0)),
            scratch_shapes=[
                pltpu.VMEM((Ho + 2, pad_cols, C_x), jnp.float32),
                pltpu.VMEM((Ho + 2, pad_cols, C_enc), jnp.float32),
                pltpu.VMEM((Ho + 2, pad_cols, Cmid), jnp.float32),
            ],
        ),
        compiler_params=pltpu.CompilerParams(
            dimension_semantics=("parallel",),
            vmem_limit_bytes=64 * 1024 * 1024,
        ),
    )(x_up, x_enc, w0x, w0e, b0f.reshape(1, -1), w1f, b1f.reshape(1, -1))


# ----------------------------------------------------------------------------
# Pure-JAX reference for validation
# ----------------------------------------------------------------------------
def _ref_conv_bn_relu(x, w, b, g, be, m, v, eps=1e-5):
    y = lax.conv_general_dilated(
        x, w, window_strides=(1, 1), padding="SAME",
        dimension_numbers=("NHWC", "HWIO", "NHWC"))
    y = y + b
    y = (y - m) / jnp.sqrt(v + eps) * g + be
    return jnp.maximum(y, 0.0)


def _ref_forward(params, x, x_enc):
    x = jnp.repeat(jnp.repeat(x, 2, axis=1), 2, axis=2)
    if x_enc is not None:
        x = jnp.concatenate([x, x_enc], axis=-1)
    x = _ref_conv_bn_relu(x, params["w0"], params["b0"], params["g0"],
                          params["be0"], params["m0"], params["v0"])
    x = _ref_conv_bn_relu(x, params["w1"], params["b1"], params["g1"],
                          params["be1"], params["m1"], params["v1"])
    return x


# ----------------------------------------------------------------------------
if __name__ == "__main__":
    key = jax.random.PRNGKey(0)
    ks = jax.random.split(key, 12)

    # Small UNet-decoder-ish shapes.
    B = 2
    C_x, H, W = 8, 8, 8          # low-res decoder feature
    C_enc = 4                    # encoder skip at 2H x 2W
    C_in0 = C_x + C_enc          # 12 after upsample + concat
    C_mid = 16
    C_out = 16

    # Inputs (NHWC layout).
    x = jax.random.normal(ks[0], (B, H, W, C_x), jnp.float32)
    x_enc = jax.random.normal(ks[1], (B, 2 * H, 2 * W, C_enc), jnp.float32)

    # Deterministic parameters (HWIO conv weights).
    params = {
        "w0": 0.1 * jax.random.normal(ks[2], (3, 3, C_in0, C_mid), jnp.float32),
        "b0": 0.1 * jax.random.normal(ks[3], (C_mid,), jnp.float32),
        "g0": 1.0 + 0.1 * jax.random.normal(ks[4], (C_mid,), jnp.float32),
        "be0": 0.1 * jax.random.normal(ks[5], (C_mid,), jnp.float32),
        "m0": 0.1 * jax.random.normal(ks[6], (C_mid,), jnp.float32),
        "v0": 1.0 + 0.1 * jax.random.uniform(ks[7], (C_mid,), jnp.float32),
        "w1": 0.1 * jax.random.normal(ks[8], (3, 3, C_mid, C_out), jnp.float32),
        "b1": 0.1 * jax.random.normal(ks[9], (C_out,), jnp.float32),
        "g1": 1.0 + 0.1 * jax.random.normal(ks[10], (C_out,), jnp.float32),
        "be1": 0.1 * jax.random.normal(ks[11], (C_out,), jnp.float32),
        "m1": jnp.zeros((C_out,), jnp.float32),
        "v1": jnp.ones((C_out,), jnp.float32),
    }

    out = jax.jit(decoder_block_forward)(params, x, x_enc)
    out = jax.block_until_ready(out)

    ref = _ref_forward(params, x, x_enc)
    np.testing.assert_allclose(np.asarray(out), np.asarray(ref),
                               rtol=1e-4, atol=1e-4)
    assert out.shape == (B, 2 * H, 2 * W, C_out)

    print("KERNEL_OK")
</pallas_src>

<mosaic_0001>
module attributes {stable_mosaic.version = 11 : i64} {
  func.func @_decoder_block_kernel(%arg0: i32, %arg1: memref<1x16x16x8xf32, #tpu.memory_space<vmem>>, %arg2: memref<1x16x16x4xf32, #tpu.memory_space<vmem>>, %arg3: memref<3x3x8x16xf32, #tpu.memory_space<vmem>>, %arg4: memref<3x3x4x16xf32, #tpu.memory_space<vmem>>, %arg5: memref<1x16xf32, #tpu.memory_space<vmem>>, %arg6: memref<3x3x16x16xf32, #tpu.memory_space<vmem>>, %arg7: memref<1x16xf32, #tpu.memory_space<vmem>>, %arg8: memref<1x16x16x16xf32, #tpu.memory_space<vmem>>, %arg9: memref<18x32x8xf32, #tpu.memory_space<vmem>>, %arg10: memref<18x32x4xf32, #tpu.memory_space<vmem>>, %arg11: memref<18x32x16xf32, #tpu.memory_space<vmem>>) attributes {dimension_semantics = [#tpu.dimension_semantics<parallel>], iteration_bounds = array<i64: 2>, scalar_prefetch = 0 : i64, scratch_operands = 3 : i64, tpu.core_type = #tpu.core_type<tc>, window_params = [{transform_indices = @transform_0, window_bounds = array<i64: 1, 16, 16, 8>}, {transform_indices = @transform_1, window_bounds = array<i64: 1, 16, 16, 4>}, {pipeline_mode = #tpu.pipeline_mode<synchronous>, transform_indices = @transform_2, window_bounds = array<i64: 3, 3, 8, 16>}, {pipeline_mode = #tpu.pipeline_mode<synchronous>, transform_indices = @transform_3, window_bounds = array<i64: 3, 3, 4, 16>}, {pipeline_mode = #tpu.pipeline_mode<synchronous>, transform_indices = @transform_4, window_bounds = array<i64: 1, 16>}, {pipeline_mode = #tpu.pipeline_mode<synchronous>, transform_indices = @transform_5, window_bounds = array<i64: 3, 3, 16, 16>}, {pipeline_mode = #tpu.pipeline_mode<synchronous>, transform_indices = @transform_6, window_bounds = array<i64: 1, 16>}, {transform_indices = @transform_7, window_bounds = array<i64: 1, 16, 16, 16>}]} {
    %cst = arith.constant 0.000000e+00 : f32
    %0 = vector.broadcast %cst : f32 to vector<1x32x8xf32>
    %c0 = arith.constant 0 : index
    %c0_0 = arith.constant 0 : index
    %c0_1 = arith.constant 0 : index
    %1 = vector.load %arg9[%c0, %c0_0, %c0_1] : memref<18x32x8xf32, #tpu.memory_space<vmem>>, vector<1x32x8xf32>
    tpu.vector_store %arg9[%c0, %c0_0, %c0_1], %0 {strides = array<i32>} : memref<18x32x8xf32, #tpu.memory_space<vmem>>, vector<1x32x8xf32>,
    %c17 = arith.constant 17 : index
    %c0_2 = arith.constant 0 : index
    %c0_3 = arith.constant 0 : index
    %2 = vector.load %arg9[%c17, %c0_2, %c0_3] : memref<18x32x8xf32, #tpu.memory_space<vmem>>, vector<1x32x8xf32>
    tpu.vector_store %arg9[%c17, %c0_2, %c0_3], %0 {strides = array<i32>} : memref<18x32x8xf32, #tpu.memory_space<vmem>>, vector<1x32x8xf32>,
    %cst_4 = arith.constant 0.000000e+00 : f32
    %3 = vector.broadcast %cst_4 : f32 to vector<18x8x8xf32>
    %c0_5 = arith.constant 0 : index
    %c0_6 = arith.constant 0 : index
    %c0_7 = arith.constant 0 : index
    %4 = vector.load %arg9[%c0_5, %c0_6, %c0_7] : memref<18x32x8xf32, #tpu.memory_space<vmem>>, vector<18x8x8xf32>
    tpu.vector_store %arg9[%c0_5, %c0_6, %c0_7], %3 {strides = array<i32>} : memref<18x32x8xf32, #tpu.memory_space<vmem>>, vector<18x8x8xf32>,
    %cst_8 = arith.constant 0.000000e+00 : f32
    %5 = vector.broadcast %cst_8 : f32 to vector<18x8x8xf32>
    %c0_9 = arith.constant 0 : index
    %c24 = arith.constant 24 : index
    %c0_10 = arith.constant 0 : index
    %6 = vector.load %arg9[%c0_9, %c24, %c0_10] : memref<18x32x8xf32, #tpu.memory_space<vmem>>, vector<18x8x8xf32>
    tpu.vector_store %arg9[%c0_9, %c24, %c0_10], %5 {strides = array<i32>} : memref<18x32x8xf32, #tpu.memory_space<vmem>>, vector<18x8x8xf32>,
    %cst_11 = arith.constant 0.000000e+00 : f32
    %7 = vector.broadcast %cst_11 : f32 to vector<1x32x4xf32>
    %c0_12 = arith.constant 0 : index
    %c0_13 = arith.constant 0 : index
    %c0_14 = arith.constant 0 : index
    %8 = vector.load %arg10[%c0_12, %c0_13, %c0_14] : memref<18x32x4xf32, #tpu.memory_space<vmem>>, vector<1x32x4xf32>
    tpu.vector_store %arg10[%c0_12, %c0_13, %c0_14], %7 {strides = array<i32>} : memref<18x32x4xf32, #tpu.memory_space<vmem>>, vector<1x32x4xf32>,
    %c17_15 = arith.constant 17 : index
    %c0_16 = arith.constant 0 : index
    %c0_17 = arith.constant 0 : index
    %9 = vector.load %arg10[%c17_15, %c0_16, %c0_17] : memref<18x32x4xf32, #tpu.memory_space<vmem>>, vector<1x32x4xf32>
    tpu.vector_store %arg10[%c17_15, %c0_16, %c0_17], %7 {strides = array<i32>} : memref<18x32x4xf32, #tpu.memory_space<vmem>>, vector<1x32x4xf32>,
    %cst_18 = arith.constant 0.000000e+00 : f32
    %10 = vector.broadcast %cst_18 : f32 to vector<18x8x4xf32>
    %c0_19 = arith.constant 0 : index
    %c0_20 = arith.constant 0 : index
    %c0_21 = arith.constant 0 : index
    %11 = vector.load %arg10[%c0_19, %c0_20, %c0_21] : memref<18x32x4xf32, #tpu.memory_space<vmem>>, vector<18x8x4xf32>
    tpu.vector_store %arg10[%c0_19, %c0_20, %c0_21], %10 {strides = array<i32>} : memref<18x32x4xf32, #tpu.memory_space<vmem>>, vector<18x8x4xf32>,
    %cst_22 = arith.constant 0.000000e+00 : f32
    %12 = vector.broadcast %cst_22 : f32 to vector<18x8x4xf32>
    %c0_23 = arith.constant 0 : index
    %c24_24 = arith.constant 24 : index
    %c0_25 = arith.constant 0 : index
    %13 = vector.load %arg10[%c0_23, %c24_24, %c0_25] : memref<18x32x4xf32, #tpu.memory_space<vmem>>, vector<18x8x4xf32>
    tpu.vector_store %arg10[%c0_23, %c24_24, %c0_25], %12 {strides = array<i32>} : memref<18x32x4xf32, #tpu.memory_space<vmem>>, vector<18x8x4xf32>,
    %cst_26 = arith.constant 0.000000e+00 : f32
    %14 = vector.broadcast %cst_26 : f32 to vector<1x32x16xf32>
    %c0_27 = arith.constant 0 : index
    %c0_28 = arith.constant 0 : index
    %c0_29 = arith.constant 0 : index
    %15 = vector.load %arg11[%c0_27, %c0_28, %c0_29] : memref<18x32x16xf32, #tpu.memory_space<vmem>>, vector<1x32x16xf32>
    tpu.vector_store %arg11[%c0_27, %c0_28, %c0_29], %14 {strides = array<i32>} : memref<18x32x16xf32, #tpu.memory_space<vmem>>, vector<1x32x16xf32>,
    %c17_30 = arith.constant 17 : index
    %c0_31 = arith.constant 0 : index
    %c0_32 = arith.constant 0 : index
    %16 = vector.load %arg11[%c17_30, %c0_31, %c0_32] : memref<18x32x16xf32, #tpu.memory_space<vmem>>, vector<1x32x16xf32>
    tpu.vector_store %arg11[%c17_30, %c0_31, %c0_32], %14 {strides = array<i32>} : memref<18x32x16xf32, #tpu.memory_space<vmem>>, vector<1x32x16xf32>,
    %cst_33 = arith.constant 0.000000e+00 : f32
    %17 = vector.broadcast %cst_33 : f32 to vector<18x8x16xf32>
    %c0_34 = arith.constant 0 : index
    %c0_35 = arith.constant 0 : index
    %c0_36 = arith.constant 0 : index
    %18 = vector.load %arg11[%c0_34, %c0_35, %c0_36] : memref<18x32x16xf32, #tpu.memory_space<vmem>>, vector<18x8x16xf32>
    tpu.vector_store %arg11[%c0_34, %c0_35, %c0_36], %17 {strides = array<i32>} : memref<18x32x16xf32, #tpu.memory_space<vmem>>, vector<18x8x16xf32>,
    %cst_37 = arith.constant 0.000000e+00 : f32
    %19 = vector.broadcast %cst_37 : f32 to vector<18x8x16xf32>
    %c0_38 = arith.constant 0 : index
    %c24_39 = arith.constant 24 : index
    %c0_40 = arith.constant 0 : index
    %20 = vector.load %arg11[%c0_38, %c24_39, %c0_40] : memref<18x32x16xf32, #tpu.memory_space<vmem>>, vector<18x8x16xf32>
    tpu.vector_store %arg11[%c0_38, %c24_39, %c0_40], %19 {strides = array<i32>} : memref<18x32x16xf32, #tpu.memory_space<vmem>>, vector<18x8x16xf32>,
    %c0_i32 = arith.constant 0 : i32
    %c2_i32 = arith.constant 2 : i32
    %21 = arith.addi %c0_i32, %c2_i32 : i32
    %c1_i32 = arith.constant 1 : i32
    scf.for %arg12 = %c0_i32 to %21 step %c1_i32  : i32 {
      %c8_i32 = arith.constant 8 : i32
      %24 = arith.muli %arg12, %c8_i32 : i32
      %25 = tpu.assume_multiple %24, 8 : i32
      %c0_50 = arith.constant 0 : index
      %26 = arith.index_cast %25 : i32 to index
      %c0_51 = arith.constant 0 : index
      %c0_52 = arith.constant 0 : index
      %27 = vector.load %arg1[%c0_50, %26, %c0_51, %c0_52] : memref<1x16x16x8xf32, #tpu.memory_space<vmem>>, vector<1x8x16x8xf32>
      %28 = vector.shape_cast %27 : vector<1x8x16x8xf32> to vector<8x16x8xf32>
      %c1_i32_53 = arith.constant 1 : i32
      %29 = arith.addi %25, %c1_i32_53 : i32
      %30 = arith.index_cast %29 : i32 to index
      %c8 = arith.constant 8 : index
      %c0_54 = arith.constant 0 : index
      %31 = vector.load %arg9[%30, %c8, %c0_54] : memref<18x32x8xf32, #tpu.memory_space<vmem>>, vector<8x16x8xf32>
      tpu.vector_store %arg9[%30, %c8, %c0_54], %28 {strides = array<i32>} : memref<18x32x8xf32, #tpu.memory_space<vmem>>, vector<8x16x8xf32>,
      %c0_55 = arith.constant 0 : index
      %32 = arith.index_cast %25 : i32 to index
      %c0_56 = arith.constant 0 : index
      %c0_57 = arith.constant 0 : index
      %33 = vector.load %arg2[%c0_55, %32, %c0_56, %c0_57] : memref<1x16x16x4xf32, #tpu.memory_space<vmem>>, vector<1x8x16x4xf32>
      %34 = vector.shape_cast %33 : vector<1x8x16x4xf32> to vector<8x16x4xf32>
      %c1_i32_58 = arith.constant 1 : i32
      %35 = arith.addi %25, %c1_i32_58 : i32
      %36 = arith.index_cast %35 : i32 to index
      %c8_59 = arith.constant 8 : index
      %c0_60 = arith.constant 0 : index
      %37 = vector.load %arg10[%36, %c8_59, %c0_60] : memref<18x32x4xf32, #tpu.memory_space<vmem>>, vector<8x16x4xf32>
      tpu.vector_store %arg10[%36, %c8_59, %c0_60], %34 {strides = array<i32>} : memref<18x32x4xf32, #tpu.memory_space<vmem>>, vector<8x16x4xf32>,
    }
    %c2_i32_41 = arith.constant 2 : i32
    %c0_i32_42 = arith.constant 0 : i32
    %c2_i32_43 = arith.constant 2 : i32
    %22 = arith.addi %c0_i32_42, %c2_i32_43 : i32
    %c1_i32_44 = arith.constant 1 : i32
    scf.for %arg12 = %c0_i32_42 to %22 step %c1_i32_44  : i32 {
      %c8_i32 = arith.constant 8 : i32
      %24 = arith.muli %arg12, %c8_i32 : i32
      %25 = tpu.assume_multiple %24, 8 : i32
      %c0_50 = arith.constant 0 : index
      %c0_51 = arith.constant 0 : index
      %26 = vector.load %arg5[%c0_50, %c0_51] : memref<1x16xf32, #tpu.memory_space<vmem>>, vector<1x16xf32>
      %27 = vector.shape_cast %26 : vector<1x16xf32> to vector<16xf32>
      %cst_52 = arith.constant 0.000000e+00 : f32
      %28 = vector.broadcast %cst_52 : f32 to vector<8x16x16xf32>
      %c0_i32_53 = arith.constant 0 : i32
      %29 = arith.addi %25, %c0_i32_53 : i32
      %30 = arith.index_cast %29 : i32 to index
      %c7 = arith.constant 7 : index
      %c0_54 = arith.constant 0 : index
      %31 = vector.load %arg9[%30, %c7, %c0_54] : memref<18x32x8xf32, #tpu.memory_space<vmem>>, vector<8x16x8xf32>
      %c0_55 = arith.constant 0 : index
      %c0_56 = arith.constant 0 : index
      %c0_57 = arith.constant 0 : index
      %c0_58 = arith.constant 0 : index
      %32 = vector.load %arg3[%c0_55, %c0_56, %c0_57, %c0_58] : memref<3x3x8x16xf32, #tpu.memory_space<vmem>>, vector<1x1x8x16xf32>
      %33 = vector.shape_cast %32 : vector<1x1x8x16xf32> to vector<8x16xf32>
      %cst_59 = arith.constant dense<0.000000e+00> : vector<8x16x16xf32>
      %34 = tpu.matmul %31, %33, %cst_59 {dimension_numbers = #tpu.dot_dimension_numbers<[2], [0], [0, 1], [1], [0, 0, 0, 1, 1, 1], [], []>} : vector<8x16x8xf32>, vector<8x16xf32>, vector<8x16x16xf32> -> vector<8x16x16xf32>
      %35 = arith.addf %28, %34 : vector<8x16x16xf32>
      %c0_i32_60 = arith.constant 0 : i32
      %36 = arith.addi %25, %c0_i32_60 : i32
      %37 = arith.index_cast %36 : i32 to index
      %c8 = arith.constant 8 : index
      %c0_61 = arith.constant 0 : index
      %38 = vector.load %arg9[%37, %c8, %c0_61] : memref<18x32x8xf32, #tpu.memory_space<vmem>>, vector<8x16x8xf32>
      %c0_62 = arith.constant 0 : index
      %c1 = arith.constant 1 : index
      %c0_63 = arith.constant 0 : index
      %c0_64 = arith.constant 0 : index
      %39 = vector.load %arg3[%c0_62, %c1, %c0_63, %c0_64] : memref<3x3x8x16xf32, #tpu.memory_space<vmem>>, vector<1x1x8x16xf32>
      %40 = vector.shape_cast %39 : vector<1x1x8x16xf32> to vector<8x16xf32>
      %cst_65 = arith.constant dense<0.000000e+00> : vector<8x16x16xf32>
      %41 = tpu.matmul %38, %40, %cst_65 {dimension_numbers = #tpu.dot_dimension_numbers<[2], [0], [0, 1], [1], [0, 0, 0, 1, 1, 1], [], []>} : vector<8x16x8xf32>, vector<8x16xf32>, vector<8x16x16xf32> -> vector<8x16x16xf32>
      %42 = arith.addf %35, %41 : vector<8x16x16xf32>
      %c0_i32_66 = arith.constant 0 : i32
      %43 = arith.addi %25, %c0_i32_66 : i32
      %44 = arith.index_cast %43 : i32 to index
      %c9 = arith.constant 9 : index
      %c0_67 = arith.constant 0 : index
      %45 = vector.load %arg9[%44, %c9, %c0_67] : memref<18x32x8xf32, #tpu.memory_space<vmem>>, vector<8x16x8xf32>
      %c0_68 = arith.constant 0 : index
      %c2 = arith.constant 2 : index
      %c0_69 = arith.constant 0 : index
      %c0_70 = arith.constant 0 : index
      %46 = vector.load %arg3[%c0_68, %c2, %c0_69, %c0_70] : memref<3x3x8x16xf32, #tpu.memory_space<vmem>>, vector<1x1x8x16xf32>
      %47 = vector.shape_cast %46 : vector<1x1x8x16xf32> to vector<8x16xf32>
      %cst_71 = arith.constant dense<0.000000e+00> : vector<8x16x16xf32>
      %48 = tpu.matmul %45, %47, %cst_71 {dimension_numbers = #tpu.dot_dimension_numbers<[2], [0], [0, 1], [1], [0, 0, 0, 1, 1, 1], [], []>} : vector<8x16x8xf32>, vector<8x16xf32>, vector<8x16x16xf32> -> vector<8x16x16xf32>
      %49 = arith.addf %42, %48 : vector<8x16x16xf32>
      %c1_i32_72 = arith.constant 1 : i32
      %50 = arith.addi %25, %c1_i32_72 : i32
      %51 = arith.index_cast %50 : i32 to index
      %c7_73 = arith.constant 7 : index
      %c0_74 = arith.constant 0 : index
      %52 = vector.load %arg9[%51, %c7_73, %c0_74] : memref<18x32x8xf32, #tpu.memory_space<vmem>>, vector<8x16x8xf32>
      %c1_75 = arith.constant 1 : index
      %c0_76 = arith.constant 0 : index
      %c0_77 = arith.constant 0 : index
      %c0_78 = arith.constant 0 : index
      %53 = vector.load %arg3[%c1_75, %c0_76, %c0_77, %c0_78] : memref<3x3x8x16xf32, #tpu.memory_space<vmem>>, vector<1x1x8x16xf32>
      %54 = vector.shape_cast %53 : vector<1x1x8x16xf32> to vector<8x16xf32>
      %cst_79 = arith.constant dense<0.000000e+00> : vector<8x16x16xf32>
      %55 = tpu.matmul %52, %54, %cst_79 {dimension_numbers = #tpu.dot_dimension_numbers<[2], [0], [0, 1], [1], [0, 0, 0, 1, 1, 1], [], []>} : vector<8x16x8xf32>, vector<8x16xf32>, vector<8x16x16xf32> -> vector<8x16x16xf32>
      %56 = arith.addf %49, %55 : vector<8x16x16xf32>
      %c1_i32_80 = arith.constant 1 : i32
      %57 = arith.addi %25, %c1_i32_80 : i32
      %58 = arith.index_cast %57 : i32 to index
      %c8_81 = arith.constant 8 : index
      %c0_82 = arith.constant 0 : index
      %59 = vector.load %arg9[%58, %c8_81, %c0_82] : memref<18x32x8xf32, #tpu.memory_space<vmem>>, vector<8x16x8xf32>
      %c1_83 = arith.constant 1 : index
      %c1_84 = arith.constant 1 : index
      %c0_85 = arith.constant 0 : index
      %c0_86 = arith.constant 0 : index
      %60 = vector.load %arg3[%c1_83, %c1_84, %c0_85, %c0_86] : memref<3x3x8x16xf32, #tpu.memory_space<vmem>>, vector<1x1x8x16xf32>
      %61 = vector.shape_cast %60 : vector<1x1x8x16xf32> to vector<8x16xf32>
      %cst_87 = arith.constant dense<0.000000e+00> : vector<8x16x16xf32>
      %62 = tpu.matmul %59, %61, %cst_87 {dimension_numbers = #tpu.dot_dimension_numbers<[2], [0], [0, 1], [1], [0, 0, 0, 1, 1, 1], [], []>} : vector<8x16x8xf32>, vector<8x16xf32>, vector<8x16x16xf32> -> vector<8x16x16xf32>
      %63 = arith.addf %56, %62 : vector<8x16x16xf32>
      %c1_i32_88 = arith.constant 1 : i32
      %64 = arith.addi %25, %c1_i32_88 : i32
      %65 = arith.index_cast %64 : i32 to index
      %c9_89 = arith.constant 9 : index
      %c0_90 = arith.constant 0 : index
      %66 = vector.load %arg9[%65, %c9_89, %c0_90] : memref<18x32x8xf32, #tpu.memory_space<vmem>>, vector<8x16x8xf32>
      %c1_91 = arith.constant 1 : index
      %c2_92 = arith.constant 2 : index
      %c0_93 = arith.constant 0 : index
      %c0_94 = arith.constant 0 : index
      %67 = vector.load %arg3[%c1_91, %c2_92, %c0_93, %c0_94] : memref<3x3x8x16xf32, #tpu.memory_space<vmem>>, vector<1x1x8x16xf32>
      %68 = vector.shape_cast %67 : vector<1x1x8x16xf32> to vector<8x16xf32>
      %cst_95 = arith.constant dense<0.000000e+00> : vector<8x16x16xf32>
      %69 = tpu.matmul %66, %68, %cst_95 {dimension_numbers = #tpu.dot_dimension_numbers<[2], [0], [0, 1], [1], [0, 0, 0, 1, 1, 1], [], []>} : vector<8x16x8xf32>, vector<8x16xf32>, vector<8x16x16xf32> -> vector<8x16x16xf32>
      %70 = arith.addf %63, %69 : vector<8x16x16xf32>
      %c2_i32_96 = arith.constant 2 : i32
      %71 = arith.addi %25, %c2_i32_96 : i32
      %72 = arith.index_cast %71 : i32 to index
      %c7_97 = arith.constant 7 : index
      %c0_98 = arith.constant 0 : index
      %73 = vector.load %arg9[%72, %c7_97, %c0_98] : memref<18x32x8xf32, #tpu.memory_space<vmem>>, vector<8x16x8xf32>
      %c2_99 = arith.constant 2 : index
      %c0_100 = arith.constant 0 : index
      %c0_101 = arith.constant 0 : index
      %c0_102 = arith.constant 0 : index
      %74 = vector.load %arg3[%c2_99, %c0_100, %c0_101, %c0_102] : memref<3x3x8x16xf32, #tpu.memory_space<vmem>>, vector<1x1x8x16xf32>
      %75 = vector.shape_cast %74 : vector<1x1x8x16xf32> to vector<8x16xf32>
      %cst_103 = arith.constant dense<0.000000e+00> : vector<8x16x16xf32>
      %76 = tpu.matmul %73, %75, %cst_103 {dimension_numbers = #tpu.dot_dimension_numbers<[2], [0], [0, 1], [1], [0, 0, 0, 1, 1, 1], [], []>} : vector<8x16x8xf32>, vector<8x16xf32>, vector<8x16x16xf32> -> vector<8x16x16xf32>
      %77 = arith.addf %70, %76 : vector<8x16x16xf32>
      %c2_i32_104 = arith.constant 2 : i32
      %78 = arith.addi %25, %c2_i32_104 : i32
      %79 = arith.index_cast %78 : i32 to index
      %c8_105 = arith.constant 8 : index
      %c0_106 = arith.constant 0 : index
      %80 = vector.load %arg9[%79, %c8_105, %c0_106] : memref<18x32x8xf32, #tpu.memory_space<vmem>>, vector<8x16x8xf32>
      %c2_107 = arith.constant 2 : index
      %c1_108 = arith.constant 1 : index
      %c0_109 = arith.constant 0 : index
      %c0_110 = arith.constant 0 : index
      %81 = vector.load %arg3[%c2_107, %c1_108, %c0_109, %c0_110] : memref<3x3x8x16xf32, #tpu.memory_space<vmem>>, vector<1x1x8x16xf32>
      %82 = vector.shape_cast %81 : vector<1x1x8x16xf32> to vector<8x16xf32>
      %cst_111 = arith.constant dense<0.000000e+00> : vector<8x16x16xf32>
      %83 = tpu.matmul %80, %82, %cst_111 {dimension_numbers = #tpu.dot_dimension_numbers<[2], [0], [0, 1], [1], [0, 0, 0, 1, 1, 1], [], []>} : vector<8x16x8xf32>, vector<8x16xf32>, vector<8x16x16xf32> -> vector<8x16x16xf32>
      %84 = arith.addf %77, %83 : vector<8x16x16xf32>
      %c2_i32_112 = arith.constant 2 : i32
      %85 = arith.addi %25, %c2_i32_112 : i32
      %86 = arith.index_cast %85 : i32 to index
      %c9_113 = arith.constant 9 : index
      %c0_114 = arith.constant 0 : index
      %87 = vector.load %arg9[%86, %c9_113, %c0_114] : memref<18x32x8xf32, #tpu.memory_space<vmem>>, vector<8x16x8xf32>
      %c2_115 = arith.constant 2 : index
      %c2_116 = arith.constant 2 : index
      %c0_117 = arith.constant 0 : index
      %c0_118 = arith.constant 0 : index
      %88 = vector.load %arg3[%c2_115, %c2_116, %c0_117, %c0_118] : memref<3x3x8x16xf32, #tpu.memory_space<vmem>>, vector<1x1x8x16xf32>
      %89 = vector.shape_cast %88 : vector<1x1x8x16xf32> to vector<8x16xf32>
      %cst_119 = arith.constant dense<0.000000e+00> : vector<8x16x16xf32>
      %90 = tpu.matmul %87, %89, %cst_119 {dimension_numbers = #tpu.dot_dimension_numbers<[2], [0], [0, 1], [1], [0, 0, 0, 1, 1, 1], [], []>} : vector<8x16x8xf32>, vector<8x16xf32>, vector<8x16x16xf32> -> vector<8x16x16xf32>
      %91 = arith.addf %84, %90 : vector<8x16x16xf32>
      %c0_i32_120 = arith.constant 0 : i32
      %92 = arith.addi %25, %c0_i32_120 : i32
      %93 = arith.index_cast %92 : i32 to index
      %c7_121 = arith.constant 7 : index
      %c0_122 = arith.constant 0 : index
      %94 = vector.load %arg10[%93, %c7_121, %c0_122] : memref<18x32x4xf32, #tpu.memory_space<vmem>>, vector<8x16x4xf32>
      %c0_123 = arith.constant 0 : index
      %c0_124 = arith.constant 0 : index
      %c0_125 = arith.constant 0 : index
      %c0_126 = arith.constant 0 : index
      %95 = vector.load %arg4[%c0_123, %c0_124, %c0_125, %c0_126] : memref<3x3x4x16xf32, #tpu.memory_space<vmem>>, vector<1x1x4x16xf32>
      %96 = vector.shape_cast %95 : vector<1x1x4x16xf32> to vector<4x16xf32>
      %cst_127 = arith.constant dense<0.000000e+00> : vector<8x16x16xf32>
      %97 = tpu.matmul %94, %96, %cst_127 {dimension_numbers = #tpu.dot_dimension_numbers<[2], [0], [0, 1], [1], [0, 0, 0, 1, 1, 1], [], []>} : vector<8x16x4xf32>, vector<4x16xf32>, vector<8x16x16xf32> -> vector<8x16x16xf32>
      %98 = arith.addf %91, %97 : vector<8x16x16xf32>
      %c0_i32_128 = arith.constant 0 : i32
      %99 = arith.addi %25, %c0_i32_128 : i32
      %100 = arith.index_cast %99 : i32 to index
      %c8_129 = arith.constant 8 : index
      %c0_130 = arith.constant 0 : index
      %101 = vector.load %arg10[%100, %c8_129, %c0_130] : memref<18x32x4xf32, #tpu.memory_space<vmem>>, vector<8x16x4xf32>
      %c0_131 = arith.constant 0 : index
      %c1_132 = arith.constant 1 : index
      %c0_133 = arith.constant 0 : index
      %c0_134 = arith.constant 0 : index
      %102 = vector.load %arg4[%c0_131, %c1_132, %c0_133, %c0_134] : memref<3x3x4x16xf32, #tpu.memory_space<vmem>>, vector<1x1x4x16xf32>
      %103 = vector.shape_cast %102 : vector<1x1x4x16xf32> to vector<4x16xf32>
      %cst_135 = arith.constant dense<0.000000e+00> : vector<8x16x16xf32>
      %104 = tpu.matmul %101, %103, %cst_135 {dimension_numbers = #tpu.dot_dimension_numbers<[2], [0], [0, 1], [1], [0, 0, 0, 1, 1, 1], [], []>} : vector<8x16x4xf32>, vector<4x16xf32>, vector<8x16x16xf32> -> vector<8x16x16xf32>
      %105 = arith.addf %98, %104 : vector<8x16x16xf32>
      %c0_i32_136 = arith.constant 0 : i32
      %106 = arith.addi %25, %c0_i32_136 : i32
      %107 = arith.index_cast %106 : i32 to index
      %c9_137 = arith.constant 9 : index
      %c0_138 = arith.constant 0 : index
      %108 = vector.load %arg10[%107, %c9_137, %c0_138] : memref<18x32x4xf32, #tpu.memory_space<vmem>>, vector<8x16x4xf32>
      %c0_139 = arith.constant 0 : index
      %c2_140 = arith.constant 2 : index
      %c0_141 = arith.constant 0 : index
      %c0_142 = arith.constant 0 : index
      %109 = vector.load %arg4[%c0_139, %c2_140, %c0_141, %c0_142] : memref<3x3x4x16xf32, #tpu.memory_space<vmem>>, vector<1x1x4x16xf32>
      %110 = vector.shape_cast %109 : vector<1x1x4x16xf32> to vector<4x16xf32>
      %cst_143 = arith.constant dense<0.000000e+00> : vector<8x16x16xf32>
      %111 = tpu.matmul %108, %110, %cst_143 {dimension_numbers = #tpu.dot_dimension_numbers<[2], [0], [0, 1], [1], [0, 0, 0, 1, 1, 1], [], []>} : vector<8x16x4xf32>, vector<4x16xf32>, vector<8x16x16xf32> -> vector<8x16x16xf32>
      %112 = arith.addf %105, %111 : vector<8x16x16xf32>
      %c1_i32_144 = arith.constant 1 : i32
      %113 = arith.addi %25, %c1_i32_144 : i32
      %114 = arith.index_cast %113 : i32 to index
      %c7_145 = arith.constant 7 : index
      %c0_146 = arith.constant 0 : index
      %115 = vector.load %arg10[%114, %c7_145, %c0_146] : memref<18x32x4xf32, #tpu.memory_space<vmem>>, vector<8x16x4xf32>
      %c1_147 = arith.constant 1 : index
      %c0_148 = arith.constant 0 : index
      %c0_149 = arith.constant 0 : index
      %c0_150 = arith.constant 0 : index
      %116 = vector.load %arg4[%c1_147, %c0_148, %c0_149, %c0_150] : memref<3x3x4x16xf32, #tpu.memory_space<vmem>>, vector<1x1x4x16xf32>
      %117 = vector.shape_cast %116 : vector<1x1x4x16xf32> to vector<4x16xf32>
      %cst_151 = arith.constant dense<0.000000e+00> : vector<8x16x16xf32>
      %118 = tpu.matmul %115, %117, %cst_151 {dimension_numbers = #tpu.dot_dimension_numbers<[2], [0], [0, 1], [1], [0, 0, 0, 1, 1, 1], [], []>} : vector<8x16x4xf32>, vector<4x16xf32>, vector<8x16x16xf32> -> vector<8x16x16xf32>
      %119 = arith.addf %112, %118 : vector<8x16x16xf32>
      %c1_i32_152 = arith.constant 1 : i32
      %120 = arith.addi %25, %c1_i32_152 : i32
      %121 = arith.index_cast %120 : i32 to index
      %c8_153 = arith.constant 8 : index
      %c0_154 = arith.constant 0 : index
      %122 = vector.load %arg10[%121, %c8_153, %c0_154] : memref<18x32x4xf32, #tpu.memory_space<vmem>>, vector<8x16x4xf32>
      %c1_155 = arith.constant 1 : index
      %c1_156 = arith.constant 1 : index
      %c0_157 = arith.constant 0 : index
      %c0_158 = arith.constant 0 : index
      %123 = vector.load %arg4[%c1_155, %c1_156, %c0_157, %c0_158] : memref<3x3x4x16xf32, #tpu.memory_space<vmem>>, vector<1x1x4x16xf32>
      %124 = vector.shape_cast %123 : vector<1x1x4x16xf32> to vector<4x16xf32>
      %cst_159 = arith.constant dense<0.000000e+00> : vector<8x16x16xf32>
      %125 = tpu.matmul %122, %124, %cst_159 {dimension_numbers = #tpu.dot_dimension_numbers<[2], [0], [0, 1], [1], [0, 0, 0, 1, 1, 1], [], []>} : vector<8x16x4xf32>, vector<4x16xf32>, vector<8x16x16xf32> -> vector<8x16x16xf32>
      %126 = arith.addf %119, %125 : vector<8x16x16xf32>
      %c1_i32_160 = arith.constant 1 : i32
      %127 = arith.addi %25, %c1_i32_160 : i32
      %128 = arith.index_cast %127 : i32 to index
      %c9_161 = arith.constant 9 : index
      %c0_162 = arith.constant 0 : index
      %129 = vector.load %arg10[%128, %c9_161, %c0_162] : memref<18x32x4xf32, #tpu.memory_space<vmem>>, vector<8x16x4xf32>
      %c1_163 = arith.constant 1 : index
      %c2_164 = arith.constant 2 : index
      %c0_165 = arith.constant 0 : index
      %c0_166 = arith.constant 0 : index
      %130 = vector.load %arg4[%c1_163, %c2_164, %c0_165, %c0_166] : memref<3x3x4x16xf32, #tpu.memory_space<vmem>>, vector<1x1x4x16xf32>
      %131 = vector.shape_cast %130 : vector<1x1x4x16xf32> to vector<4x16xf32>
      %cst_167 = arith.constant dense<0.000000e+00> : vector<8x16x16xf32>
      %132 = tpu.matmul %129, %131, %cst_167 {dimension_numbers = #tpu.dot_dimension_numbers<[2], [0], [0, 1], [1], [0, 0, 0, 1, 1, 1], [], []>} : vector<8x16x4xf32>, vector<4x16xf32>, vector<8x16x16xf32> -> vector<8x16x16xf32>
      %133 = arith.addf %126, %132 : vector<8x16x16xf32>
      %c2_i32_168 = arith.constant 2 : i32
      %134 = arith.addi %25, %c2_i32_168 : i32
      %135 = arith.index_cast %134 : i32 to index
      %c7_169 = arith.constant 7 : index
      %c0_170 = arith.constant 0 : index
      %136 = vector.load %arg10[%135, %c7_169, %c0_170] : memref<18x32x4xf32, #tpu.memory_space<vmem>>, vector<8x16x4xf32>
      %c2_171 = arith.constant 2 : index
      %c0_172 = arith.constant 0 : index
      %c0_173 = arith.constant 0 : index
      %c0_174 = arith.constant 0 : index
      %137 = vector.load %arg4[%c2_171, %c0_172, %c0_173, %c0_174] : memref<3x3x4x16xf32, #tpu.memory_space<vmem>>, vector<1x1x4x16xf32>
      %138 = vector.shape_cast %137 : vector<1x1x4x16xf32> to vector<4x16xf32>
      %cst_175 = arith.constant dense<0.000000e+00> : vector<8x16x16xf32>
      %139 = tpu.matmul %136, %138, %cst_175 {dimension_numbers = #tpu.dot_dimension_numbers<[2], [0], [0, 1], [1], [0, 0, 0, 1, 1, 1], [], []>} : vector<8x16x4xf32>, vector<4x16xf32>, vector<8x16x16xf32> -> vector<8x16x16xf32>
      %140 = arith.addf %133, %139 : vector<8x16x16xf32>
      %c2_i32_176 = arith.constant 2 : i32
      %141 = arith.addi %25, %c2_i32_176 : i32
      %142 = arith.index_cast %141 : i32 to index
      %c8_177 = arith.constant 8 : index
      %c0_178 = arith.constant 0 : index
      %143 = vector.load %arg10[%142, %c8_177, %c0_178] : memref<18x32x4xf32, #tpu.memory_space<vmem>>, vector<8x16x4xf32>
      %c2_179 = arith.constant 2 : index
      %c1_180 = arith.constant 1 : index
      %c0_181 = arith.constant 0 : index
      %c0_182 = arith.constant 0 : index
      %144 = vector.load %arg4[%c2_179, %c1_180, %c0_181, %c0_182] : memref<3x3x4x16xf32, #tpu.memory_space<vmem>>, vector<1x1x4x16xf32>
      %145 = vector.shape_cast %144 : vector<1x1x4x16xf32> to vector<4x16xf32>
      %cst_183 = arith.constant dense<0.000000e+00> : vector<8x16x16xf32>
      %146 = tpu.matmul %143, %145, %cst_183 {dimension_numbers = #tpu.dot_dimension_numbers<[2], [0], [0, 1], [1], [0, 0, 0, 1, 1, 1], [], []>} : vector<8x16x4xf32>, vector<4x16xf32>, vector<8x16x16xf32> -> vector<8x16x16xf32>
      %147 = arith.addf %140, %146 : vector<8x16x16xf32>
      %c2_i32_184 = arith.constant 2 : i32
      %148 = arith.addi %25, %c2_i32_184 : i32
      %149 = arith.index_cast %148 : i32 to index
      %c9_185 = arith.constant 9 : index
      %c0_186 = arith.constant 0 : index
      %150 = vector.load %arg10[%149, %c9_185, %c0_186] : memref<18x32x4xf32, #tpu.memory_space<vmem>>, vector<8x16x4xf32>
      %c2_187 = arith.constant 2 : index
      %c2_188 = arith.constant 2 : index
      %c0_189 = arith.constant 0 : index
      %c0_190 = arith.constant 0 : index
      %151 = vector.load %arg4[%c2_187, %c2_188, %c0_189, %c0_190] : memref<3x3x4x16xf32, #tpu.memory_space<vmem>>, vector<1x1x4x16xf32>
      %152 = vector.shape_cast %151 : vector<1x1x4x16xf32> to vector<4x16xf32>
      %cst_191 = arith.constant dense<0.000000e+00> : vector<8x16x16xf32>
      %153 = tpu.matmul %150, %152, %cst_191 {dimension_numbers = #tpu.dot_dimension_numbers<[2], [0], [0, 1], [1], [0, 0, 0, 1, 1, 1], [], []>} : vector<8x16x4xf32>, vector<4x16xf32>, vector<8x16x16xf32> -> vector<8x16x16xf32>
      %154 = arith.addf %147, %153 : vector<8x16x16xf32>
      %155 = vector.shape_cast %27 : vector<16xf32> to vector<1x1x16xf32>
      %156 = vector.broadcast %155 : vector<1x1x16xf32> to vector<8x16x16xf32>
      %157 = arith.addf %154, %156 : vector<8x16x16xf32>
      %cst_192 = arith.constant 0.000000e+00 : f32
      %158 = vector.broadcast %cst_192 : f32 to vector<8x16x16xf32>
      %159 = arith.maximumf %157, %158 : vector<8x16x16xf32>
      %c1_i32_193 = arith.constant 1 : i32
      %160 = arith.addi %25, %c1_i32_193 : i32
      %161 = arith.index_cast %160 : i32 to index
      %c8_194 = arith.constant 8 : index
      %c0_195 = arith.constant 0 : index
      %162 = vector.load %arg11[%161, %c8_194, %c0_195] : memref<18x32x16xf32, #tpu.memory_space<vmem>>, vector<8x16x16xf32>
      tpu.vector_store %arg11[%161, %c8_194, %c0_195], %159 {strides = array<i32>} : memref<18x32x16xf32, #tpu.memory_space<vmem>>, vector<8x16x16xf32>,
    }
    %c2_i32_45 = arith.constant 2 : i32
    %c0_i32_46 = arith.constant 0 : i32
    %c2_i32_47 = arith.constant 2 : i32
    %23 = arith.addi %c0_i32_46, %c2_i32_47 : i32
    %c1_i32_48 = arith.constant 1 : i32
    scf.for %arg12 = %c0_i32_46 to %23 step %c1_i32_48  : i32 {
      %c8_i32 = arith.constant 8 : i32
      %24 = arith.muli %arg12, %c8_i32 : i32
      %25 = tpu.assume_multiple %24, 8 : i32
      %c0_50 = arith.constant 0 : index
      %c0_51 = arith.constant 0 : index
      %26 = vector.load %arg7[%c0_50, %c0_51] : memref<1x16xf32, #tpu.memory_space<vmem>>, vector<1x16xf32>
      %27 = vector.shape_cast %26 : vector<1x16xf32> to vector<16xf32>
      %cst_52 = arith.constant 0.000000e+00 : f32
      %28 = vector.broadcast %cst_52 : f32 to vector<8x16x16xf32>
      %c0_i32_53 = arith.constant 0 : i32
      %29 = arith.addi %25, %c0_i32_53 : i32
      %30 = arith.index_cast %29 : i32 to index
      %c7 = arith.constant 7 : index
      %c0_54 = arith.constant 0 : index
      %31 = vector.load %arg11[%30, %c7, %c0_54] : memref<18x32x16xf32, #tpu.memory_space<vmem>>, vector<8x16x16xf32>
      %c0_55 = arith.constant 0 : index
      %c0_56 = arith.constant 0 : index
      %c0_57 = arith.constant 0 : index
      %c0_58 = arith.constant 0 : index
      %32 = vector.load %arg6[%c0_55, %c0_56, %c0_57, %c0_58] : memref<3x3x16x16xf32, #tpu.memory_space<vmem>>, vector<1x1x16x16xf32>
      %33 = vector.shape_cast %32 : vector<1x1x16x16xf32> to vector<16x16xf32>
      %cst_59 = arith.constant dense<0.000000e+00> : vector<8x16x16xf32>
      %34 = tpu.matmul %31, %33, %cst_59 {dimension_numbers = #tpu.dot_dimension_numbers<[2], [0], [0, 1], [1], [0, 0, 0, 1, 1, 1], [], []>} : vector<8x16x16xf32>, vector<16x16xf32>, vector<8x16x16xf32> -> vector<8x16x16xf32>
      %35 = arith.addf %28, %34 : vector<8x16x16xf32>
      %c0_i32_60 = arith.constant 0 : i32
      %36 = arith.addi %25, %c0_i32_60 : i32
      %37 = arith.index_cast %36 : i32 to index
      %c8 = arith.constant 8 : index
      %c0_61 = arith.constant 0 : index
      %38 = vector.load %arg11[%37, %c8, %c0_61] : memref<18x32x16xf32, #tpu.memory_space<vmem>>, vector<8x16x16xf32>
      %c0_62 = arith.constant 0 : index
      %c1 = arith.constant 1 : index
      %c0_63 = arith.constant 0 : index
      %c0_64 = arith.constant 0 : index
      %39 = vector.load %arg6[%c0_62, %c1, %c0_63, %c0_64] : memref<3x3x16x16xf32, #tpu.memory_space<vmem>>, vector<1x1x16x16xf32>
      %40 = vector.shape_cast %39 : vector<1x1x16x16xf32> to vector<16x16xf32>
      %cst_65 = arith.constant dense<0.000000e+00> : vector<8x16x16xf32>
      %41 = tpu.matmul %38, %40, %cst_65 {dimension_numbers = #tpu.dot_dimension_numbers<[2], [0], [0, 1], [1], [0, 0, 0, 1, 1, 1], [], []>} : vector<8x16x16xf32>, vector<16x16xf32>, vector<8x16x16xf32> -> vector<8x16x16xf32>
      %42 = arith.addf %35, %41 : vector<8x16x16xf32>
      %c0_i32_66 = arith.constant 0 : i32
      %43 = arith.addi %25, %c0_i32_66 : i32
      %44 = arith.index_cast %43 : i32 to index
      %c9 = arith.constant 9 : index
      %c0_67 = arith.constant 0 : index
      %45 = vector.load %arg11[%44, %c9, %c0_67] : memref<18x32x16xf32, #tpu.memory_space<vmem>>, vector<8x16x16xf32>
      %c0_68 = arith.constant 0 : index
      %c2 = arith.constant 2 : index
      %c0_69 = arith.constant 0 : index
      %c0_70 = arith.constant 0 : index
      %46 = vector.load %arg6[%c0_68, %c2, %c0_69, %c0_70] : memref<3x3x16x16xf32, #tpu.memory_space<vmem>>, vector<1x1x16x16xf32>
      %47 = vector.shape_cast %46 : vector<1x1x16x16xf32> to vector<16x16xf32>
      %cst_71 = arith.constant dense<0.000000e+00> : vector<8x16x16xf32>
      %48 = tpu.matmul %45, %47, %cst_71 {dimension_numbers = #tpu.dot_dimension_numbers<[2], [0], [0, 1], [1], [0, 0, 0, 1, 1, 1], [], []>} : vector<8x16x16xf32>, vector<16x16xf32>, vector<8x16x16xf32> -> vector<8x16x16xf32>
      %49 = arith.addf %42, %48 : vector<8x16x16xf32>
      %c1_i32_72 = arith.constant 1 : i32
      %50 = arith.addi %25, %c1_i32_72 : i32
      %51 = arith.index_cast %50 : i32 to index
      %c7_73 = arith.constant 7 : index
      %c0_74 = arith.constant 0 : index
      %52 = vector.load %arg11[%51, %c7_73, %c0_74] : memref<18x32x16xf32, #tpu.memory_space<vmem>>, vector<8x16x16xf32>
      %c1_75 = arith.constant 1 : index
      %c0_76 = arith.constant 0 : index
      %c0_77 = arith.constant 0 : index
      %c0_78 = arith.constant 0 : index
      %53 = vector.load %arg6[%c1_75, %c0_76, %c0_77, %c0_78] : memref<3x3x16x16xf32, #tpu.memory_space<vmem>>, vector<1x1x16x16xf32>
      %54 = vector.shape_cast %53 : vector<1x1x16x16xf32> to vector<16x16xf32>
      %cst_79 = arith.constant dense<0.000000e+00> : vector<8x16x16xf32>
      %55 = tpu.matmul %52, %54, %cst_79 {dimension_numbers = #tpu.dot_dimension_numbers<[2], [0], [0, 1], [1], [0, 0, 0, 1, 1, 1], [], []>} : vector<8x16x16xf32>, vector<16x16xf32>, vector<8x16x16xf32> -> vector<8x16x16xf32>
      %56 = arith.addf %49, %55 : vector<8x16x16xf32>
      %c1_i32_80 = arith.constant 1 : i32
      %57 = arith.addi %25, %c1_i32_80 : i32
      %58 = arith.index_cast %57 : i32 to index
      %c8_81 = arith.constant 8 : index
      %c0_82 = arith.constant 0 : index
      %59 = vector.load %arg11[%58, %c8_81, %c0_82] : memref<18x32x16xf32, #tpu.memory_space<vmem>>, vector<8x16x16xf32>
      %c1_83 = arith.constant 1 : index
      %c1_84 = arith.constant 1 : index
      %c0_85 = arith.constant 0 : index
      %c0_86 = arith.constant 0 : index
      %60 = vector.load %arg6[%c1_83, %c1_84, %c0_85, %c0_86] : memref<3x3x16x16xf32, #tpu.memory_space<vmem>>, vector<1x1x16x16xf32>
      %61 = vector.shape_cast %60 : vector<1x1x16x16xf32> to vector<16x16xf32>
      %cst_87 = arith.constant dense<0.000000e+00> : vector<8x16x16xf32>
      %62 = tpu.matmul %59, %61, %cst_87 {dimension_numbers = #tpu.dot_dimension_numbers<[2], [0], [0, 1], [1], [0, 0, 0, 1, 1, 1], [], []>} : vector<8x16x16xf32>, vector<16x16xf32>, vector<8x16x16xf32> -> vector<8x16x16xf32>
      %63 = arith.addf %56, %62 : vector<8x16x16xf32>
      %c1_i32_88 = arith.constant 1 : i32
      %64 = arith.addi %25, %c1_i32_88 : i32
      %65 = arith.index_cast %64 : i32 to index
      %c9_89 = arith.constant 9 : index
      %c0_90 = arith.constant 0 : index
      %66 = vector.load %arg11[%65, %c9_89, %c0_90] : memref<18x32x16xf32, #tpu.memory_space<vmem>>, vector<8x16x16xf32>
      %c1_91 = arith.constant 1 : index
      %c2_92 = arith.constant 2 : index
      %c0_93 = arith.constant 0 : index
      %c0_94 = arith.constant 0 : index
      %67 = vector.load %arg6[%c1_91, %c2_92, %c0_93, %c0_94] : memref<3x3x16x16xf32, #tpu.memory_space<vmem>>, vector<1x1x16x16xf32>
      %68 = vector.shape_cast %67 : vector<1x1x16x16xf32> to vector<16x16xf32>
      %cst_95 = arith.constant dense<0.000000e+00> : vector<8x16x16xf32>
      %69 = tpu.matmul %66, %68, %cst_95 {dimension_numbers = #tpu.dot_dimension_numbers<[2], [0], [0, 1], [1], [0, 0, 0, 1, 1, 1], [], []>} : vector<8x16x16xf32>, vector<16x16xf32>, vector<8x16x16xf32> -> vector<8x16x16xf32>
      %70 = arith.addf %63, %69 : vector<8x16x16xf32>
      %c2_i32_96 = arith.constant 2 : i32
      %71 = arith.addi %25, %c2_i32_96 : i32
      %72 = arith.index_cast %71 : i32 to index
      %c7_97 = arith.constant 7 : index
      %c0_98 = arith.constant 0 : index
      %73 = vector.load %arg11[%72, %c7_97, %c0_98] : memref<18x32x16xf32, #tpu.memory_space<vmem>>, vector<8x16x16xf32>
      %c2_99 = arith.constant 2 : index
      %c0_100 = arith.constant 0 : index
      %c0_101 = arith.constant 0 : index
      %c0_102 = arith.constant 0 : index
      %74 = vector.load %arg6[%c2_99, %c0_100, %c0_101, %c0_102] : memref<3x3x16x16xf32, #tpu.memory_space<vmem>>, vector<1x1x16x16xf32>
      %75 = vector.shape_cast %74 : vector<1x1x16x16xf32> to vector<16x16xf32>
      %cst_103 = arith.constant dense<0.000000e+00> : vector<8x16x16xf32>
      %76 = tpu.matmul %73, %75, %cst_103 {dimension_numbers = #tpu.dot_dimension_numbers<[2], [0], [0, 1], [1], [0, 0, 0, 1, 1, 1], [], []>} : vector<8x16x16xf32>, vector<16x16xf32>, vector<8x16x16xf32> -> vector<8x16x16xf32>
      %77 = arith.addf %70, %76 : vector<8x16x16xf32>
      %c2_i32_104 = arith.constant 2 : i32
      %78 = arith.addi %25, %c2_i32_104 : i32
      %79 = arith.index_cast %78 : i32 to index
      %c8_105 = arith.constant 8 : index
      %c0_106 = arith.constant 0 : index
      %80 = vector.load %arg11[%79, %c8_105, %c0_106] : memref<18x32x16xf32, #tpu.memory_space<vmem>>, vector<8x16x16xf32>
      %c2_107 = arith.constant 2 : index
      %c1_108 = arith.constant 1 : index
      %c0_109 = arith.constant 0 : index
      %c0_110 = arith.constant 0 : index
      %81 = vector.load %arg6[%c2_107, %c1_108, %c0_109, %c0_110] : memref<3x3x16x16xf32, #tpu.memory_space<vmem>>, vector<1x1x16x16xf32>
      %82 = vector.shape_cast %81 : vector<1x1x16x16xf32> to vector<16x16xf32>
      %cst_111 = arith.constant dense<0.000000e+00> : vector<8x16x16xf32>
      %83 = tpu.matmul %80, %82, %cst_111 {dimension_numbers = #tpu.dot_dimension_numbers<[2], [0], [0, 1], [1], [0, 0, 0, 1, 1, 1], [], []>} : vector<8x16x16xf32>, vector<16x16xf32>, vector<8x16x16xf32> -> vector<8x16x16xf32>
      %84 = arith.addf %77, %83 : vector<8x16x16xf32>
      %c2_i32_112 = arith.constant 2 : i32
      %85 = arith.addi %25, %c2_i32_112 : i32
      %86 = arith.index_cast %85 : i32 to index
      %c9_113 = arith.constant 9 : index
      %c0_114 = arith.constant 0 : index
      %87 = vector.load %arg11[%86, %c9_113, %c0_114] : memref<18x32x16xf32, #tpu.memory_space<vmem>>, vector<8x16x16xf32>
      %c2_115 = arith.constant 2 : index
      %c2_116 = arith.constant 2 : index
      %c0_117 = arith.constant 0 : index
      %c0_118 = arith.constant 0 : index
      %88 = vector.load %arg6[%c2_115, %c2_116, %c0_117, %c0_118] : memref<3x3x16x16xf32, #tpu.memory_space<vmem>>, vector<1x1x16x16xf32>
      %89 = vector.shape_cast %88 : vector<1x1x16x16xf32> to vector<16x16xf32>
      %cst_119 = arith.constant dense<0.000000e+00> : vector<8x16x16xf32>
      %90 = tpu.matmul %87, %89, %cst_119 {dimension_numbers = #tpu.dot_dimension_numbers<[2], [0], [0, 1], [1], [0, 0, 0, 1, 1, 1], [], []>} : vector<8x16x16xf32>, vector<16x16xf32>, vector<8x16x16xf32> -> vector<8x16x16xf32>
      %91 = arith.addf %84, %90 : vector<8x16x16xf32>
      %92 = vector.shape_cast %27 : vector<16xf32> to vector<1x1x16xf32>
      %93 = vector.broadcast %92 : vector<1x1x16xf32> to vector<8x16x16xf32>
      %94 = arith.addf %91, %93 : vector<8x16x16xf32>
      %cst_120 = arith.constant 0.000000e+00 : f32
      %95 = vector.broadcast %cst_120 : f32 to vector<8x16x16xf32>
      %96 = arith.maximumf %94, %95 : vector<8x16x16xf32>
      %c0_121 = arith.constant 0 : index
      %97 = arith.index_cast %25 : i32 to index
      %c0_122 = arith.constant 0 : index
      %c0_123 = arith.constant 0 : index
      %98 = vector.load %arg8[%c0_121, %97, %c0_122, %c0_123] : memref<1x16x16x16xf32, #tpu.memory_space<vmem>>, vector<1x8x16x16xf32>
      %99 = vector.shape_cast %98 : vector<1x8x16x16xf32> to vector<8x16x16xf32>
      %100 = vector.shape_cast %96 : vector<8x16x16xf32> to vector<1x8x16x16xf32>
      tpu.vector_store %arg8[%c0_121, %97, %c0_122, %c0_123], %100 {strides = array<i32>} : memref<1x16x16x16xf32, #tpu.memory_space<vmem>>, vector<1x8x16x16xf32>,
    }
    %c2_i32_49 = arith.constant 2 : i32
    return
  }
  func.func @transform_0(%arg0: i32) -> (i32, i32, i32, i32) {
    %c0_i32 = arith.constant 0 : i32
    %c0_i32_0 = arith.constant 0 : i32
    %c0_i32_1 = arith.constant 0 : i32
    %c0_i32_2 = arith.constant 0 : i32
    return %arg0, %c0_i32, %c0_i32_0, %c0_i32_1 : i32, i32, i32, i32
  }
  func.func @transform_1(%arg0: i32) -> (i32, i32, i32, i32) {
    %c0_i32 = arith.constant 0 : i32
    %c0_i32_0 = arith.constant 0 : i32
    %c0_i32_1 = arith.constant 0 : i32
    %c0_i32_2 = arith.constant 0 : i32
    return %arg0, %c0_i32, %c0_i32_0, %c0_i32_1 : i32, i32, i32, i32
  }
  func.func @transform_2(%arg0: i32) -> (i32, i32, i32, i32) {
    %c0_i32 = arith.constant 0 : i32
    %c0_i32_0 = arith.constant 0 : i32
    %c0_i32_1 = arith.constant 0 : i32
    %c0_i32_2 = arith.constant 0 : i32
    %c0_i32_3 = arith.constant 0 : i32
    return %c0_i32, %c0_i32_0, %c0_i32_1, %c0_i32_2 : i32, i32, i32, i32
  }
  func.func @transform_3(%arg0: i32) -> (i32, i32, i32, i32) {
    %c0_i32 = arith.constant 0 : i32
    %c0_i32_0 = arith.constant 0 : i32
    %c0_i32_1 = arith.constant 0 : i32
    %c0_i32_2 = arith.constant 0 : i32
    %c0_i32_3 = arith.constant 0 : i32
    return %c0_i32, %c0_i32_0, %c0_i32_1, %c0_i32_2 : i32, i32, i32, i32
  }
  func.func @transform_4(%arg0: i32) -> (i32, i32) {
    %c0_i32 = arith.constant 0 : i32
    %c0_i32_0 = arith.constant 0 : i32
    %c0_i32_1 = arith.constant 0 : i32
    return %c0_i32, %c0_i32_0 : i32, i32
  }
  func.func @transform_5(%arg0: i32) -> (i32, i32, i32, i32) {
    %c0_i32 = arith.constant 0 : i32
    %c0_i32_0 = arith.constant 0 : i32
    %c0_i32_1 = arith.constant 0 : i32
    %c0_i32_2 = arith.constant 0 : i32
    %c0_i32_3 = arith.constant 0 : i32
    return %c0_i32, %c0_i32_0, %c0_i32_1, %c0_i32_2 : i32, i32, i32, i32
  }
  func.func @transform_6(%arg0: i32) -> (i32, i32) {
    %c0_i32 = arith.constant 0 : i32
    %c0_i32_0 = arith.constant 0 : i32
    %c0_i32_1 = arith.constant 0 : i32
    return %c0_i32, %c0_i32_0 : i32, i32
  }
  func.func @transform_7(%arg0: i32) -> (i32, i32, i32, i32) {
    %c0_i32 = arith.constant 0 : i32
    %c0_i32_0 = arith.constant 0 : i32
    %c0_i32_1 = arith.constant 0 : i32
    %c0_i32_2 = arith.constant 0 : i32
    return %arg0, %c0_i32, %c0_i32_0, %c0_i32_1 : i32, i32, i32, i32
  }
}

</mosaic_0001>

<bundles_post_ra>
// kernel: decoder_block_forward.1
= control target key start
LH: loop header
LB: loop body
LE: loop exit
PB: predicated region body
PF: predicated region fallthrough
CT: control target
= control target key end

     0   :  { %12 = vsyncpa [#allocation6], 0  ;;  %s8078_s0 = inlined_call_operand.vmem [shape: f32[2,16,16,8], index: 0, kind: input, shape index: {}]   ;;  %s8079_s1 = inlined_call_operand.vmem [shape: f32[2,16,16,4], index: 1, kind: input, shape index: {}]   ;;  %s8080_s2 = inlined_call_operand.vmem [shape: f32[3,3,8,16], index: 2, kind: input, shape index: {}]   ;;  %s8081_s3 = inlined_call_operand.vmem [shape: f32[3,3,4,16], index: 3, kind: input, shape index: {}]   ;;  %s8082_s4 = inlined_call_operand.vmem [shape: f32[1,16], index: 4, kind: input, shape index: {}]   ;;  %s8083_s5 = inlined_call_operand.vmem [shape: f32[3,3,16,16], index: 5, kind: input, shape index: {}]   ;;  %s8084_s6 = inlined_call_operand.vmem [shape: f32[1,16], index: 6, kind: input, shape index: {}]   ;;  %s8085_s7 = inlined_call_operand.hbm [shape: f32[2,16,16,16], index: 7, kind: output, shape index: {}]  }
   0x1   :  { %14 = vsyncpa [#allocation6 + $0x1], 0  ;;  %s5816_s24 = smov 0   ;;  %s5818_s25 = smov 0  }
   0x2   :  { %s5820_s26 = smov 0   ;;  %s5822_s27 = smov 0  }
   0x3 LB: > { %s5837_s28 = sadd.s32 4294967295, %s5759_s27   ;;  %s4745_s29 = sadd.s32 4294967294, %s5759_s27   ;;  %s5759_s27 = sphi %s5822_s27, %s8144_s27   ;;  %s5755_s26 = sphi %s5820_s26, %s8143_s26   ;;  %s5751_s25 = sphi %s5818_s25, %s8142_s25   ;;  %s5747_s24 = sphi %s5816_s24, %s8141_s24  }
   0x4   : > { %s5841_s30 = sadd.s32 1, %s5759_s27   ;;  %s184_s8 = sadd.s32 1, %s5755_s26 }
   0x5   : > { %s181_s9 = ssub.s32 %s5759_s27, %s5841_s30  ;;  %p194_p0 = scmp.ne.s32.totalorder %s5755_s26, %s5751_s25 }
   0x6   : > { %p182_p1 = scmp.eq.s32.totalorder %s181_s9, 0  ;;  %p195_p2 = scmp.eq.s32.totalorder %s5837_s28, 1 }
   0x7   : > { %p200_p3 = scmp.ne.s32.totalorder %s5751_s25, %s5747_s24  ;;  %p201_p4 = scmp.eq.s32.totalorder %s4745_s29, 1 }
   0x8   : > { %s5852_s10 = scalar_select %p182_p1, %s5755_s26, %s184_s8  }
   0x9   : > { %p5854_p5 = por %p195_p2, %p194_p0  ;;  %p5858_p6 = por %p201_p4, %p200_p3 }
   0xa   : > { %p4748_p7 = scmp.ge.s32.totalorder %s5759_s27, 1  ;;  %p250_p8 = scmp.lt.s32.totalorder %s5759_s27, 3 }
   0xc   : > { %p251_p9 = pnand %p4748_p7, %p250_p8 }
   0xd   : > { %s284_s13 = sand.u32 (!%p251_p9), 1, %s5751_s25   ;;  %p287_p10 = scmp.lt.s32.totalorder (!%p251_p9), %s5837_s28, 1 }
   0xe   : > { %254 = sbr.rel (%p251_p9) target bundleno = 1345 (0x541), region = 48  ;;  %s5868_s14 = sshll.u32 (!%p251_p9), %s284_s13, 8 }
   0xf   : > { %s286_s23 = scalar_lea.vmem (!%p251_p9), [#allocation5], %s5868_s14  ;;  %s6146_s29 = smov (!%p251_p9), 0  }
  0x13   : > { %vm297_vm0 = vcmask 64512   ;;  %v5773_v0 = vmov 0.0   ;;  %s288_s15 = scalar_select %p287_p10, %s5837_s28, 1  ;;  %vm343_vm1 = vcmask 31744   ;;  %vm389_vm2 = vcmask 130048  }
  0x14   : > { %298 = vst.msk [vmem:[#allocation2] sm:$0xff] %vm297_vm0, %v5773_v0 }
  0x15   : > { %299 = vst.msk [vmem:[#allocation2 + $0x8] sm:$0xff] %vm297_vm0, %v5773_v0  ;;  %s5593_s16 = sshll.u32 %s288_s15, 8 }
  0x16   : > { %300 = vst.msk [vmem:[#allocation2 + $0x10] sm:$0xff] %vm297_vm0, %v5773_v0  ;;  %s5884_s19 = scalar_lea.vmem %s8078_s0, %s5593_s16  ;;  %s5889_s22 = scalar_lea.vmem %s8079_s1, %s5593_s16 }
  0x17   : > { %301 = vst.msk [vmem:[#allocation2 + $0x18] sm:$0xff] %vm297_vm0, %v5773_v0 }
  0x18   : > { %303 = vst.msk [vmem:[#allocation2 + $0x220] sm:$0xff] %vm297_vm0, %v5773_v0 }
  0x19   : > { %304 = vst.msk [vmem:[#allocation2 + $0x228] sm:$0xff] %vm297_vm0, %v5773_v0 }
  0x1a   : > { %305 = vst.msk [vmem:[#allocation2 + $0x230] sm:$0xff] %vm297_vm0, %v5773_v0 }
  0x1b   : > { %306 = vst.msk [vmem:[#allocation2 + $0x238] sm:$0xff] %vm297_vm0, %v5773_v0 }
  0x1c   : > { %307 = vst.msk [vmem:[#allocation2] sm:$0xff] %vm297_vm0, %v5773_v0 }
  0x1d   : > { %308 = vst.msk [vmem:[#allocation2 + $0x20] sm:$0xff] %vm297_vm0, %v5773_v0 }
  0x1e   : > { %309 = vst.msk [vmem:[#allocation2 + $0x40] sm:$0xff] %vm297_vm0, %v5773_v0 }
  0x1f   : > { %310 = vst.msk [vmem:[#allocation2 + $0x60] sm:$0xff] %vm297_vm0, %v5773_v0 }
  0x20   : > { %311 = vst.msk [vmem:[#allocation2 + $0x80] sm:$0xff] %vm297_vm0, %v5773_v0 }
  0x21   : > { %312 = vst.msk [vmem:[#allocation2 + $0xa0] sm:$0xff] %vm297_vm0, %v5773_v0 }
  0x22   : > { %313 = vst.msk [vmem:[#allocation2 + $0xc0] sm:$0xff] %vm297_vm0, %v5773_v0 }
  0x23   : > { %314 = vst.msk [vmem:[#allocation2 + $0xe0] sm:$0xff] %vm297_vm0, %v5773_v0 }
  0x24   : > { %315 = vst.msk [vmem:[#allocation2 + $0x100] sm:$0xff] %vm297_vm0, %v5773_v0 }
  0x25   : > { %316 = vst.msk [vmem:[#allocation2 + $0x120] sm:$0xff] %vm297_vm0, %v5773_v0 }
  0x26   : > { %317 = vst.msk [vmem:[#allocation2 + $0x140] sm:$0xff] %vm297_vm0, %v5773_v0 }
  0x27   : > { %318 = vst.msk [vmem:[#allocation2 + $0x160] sm:$0xff] %vm297_vm0, %v5773_v0 }
  0x28   : > { %319 = vst.msk [vmem:[#allocation2 + $0x180] sm:$0xff] %vm297_vm0, %v5773_v0 }
  0x29   : > { %320 = vst.msk [vmem:[#allocation2 + $0x1a0] sm:$0xff] %vm297_vm0, %v5773_v0 }
  0x2a   : > { %321 = vst.msk [vmem:[#allocation2 + $0x1c0] sm:$0xff] %vm297_vm0, %v5773_v0 }
  0x2b   : > { %322 = vst.msk [vmem:[#allocation2 + $0x1e0] sm:$0xff] %vm297_vm0, %v5773_v0 }
  0x2c   : > { %323 = vst.msk [vmem:[#allocation2 + $0x200] sm:$0xff] %vm297_vm0, %v5773_v0 }
  0x2d   : > { %326 = vst.msk [vmem:[#allocation2 + $0x38] sm:$0xff] %vm297_vm0, %v5773_v0 }
  0x2e   : > { %327 = vst.msk [vmem:[#allocation2 + $0x58] sm:$0xff] %vm297_vm0, %v5773_v0 }
  0x2f   : > { %328 = vst.msk [vmem:[#allocation2 + $0x78] sm:$0xff] %vm297_vm0, %v5773_v0 }
  0x30   : > { %329 = vst.msk [vmem:[#allocation2 + $0x98] sm:$0xff] %vm297_vm0, %v5773_v0 }
  0x31   : > { %330 = vst.msk [vmem:[#allocation2 + $0xb8] sm:$0xff] %vm297_vm0, %v5773_v0 }
  0x32   : > { %331 = vst.msk [vmem:[#allocation2 + $0xd8] sm:$0xff] %vm297_vm0, %v5773_v0 }
  0x33   : > { %332 = vst.msk [vmem:[#allocation2 + $0xf8] sm:$0xff] %vm297_vm0, %v5773_v0 }
  0x34   : > { %333 = vst.msk [vmem:[#allocation2 + $0x118] sm:$0xff] %vm297_vm0, %v5773_v0 }
  0x35   : > { %334 = vst.msk [vmem:[#allocation2 + $0x138] sm:$0xff] %vm297_vm0, %v5773_v0 }
  0x36   : > { %335 = vst.msk [vmem:[#allocation2 + $0x158] sm:$0xff] %vm297_vm0, %v5773_v0 }
  0x37   : > { %336 = vst.msk [vmem:[#allocation2 + $0x178] sm:$0xff] %vm297_vm0, %v5773_v0 }
  0x38   : > { %337 = vst.msk [vmem:[#allocation2 + $0x198] sm:$0xff] %vm297_vm0, %v5773_v0 }
  0x39   : > { %338 = vst.msk [vmem:[#allocation2 + $0x1b8] sm:$0xff] %vm297_vm0, %v5773_v0 }
  0x3a   : > { %339 = vst.msk [vmem:[#allocation2 + $0x1d8] sm:$0xff] %vm297_vm0, %v5773_v0 }
  0x3b   : > { %340 = vst.msk [vmem:[#allocation2 + $0x1f8] sm:$0xff] %vm297_vm0, %v5773_v0 }
  0x3c   : > { %341 = vst.msk [vmem:[#allocation2 + $0x218] sm:$0xff] %vm297_vm0, %v5773_v0 }
  0x3d   : > { %324 = vst.msk [vmem:[#allocation2 + $0x220] sm:$0xff] %vm297_vm0, %v5773_v0 }
  0x3e   : > { %325 = vst.msk [vmem:[#allocation2 + $0x18] sm:$0xff] %vm297_vm0, %v5773_v0 }
  0x3f   : > { %342 = vst.msk [vmem:[#allocation2 + $0x238] sm:$0xff] %vm297_vm0, %v5773_v0 }
  0x40   : > { %344 = vst.msk [vmem:[#allocation3] sm:$0xff] %vm343_vm1, %v5773_v0 }
  0x41   : > { %345 = vst.msk [vmem:[#allocation3 + $0x8] sm:$0xff] %vm343_vm1, %v5773_v0 }
  0x42   : > { %346 = vst.msk [vmem:[#allocation3 + $0x10] sm:$0xff] %vm343_vm1, %v5773_v0 }
  0x43   : > { %347 = vst.msk [vmem:[#allocation3 + $0x18] sm:$0xff] %vm343_vm1, %v5773_v0 }
  0x44   : > { %349 = vst.msk [vmem:[#allocation3 + $0x220] sm:$0xff] %vm343_vm1, %v5773_v0 }
  0x45   : > { %350 = vst.msk [vmem:[#allocation3 + $0x228] sm:$0xff] %vm343_vm1, %v5773_v0 }
  0x46   : > { %351 = vst.msk [vmem:[#allocation3 + $0x230] sm:$0xff] %vm343_vm1, %v5773_v0 }
  0x47   : > { %352 = vst.msk [vmem:[#allocation3 + $0x238] sm:$0xff] %vm343_vm1, %v5773_v0 }
  0x48   : > { %353 = vst.msk [vmem:[#allocation3] sm:$0xff] %vm343_vm1, %v5773_v0 }
  0x49   : > { %354 = vst.msk [vmem:[#allocation3 + $0x20] sm:$0xff] %vm343_vm1, %v5773_v0 }
  0x4a   : > { %355 = vst.msk [vmem:[#allocation3 + $0x40] sm:$0xff] %vm343_vm1, %v5773_v0 }
  0x4b   : > { %356 = vst.msk [vmem:[#allocation3 + $0x60] sm:$0xff] %vm343_vm1, %v5773_v0 }
  0x4c   : > { %357 = vst.msk [vmem:[#allocation3 + $0x80] sm:$0xff] %vm343_vm1, %v5773_v0 }
  0x4d   : > { %358 = vst.msk [vmem:[#allocation3 + $0xa0] sm:$0xff] %vm343_vm1, %v5773_v0 }
  0x4e   : > { %359 = vst.msk [vmem:[#allocation3 + $0xc0] sm:$0xff] %vm343_vm1, %v5773_v0 }
  0x4f   : > { %360 = vst.msk [vmem:[#allocation3 + $0xe0] sm:$0xff] %vm343_vm1, %v5773_v0 }
  0x50   : > { %361 = vst.msk [vmem:[#allocation3 + $0x100] sm:$0xff] %vm343_vm1, %v5773_v0 }
  0x51   : > { %362 = vst.msk [vmem:[#allocation3 + $0x120] sm:$0xff] %vm343_vm1, %v5773_v0 }
  0x52   : > { %363 = vst.msk [vmem:[#allocation3 + $0x140] sm:$0xff] %vm343_vm1, %v5773_v0 }
  0x53   : > { %364 = vst.msk [vmem:[#allocation3 + $0x160] sm:$0xff] %vm343_vm1, %v5773_v0 }
  0x54   : > { %365 = vst.msk [vmem:[#allocation3 + $0x180] sm:$0xff] %vm343_vm1, %v5773_v0 }
  0x55   : > { %366 = vst.msk [vmem:[#allocation3 + $0x1a0] sm:$0xff] %vm343_vm1, %v5773_v0 }
  0x56   : > { %367 = vst.msk [vmem:[#allocation3 + $0x1c0] sm:$0xff] %vm343_vm1, %v5773_v0 }
  0x57   : > { %368 = vst.msk [vmem:[#allocation3 + $0x1e0] sm:$0xff] %vm343_vm1, %v5773_v0 }
  0x58   : > { %369 = vst.msk [vmem:[#allocation3 + $0x200] sm:$0xff] %vm343_vm1, %v5773_v0 }
  0x59   : > { %372 = vst.msk [vmem:[#allocation3 + $0x38] sm:$0xff] %vm343_vm1, %v5773_v0 }
  0x5a   : > { %373 = vst.msk [vmem:[#allocation3 + $0x58] sm:$0xff] %vm343_vm1, %v5773_v0 }
  0x5b   : > { %374 = vst.msk [vmem:[#allocation3 + $0x78] sm:$0xff] %vm343_vm1, %v5773_v0 }
  0x5c   : > { %375 = vst.msk [vmem:[#allocation3 + $0x98] sm:$0xff] %vm343_vm1, %v5773_v0 }
  0x5d   : > { %376 = vst.msk [vmem:[#allocation3 + $0xb8] sm:$0xff] %vm343_vm1, %v5773_v0 }
  0x5e   : > { %377 = vst.msk [vmem:[#allocation3 + $0xd8] sm:$0xff] %vm343_vm1, %v5773_v0 }
  0x5f   : > { %378 = vst.msk [vmem:[#allocation3 + $0xf8] sm:$0xff] %vm343_vm1, %v5773_v0 }
  0x60   : > { %379 = vst.msk [vmem:[#allocation3 + $0x118] sm:$0xff] %vm343_vm1, %v5773_v0 }
  0x61   : > { %380 = vst.msk [vmem:[#allocation3 + $0x138] sm:$0xff] %vm343_vm1, %v5773_v0 }
  0x62   : > { %381 = vst.msk [vmem:[#allocation3 + $0x158] sm:$0xff] %vm343_vm1, %v5773_v0 }
  0x63   : > { %382 = vst.msk [vmem:[#allocation3 + $0x178] sm:$0xff] %vm343_vm1, %v5773_v0 }
  0x64   : > { %383 = vst.msk [vmem:[#allocation3 + $0x198] sm:$0xff] %vm343_vm1, %v5773_v0 }
  0x65   : > { %384 = vst.msk [vmem:[#allocation3 + $0x1b8] sm:$0xff] %vm343_vm1, %v5773_v0 }
  0x66   : > { %385 = vst.msk [vmem:[#allocation3 + $0x1d8] sm:$0xff] %vm343_vm1, %v5773_v0 }
  0x67   : > { %386 = vst.msk [vmem:[#allocation3 + $0x1f8] sm:$0xff] %vm343_vm1, %v5773_v0 }
  0x68   : > { %387 = vst.msk [vmem:[#allocation3 + $0x218] sm:$0xff] %vm343_vm1, %v5773_v0 }
  0x69   : > { %370 = vst.msk [vmem:[#allocation3 + $0x220] sm:$0xff] %vm343_vm1, %v5773_v0 }
  0x6a   : > { %371 = vst.msk [vmem:[#allocation3 + $0x18] sm:$0xff] %vm343_vm1, %v5773_v0 }
  0x6b   : > { %388 = vst.msk [vmem:[#allocation3 + $0x238] sm:$0xff] %vm343_vm1, %v5773_v0 }
  0x6c   : > { %390 = vst.msk [vmem:[#allocation4] sm:$0xff] %vm389_vm2, %v5773_v0 }
  0x6d   : > { %391 = vst.msk [vmem:[#allocation4 + $0x8] sm:$0xff] %vm389_vm2, %v5773_v0 }
  0x6e   : > { %392 = vst.msk [vmem:[#allocation4 + $0x10] sm:$0xff] %vm389_vm2, %v5773_v0 }
  0x6f   : > { %393 = vst.msk [vmem:[#allocation4 + $0x18] sm:$0xff] %vm389_vm2, %v5773_v0 }
  0x70   : > { %395 = vst.msk [vmem:[#allocation4 + $0x220] sm:$0xff] %vm389_vm2, %v5773_v0 }
  0x71   : > { %396 = vst.msk [vmem:[#allocation4 + $0x228] sm:$0xff] %vm389_vm2, %v5773_v0 }
  0x72   : > { %397 = vst.msk [vmem:[#allocation4 + $0x230] sm:$0xff] %vm389_vm2, %v5773_v0 }
  0x73   : > { %398 = vst.msk [vmem:[#allocation4 + $0x238] sm:$0xff] %vm389_vm2, %v5773_v0 }
  0x74   : > { %399 = vst.msk [vmem:[#allocation4] sm:$0xff] %vm389_vm2, %v5773_v0 }
  0x75   : > { %400 = vst.msk [vmem:[#allocation4 + $0x20] sm:$0xff] %vm389_vm2, %v5773_v0 }
  0x76   : > { %401 = vst.msk [vmem:[#allocation4 + $0x40] sm:$0xff] %vm389_vm2, %v5773_v0 }
  0x77   : > { %402 = vst.msk [vmem:[#allocation4 + $0x60] sm:$0xff] %vm389_vm2, %v5773_v0 }
  0x78   : > { %403 = vst.msk [vmem:[#allocation4 + $0x80] sm:$0xff] %vm389_vm2, %v5773_v0 }
  0x79   : > { %404 = vst.msk [vmem:[#allocation4 + $0xa0] sm:$0xff] %vm389_vm2, %v5773_v0 }
  0x7a   : > { %405 = vst.msk [vmem:[#allocation4 + $0xc0] sm:$0xff] %vm389_vm2, %v5773_v0 }
  0x7b   : > { %406 = vst.msk [vmem:[#allocation4 + $0xe0] sm:$0xff] %vm389_vm2, %v5773_v0 }
  0x7c   : > { %407 = vst.msk [vmem:[#allocation4 + $0x100] sm:$0xff] %vm389_vm2, %v5773_v0 }
  0x7d   : > { %408 = vst.msk [vmem:[#allocation4 + $0x120] sm:$0xff] %vm389_vm2, %v5773_v0 }
  0x7e   : > { %409 = vst.msk [vmem:[#allocation4 + $0x140] sm:$0xff] %vm389_vm2, %v5773_v0 }
  0x7f   : > { %410 = vst.msk [vmem:[#allocation4 + $0x160] sm:$0xff] %vm389_vm2, %v5773_v0 }
  0x80   : > { %411 = vst.msk [vmem:[#allocation4 + $0x180] sm:$0xff] %vm389_vm2, %v5773_v0 }
  0x81   : > { %412 = vst.msk [vmem:[#allocation4 + $0x1a0] sm:$0xff] %vm389_vm2, %v5773_v0 }
  0x82   : > { %413 = vst.msk [vmem:[#allocation4 + $0x1c0] sm:$0xff] %vm389_vm2, %v5773_v0 }
  0x83   : > { %414 = vst.msk [vmem:[#allocation4 + $0x1e0] sm:$0xff] %vm389_vm2, %v5773_v0 }
  0x84   : > { %415 = vst.msk [vmem:[#allocation4 + $0x200] sm:$0xff] %vm389_vm2, %v5773_v0 }
  0x85   : > { %418 = vst.msk [vmem:[#allocation4 + $0x38] sm:$0xff] %vm389_vm2, %v5773_v0 }
  0x86   : > { %419 = vst.msk [vmem:[#allocation4 + $0x58] sm:$0xff] %vm389_vm2, %v5773_v0 }
  0x87   : > { %420 = vst.msk [vmem:[#allocation4 + $0x78] sm:$0xff] %vm389_vm2, %v5773_v0 }
  0x88   : > { %421 = vst.msk [vmem:[#allocation4 + $0x98] sm:$0xff] %vm389_vm2, %v5773_v0 }
  0x89   : > { %422 = vst.msk [vmem:[#allocation4 + $0xb8] sm:$0xff] %vm389_vm2, %v5773_v0 }
  0x8a   : > { %423 = vst.msk [vmem:[#allocation4 + $0xd8] sm:$0xff] %vm389_vm2, %v5773_v0 }
  0x8b   : > { %424 = vst.msk [vmem:[#allocation4 + $0xf8] sm:$0xff] %vm389_vm2, %v5773_v0 }
  0x8c   : > { %425 = vst.msk [vmem:[#allocation4 + $0x118] sm:$0xff] %vm389_vm2, %v5773_v0 }
  0x8d   : > { %426 = vst.msk [vmem:[#allocation4 + $0x138] sm:$0xff] %vm389_vm2, %v5773_v0 }
  0x8e   : > { %427 = vst.msk [vmem:[#allocation4 + $0x158] sm:$0xff] %vm389_vm2, %v5773_v0 }
  0x8f   : > { %428 = vst.msk [vmem:[#allocation4 + $0x178] sm:$0xff] %vm389_vm2, %v5773_v0 }
  0x90   : > { %429 = vst.msk [vmem:[#allocation4 + $0x198] sm:$0xff] %vm389_vm2, %v5773_v0 }
  0x91   : > { %430 = vst.msk [vmem:[#allocation4 + $0x1b8] sm:$0xff] %vm389_vm2, %v5773_v0 }
  0x92   : > { %431 = vst.msk [vmem:[#allocation4 + $0x1d8] sm:$0xff] %vm389_vm2, %v5773_v0 }
  0x93   : > { %432 = vst.msk [vmem:[#allocation4 + $0x1f8] sm:$0xff] %vm389_vm2, %v5773_v0 }
  0x94   : > { %433 = vst.msk [vmem:[#allocation4 + $0x218] sm:$0xff] %vm389_vm2, %v5773_v0 }
  0x95   : > { %416 = vst.msk [vmem:[#allocation4 + $0x220] sm:$0xff] %vm389_vm2, %v5773_v0 }
  0x96   : > { %417 = vst.msk [vmem:[#allocation4 + $0x18] sm:$0xff] %vm389_vm2, %v5773_v0 }
  0x97   : > { %434 = vst.msk [vmem:[#allocation4 + $0x238] sm:$0xff] %vm389_vm2, %v5773_v0 }
  0x98 LB: >> { %s5595_s8 = sshll.u32 %s5763_s29, 7  ;;  %s5596_s9 = sshll.u32 %s5763_s29, 8  ;;  %s5763_s29 = sphi %s6146_s29, %s440_s29  }
  0x99   : >> { %s6156_s15 = scalar_lea.vmem %s5884_s19, %s5595_s8  ;;  %s6163_s16 = scalar_lea.vmem [#allocation2], %s5596_s9 }
  0x9a   : >> { %v444_v1 = vld [vmem:[%s6156_s15] sm:$0xff]  ;;  %v445_v2 = vld [vmem:[%s6156_s15 + $0x8] sm:$0xff]  ;;  %v446_v3 = vld [vmem:[%s6156_s15 + $0x10] sm:$0xff]  ;;  %s6201_s17 = scalar_lea.vmem %s5889_s22, %s5595_s8  ;;  %s4657_s18 = scalar_lea.vmem [#allocation3], %s5596_s9 }
  0x9b   : >> { %4758 = vst.msk [vmem:[%s6163_s16 + $0x28] sm:$0xff] %vm297_vm0, %v444_v1  ;;  %v447_v4 = vld [vmem:[%s6156_s15 + $0x18] sm:$0xff]  ;;  %v448_v5 = vld [vmem:[%s6156_s15 + $0x20] sm:$0xff]  ;;  %v449_v6 = vld [vmem:[%s6156_s15 + $0x28] sm:$0xff]  ;;  %s440_s29 = sadd.s32 1, %s5763_s29  }
  0x9c   : >> { %4759 = vst.msk [vmem:[%s6163_s16 + $0x30] sm:$0xff] %vm297_vm0, %v445_v2  ;;  %v450_v7 = vld [vmem:[%s6156_s15 + $0x30] sm:$0xff]  ;;  %v451_v8 = vld [vmem:[%s6156_s15 + $0x38] sm:$0xff]  ;;  %v452_v9 = vld [vmem:[%s6156_s15 + $0x40] sm:$0xff]  ;;  %p437_p11 = scmp.ge.s32.totalorder %s440_s29, 2  }
  0x9d   : >> { %4760 = vst.msk [vmem:[%s6163_s16 + $0x48] sm:$0xff] %vm297_vm0, %v446_v3  ;;  %v453_v10 = vld [vmem:[%s6156_s15 + $0x48] sm:$0xff]  ;;  %v454_v11 = vld [vmem:[%s6156_s15 + $0x50] sm:$0xff]  ;;  %v455_v12 = vld [vmem:[%s6156_s15 + $0x58] sm:$0xff]  ;;  %s6252_s20 = smov (%p437_p11), 0  }
  0x9e   : >> { %4761 = vst.msk [vmem:[%s6163_s16 + $0x50] sm:$0xff] %vm297_vm0, %v447_v4  ;;  %v456_v13 = vld [vmem:[%s6156_s15 + $0x60] sm:$0xff]  ;;  %v457_v14 = vld [vmem:[%s6156_s15 + $0x68] sm:$0xff]  ;;  %v458_v15 = vld [vmem:[%s6156_s15 + $0x70] sm:$0xff] }
  0x9f   : >> { %4762 = vst.msk [vmem:[%s6163_s16 + $0x68] sm:$0xff] %vm297_vm0, %v448_v5  ;;  %v459_v16 = vld [vmem:[%s6156_s15 + $0x78] sm:$0xff]  ;;  %v480_v17 = vld [vmem:[%s6201_s17] sm:$0xff]  ;;  %v481_v18 = vld [vmem:[%s6201_s17 + $0x8] sm:$0xff] }
  0xa0   : >> { %4763 = vst.msk [vmem:[%s6163_s16 + $0x70] sm:$0xff] %vm297_vm0, %v449_v6  ;;  %v482_v19 = vld [vmem:[%s6201_s17 + $0x10] sm:$0xff]  ;;  %v483_v20 = vld [vmem:[%s6201_s17 + $0x18] sm:$0xff]  ;;  %v484_v21 = vld [vmem:[%s6201_s17 + $0x20] sm:$0xff] }
  0xa1   : >> { %4764 = vst.msk [vmem:[%s6163_s16 + $0x88] sm:$0xff] %vm297_vm0, %v450_v7  ;;  %v485_v22 = vld [vmem:[%s6201_s17 + $0x28] sm:$0xff]  ;;  %v486_v23 = vld [vmem:[%s6201_s17 + $0x30] sm:$0xff]  ;;  %v487_v24 = vld [vmem:[%s6201_s17 + $0x38] sm:$0xff] }
  0xa2   : >> { %4765 = vst.msk [vmem:[%s6163_s16 + $0x90] sm:$0xff] %vm297_vm0, %v451_v8  ;;  %v488_v25 = vld [vmem:[%s6201_s17 + $0x40] sm:$0xff]  ;;  %v489_v26 = vld [vmem:[%s6201_s17 + $0x48] sm:$0xff]  ;;  %v490_v27 = vld [vmem:[%s6201_s17 + $0x50] sm:$0xff] }
  0xa3   : >> { %4766 = vst.msk [vmem:[%s6163_s16 + $0xa8] sm:$0xff] %vm297_vm0, %v452_v9  ;;  %v491_v28 = vld [vmem:[%s6201_s17 + $0x58] sm:$0xff]  ;;  %v492_v29 = vld [vmem:[%s6201_s17 + $0x60] sm:$0xff]  ;;  %v493_v30 = vld [vmem:[%s6201_s17 + $0x68] sm:$0xff] }
  0xa4   : >> { %4767 = vst.msk [vmem:[%s6163_s16 + $0xb0] sm:$0xff] %vm297_vm0, %v453_v10  ;;  %v494_v31 = vld [vmem:[%s6201_s17 + $0x70] sm:$0xff]  ;;  %v495_v32 = vld [vmem:[%s6201_s17 + $0x78] sm:$0xff] }
  0xa5   : >> { %4768 = vst.msk [vmem:[%s6163_s16 + $0xc8] sm:$0xff] %vm297_vm0, %v454_v11 }
  0xa6   : >> { %4769 = vst.msk [vmem:[%s6163_s16 + $0xd0] sm:$0xff] %vm297_vm0, %v455_v12 }
  0xa7   : >> { %4770 = vst.msk [vmem:[%s6163_s16 + $0xe8] sm:$0xff] %vm297_vm0, %v456_v13 }
  0xa8   : >> { %4771 = vst.msk [vmem:[%s6163_s16 + $0xf0] sm:$0xff] %vm297_vm0, %v457_v14 }
  0xa9   : >> { %4772 = vst.msk [vmem:[%s6163_s16 + $0x108] sm:$0xff] %vm297_vm0, %v458_v15 }
  0xaa   : >> { %4773 = vst.msk [vmem:[%s6163_s16 + $0x110] sm:$0xff] %vm297_vm0, %v459_v16 }
  0xab   : >> { %4776 = vst.msk [vmem:[%s4657_s18 + $0x28] sm:$0xff] %vm343_vm1, %v480_v17 }
  0xac   : >> { %4777 = vst.msk [vmem:[%s4657_s18 + $0x30] sm:$0xff] %vm343_vm1, %v481_v18 }
  0xad   : >> { %4778 = vst.msk [vmem:[%s4657_s18 + $0x48] sm:$0xff] %vm343_vm1, %v482_v19 }
  0xae   : >> { %4779 = vst.msk [vmem:[%s4657_s18 + $0x50] sm:$0xff] %vm343_vm1, %v483_v20 }
  0xaf   : >> { %4780 = vst.msk [vmem:[%s4657_s18 + $0x68] sm:$0xff] %vm343_vm1, %v484_v21 }
  0xb0   : >> { %4781 = vst.msk [vmem:[%s4657_s18 + $0x70] sm:$0xff] %vm343_vm1, %v485_v22 }
  0xb1   : >> { %4782 = vst.msk [vmem:[%s4657_s18 + $0x88] sm:$0xff] %vm343_vm1, %v486_v23 }
  0xb2   : >> { %4783 = vst.msk [vmem:[%s4657_s18 + $0x90] sm:$0xff] %vm343_vm1, %v487_v24 }
  0xb3   : >> { %4784 = vst.msk [vmem:[%s4657_s18 + $0xa8] sm:$0xff] %vm343_vm1, %v488_v25 }
  0xb4   : >> { %4785 = vst.msk [vmem:[%s4657_s18 + $0xb0] sm:$0xff] %vm343_vm1, %v489_v26 }
  0xb5   : >> { %4786 = vst.msk [vmem:[%s4657_s18 + $0xc8] sm:$0xff] %vm343_vm1, %v490_v27 }
  0xb6   : >> { %4787 = vst.msk [vmem:[%s4657_s18 + $0xd0] sm:$0xff] %vm343_vm1, %v491_v28  ;;  %439 = sbr.rel (!%p437_p11) target bundleno = 152 (0x98), region = 149 }
  0xb7   : >> { %4788 = vst.msk [vmem:[%s4657_s18 + $0xe8] sm:$0xff] %vm343_vm1, %v492_v29 }
  0xb8   : >> { %4789 = vst.msk [vmem:[%s4657_s18 + $0xf0] sm:$0xff] %vm343_vm1, %v493_v30 }
  0xb9   : >> { %4790 = vst.msk [vmem:[%s4657_s18 + $0x108] sm:$0xff] %vm343_vm1, %v494_v31 }
  0xba   : >> { %4791 = vst.msk [vmem:[%s4657_s18 + $0x110] sm:$0xff] %vm343_vm1, %v495_v32 }
  0xbb LB: >> { %v4794_v33 = vld [vmem:[%s8080_s2 + $0x8] sm:$0xff]  ;;  %v539_v34 = vld [vmem:[%s8080_s2] sm:$0xff]  ;;  %v4827_v35 = vld [vmem:[%s8080_s2 + $0x10] sm:$0xff]  ;;  %s6276_s9 = sshll.u32 %s5767_s20, 8  ;;  %vm1885_vm3 = vcmask 1043456   ;;  %s518_s20 = sadd.s32 1, %s5767_s20   ;;  %s5767_s20 = sphi %s6252_s20, %s518_s20  }
  0xbc   : >> { %5609 = vmatpush.msra.mxu2 %v4794_v33  ;;  %5610 = vmatpush.msra.mxu3 %v539_v34  ;;  %v4862_v36 = vld [vmem:[%s8080_s2 + $0x18] sm:$0xff]  ;;  %v4895_v37 = vld [vmem:[%s8080_s2 + $0x20] sm:$0xff]  ;;  %v4928_v38 = vld [vmem:[%s8080_s2 + $0x28] sm:$0xff]  ;;  %s6279_s15 = scalar_lea.vmem [#allocation2], %s6276_s9  ;;  %s6671_s16 = scalar_lea.vmem [#allocation3], %s6276_s9 }
  0xbd   : >> { %621 = vmatpush.msra.mxu0 %v4794_v33  ;;  %734 = vmatpush.msra.mxu1 %v539_v34  ;;  %v6282_v39 = vld [vmem:[%s6279_s15 + $0x88] sm:$0xff]  ;;  %v6296_v43 = vld [vmem:[%s6279_s15 + $0x90] sm:$0xff]  ;;  %v4996_v60 = vld [vmem:[%s8080_s2 + $0x38] sm:$0xff]  ;;  %s7362_s19 = scalar_lea.vmem [#allocation4], %s6276_s9  ;;  %p515_p12 = scmp.ge.s32.totalorder %s518_s20, 2  }
  0xbe   : >> { %865 = vmatpush.msrb.mxu2 %v4827_v35  ;;  %1015 = vmatpush.msrb.mxu3 %v4862_v36  ;;  %v6285_v40 = vld [vmem:[%s6279_s15 + $0x87] sm:$0xff]  ;;  %v6299_v44 = vld [vmem:[%s6279_s15 + $0x8f] sm:$0xff]  ;;  %v1836_v2 = vld [vmem:[%s8081_s3] sm:$0xf]  ;;  %s7428_s9 = smov (%p515_p12), 0  }
  0xbf   : >> { %1162 = vmatpush.msrb.mxu0 %v4895_v37  ;;  %1309 = vmatpush.msrb.mxu1 %v4928_v38  ;;  %v540_v41 = vld [vmem:[%s6279_s15 + $0x8] sm:$0xff]  ;;  %v541_v45 = vld [vmem:[%s6279_s15 + $0x10] sm:$0xff]  ;;  %v5029_v1 = vld [vmem:[%s8080_s2 + $0x40] sm:$0xff] }
  0xc0   : >> { %4803 = vmatmul.msk.f32.vlgmr.msra.gmra.mxu2 %vm297_vm0, %v6282_v39  ;;  %4819 = vmatmul.msk.f32.vlgmr.msra.gmra.mxu3 %vm297_vm0, %v6285_v40  ;;  %v523_v42 = vld [vmem:[%s6279_s15 + $0x7] sm:$0xff]  ;;  %v524_v46 = vld [vmem:[%s6279_s15 + $0xf] sm:$0xff] }
  0xc1   : >> { %4795 = vmatmul.msk.f32.vlgmr.msra.gmra.mxu0 %vm297_vm0, %v540_v41  ;;  %4811 = vmatmul.msk.f32.vlgmr.msra.gmra.mxu1 %vm297_vm0, %v523_v42  ;;  %v6310_v47 = vld [vmem:[%s6279_s15 + $0xa8] sm:$0xff]  ;;  %v6324_v51 = vld [vmem:[%s6279_s15 + $0xb0] sm:$0xff] }
  0xc2   : >> { %v6313_v48 = vld [vmem:[%s6279_s15 + $0xa7] sm:$0xff]  ;;  %v6327_v52 = vld [vmem:[%s6279_s15 + $0xaf] sm:$0xff]  ;;  %1606 = vmatpush.msra.mxu3 %v4996_v60  ;;  %1753 = vmatpush.msra.mxu0 %v5029_v1 }
  0xc3   : >> { %v542_v49 = vld [vmem:[%s6279_s15 + $0x28] sm:$0xff]  ;;  %v543_v53 = vld [vmem:[%s6279_s15 + $0x30] sm:$0xff]  ;;  %5046 = vmatpush.msk.msra.mxu1 %vm1885_vm3, %v1836_v2  ;;  %v5063_v60 = vld [vmem:[%s8081_s3 + $0x4] sm:$0xf] }
  0xc4   : >> { %v525_v50 = vld [vmem:[%s6279_s15 + $0x27] sm:$0xff]  ;;  %v526_v54 = vld [vmem:[%s6279_s15 + $0x2f] sm:$0xff] }
  0xc5   : >> { %v6338_v55 = vld [vmem:[%s6279_s15 + $0xc8] sm:$0xff]  ;;  %v4963_v59 = vld [vmem:[%s8080_s2 + $0x30] sm:$0xff] }
  0xc6   : >> { %v6341_v56 = vld [vmem:[%s6279_s15 + $0xc7] sm:$0xff]  ;;  %1459 = vmatpush.msra.mxu2 %v4963_v59  ;;  %v6364_v61 = vld [vmem:[%s6279_s15 + $0xd0] sm:$0xff] }
  0xc7   : >> { %v6344_v57 = vld [vmem:[%s6279_s15 + $0x48] sm:$0xff]  ;;  %v6370_v63 = vld [vmem:[%s6279_s15 + $0x50] sm:$0xff] }
  0xc8   : >> { %4804 = vmatmul.msk.f32.gmra.mxu2 %vm297_vm0, %v6296_v43  ;;  %4820 = vmatmul.msk.f32.gmra.mxu3 %vm297_vm0, %v6299_v44  ;;  %v6347_v58 = vld [vmem:[%s6279_s15 + $0x47] sm:$0xff]  ;;  %v6367_v62 = vld [vmem:[%s6279_s15 + $0xcf] sm:$0xff] }
  0xc9   : >> { %4796 = vmatmul.msk.f32.gmra.mxu0 %vm297_vm0, %v541_v45  ;;  %4812 = vmatmul.msk.f32.gmra.mxu1 %vm297_vm0, %v524_v46  ;;  %v6373_v0 = vld [vmem:[%s6279_s15 + $0x4f] sm:$0xff]  ;;  %v6394_v4 = vld [vmem:[%s6279_s15 + $0xe7] sm:$0xff] }
  0xca   : >> { %v6391_v3 = vld [vmem:[%s6279_s15 + $0xe8] sm:$0xff]  ;;  %v6411_v7 = vld [vmem:[%s6279_s15 + $0xf0] sm:$0xff] }
  0xcb   : >> { %v6397_v5 = vld [vmem:[%s6279_s15 + $0x68] sm:$0xff]  ;;  %8099 = vst [vmem:[#allocation8_spill] sm:$0xff] %v6411_v7  ;;  %v6417_v9 = vld [vmem:[%s6279_s15 + $0x70] sm:$0xff] }
  0xcc   : >> { %v6400_v6 = vld [vmem:[%s6279_s15 + $0x67] sm:$0xff]  ;;  %v6414_v8 = vld [vmem:[%s6279_s15 + $0xef] sm:$0xff] }
  0xcd   : >> { %v6420_v10 = vld [vmem:[%s6279_s15 + $0x6f] sm:$0xff]  ;;  %v5081_v1 = vld [vmem:[%s8081_s3 + $0x8] sm:$0xf] }
  0xce   : >> { %v784_v11 = vld [vmem:[%s6279_s15 + $0x9] sm:$0xff]  ;;  %v785_v13 = vld [vmem:[%s6279_s15 + $0x11] sm:$0xff] }
  0xcf   : >> { %v4912_v12 = vld [vmem:[%s6279_s15 + $0x29] sm:$0xff]  ;;  %v4913_v14 = vld [vmem:[%s6279_s15 + $0x31] sm:$0xff] }
  0xd0   : >> { %4805 = vmatmul.msk.f32.gmra.mxu2 %vm297_vm0, %v6310_v47  ;;  %4821 = vmatmul.msk.f32.gmra.mxu3 %vm297_vm0, %v6313_v48  ;;  %v6443_v15 = vld [vmem:[%s6279_s15 + $0x49] sm:$0xff]  ;;  %v6453_v16 = vld [vmem:[%s6279_s15 + $0x51] sm:$0xff] }
  0xd1   : >> { %4797 = vmatmul.msk.f32.gmra.mxu0 %vm297_vm0, %v542_v49  ;;  %4813 = vmatmul.msk.f32.gmra.mxu1 %vm297_vm0, %v525_v50  ;;  %v6463_v17 = vld [vmem:[%s6279_s15 + $0x69] sm:$0xff]  ;;  %v6474_v18 = vld [vmem:[%s6279_s15 + $0x71] sm:$0xff] }
  0xd2   : >> { %v6485_v19 = vld [vmem:[%s6279_s15 + $0x89] sm:$0xff]  ;;  %v6496_v20 = vld [vmem:[%s6279_s15 + $0x91] sm:$0xff] }
  0xd3   : >> { %v6511_v23 = vld [vmem:[%s6279_s15 + $0xa9] sm:$0xff]  ;;  %v6528_v29 = vld [vmem:[%s6279_s15 + $0xb1] sm:$0xff] }
  0xd4   : >> { %v6545_v35 = vld [vmem:[%s6279_s15 + $0xc9] sm:$0xff]  ;;  %v6562_v45 = vld [vmem:[%s6279_s15 + $0xd1] sm:$0xff] }
  0xd5   : >> { %v6579_v59 = vld [vmem:[%s6279_s15 + $0xe9] sm:$0xff] }
  0xd8   : >> { %4806 = vmatmul.msk.f32.gmra.mxu2 %vm297_vm0, %v6324_v51  ;;  %4822 = vmatmul.msk.f32.gmra.mxu3 %vm297_vm0, %v6327_v52 }
  0xd9   : >> { %4798 = vmatmul.msk.f32.gmra.mxu0 %vm297_vm0, %v543_v53  ;;  %4814 = vmatmul.msk.f32.gmra.mxu1 %vm297_vm0, %v526_v54 }
  0xe0   : >> { %4807 = vmatmul.msk.f32.gmra.mxu2 %vm297_vm0, %v6338_v55  ;;  %4823 = vmatmul.msk.f32.gmra.mxu3 %vm297_vm0, %v6341_v56 }
  0xe1   : >> { %4799 = vmatmul.msk.f32.gmra.mxu0 %vm297_vm0, %v6344_v57  ;;  %4815 = vmatmul.msk.f32.gmra.mxu1 %vm297_vm0, %v6347_v58 }
  0xe8   : >> { %4808 = vmatmul.msk.f32.gmra.mxu2 %vm297_vm0, %v6364_v61  ;;  %4824 = vmatmul.msk.f32.gmra.mxu3 %vm297_vm0, %v6367_v62 }
  0xe9   : >> { %4800 = vmatmul.msk.f32.gmra.mxu0 %vm297_vm0, %v6370_v63  ;;  %4816 = vmatmul.msk.f32.gmra.mxu1 %vm297_vm0, %v6373_v0 }
  0xf0   : >> { %4809 = vmatmul.msk.f32.gmra.mxu2 %vm297_vm0, %v6391_v3  ;;  %4825 = vmatmul.msk.f32.gmra.mxu3 %vm297_vm0, %v6394_v4 }
  0xf1   : >> { %4801 = vmatmul.msk.f32.gmra.mxu0 %vm297_vm0, %v6397_v5  ;;  %4817 = vmatmul.msk.f32.gmra.mxu1 %vm297_vm0, %v6400_v6 }
  0xf8   : >> { %4810 = vmatmul.msk.f32.gmra.mxu2 %vm297_vm0, %v6411_v7  ;;  %4826 = vmatmul.msk.f32.gmra.mxu3 %vm297_vm0, %v6414_v8 }
  0xf9   : >> { %4802 = vmatmul.msk.f32.gmra.mxu0 %vm297_vm0, %v6417_v9  ;;  %4818 = vmatmul.msk.f32.gmra.mxu1 %vm297_vm0, %v6420_v10 }
 0x100   : >> { %4828 = vmatmul.msk.f32.vlgmr.msrb.gmra.mxu2 %vm297_vm0, %v784_v11  ;;  %4863 = vmatmul.msk.f32.vlgmr.msrb.gmra.mxu3 %vm297_vm0, %v525_v50 }
 0x101   : >> { %4896 = vmatmul.msk.f32.vlgmr.msrb.gmra.mxu0 %vm297_vm0, %v542_v49  ;;  %4929 = vmatmul.msk.f32.vlgmr.msrb.gmra.mxu1 %vm297_vm0, %v4912_v12 }
 0x102   : >> { %5064 = vmatpush.msk.msrb.mxu2 %vm1885_vm3, %v5063_v60  ;;  %5082 = vmatpush.msk.msrb.mxu3 %vm1885_vm3, %v5081_v1  ;;  %v6632_v1 = vld [vmem:[%s6279_s15 + $0x108] sm:$0xff] }
 0x103   : >> { %8105 = vst [vmem:[#allocation14_spill] sm:$0xff] %v6632_v1 }
 0x108   : >> { %4829 = vmatmul.msk.f32.gmra.mxu2 %vm297_vm0, %v785_v13  ;;  %4864 = vmatmul.msk.f32.gmra.mxu3 %vm297_vm0, %v526_v54 }
 0x109   : >> { %4897 = vmatmul.msk.f32.gmra.mxu0 %vm297_vm0, %v543_v53  ;;  %4930 = vmatmul.msk.f32.gmra.mxu1 %vm297_vm0, %v4913_v14 }
 0x110   : >> { %4830 = vmatmul.msk.f32.gmra.mxu2 %vm297_vm0, %v4912_v12  ;;  %4865 = vmatmul.msk.f32.gmra.mxu3 %vm297_vm0, %v6347_v58 }
 0x111   : >> { %4898 = vmatmul.msk.f32.gmra.mxu0 %vm297_vm0, %v6344_v57  ;;  %4931 = vmatmul.msk.f32.gmra.mxu1 %vm297_vm0, %v6443_v15 }
 0x118   : >> { %4831 = vmatmul.msk.f32.gmra.mxu2 %vm297_vm0, %v4913_v14  ;;  %4866 = vmatmul.msk.f32.gmra.mxu3 %vm297_vm0, %v6373_v0 }
 0x119   : >> { %4899 = vmatmul.msk.f32.gmra.mxu0 %vm297_vm0, %v6370_v63  ;;  %4932 = vmatmul.msk.f32.gmra.mxu1 %vm297_vm0, %v6453_v16 }
 0x120   : >> { %4832 = vmatmul.msk.f32.gmra.mxu2 %vm297_vm0, %v6443_v15  ;;  %4867 = vmatmul.msk.f32.gmra.mxu3 %vm297_vm0, %v6400_v6 }
 0x121   : >> { %4900 = vmatmul.msk.f32.gmra.mxu0 %vm297_vm0, %v6397_v5  ;;  %4933 = vmatmul.msk.f32.gmra.mxu1 %vm297_vm0, %v6463_v17 }
 0x128   : >> { %4833 = vmatmul.msk.f32.gmra.mxu2 %vm297_vm0, %v6453_v16  ;;  %4868 = vmatmul.msk.f32.gmra.mxu3 %vm297_vm0, %v6420_v10 }
 0x129   : >> { %4901 = vmatmul.msk.f32.gmra.mxu0 %vm297_vm0, %v6417_v9  ;;  %4934 = vmatmul.msk.f32.gmra.mxu1 %vm297_vm0, %v6474_v18 }
 0x130   : >> { %4834 = vmatmul.msk.f32.gmra.mxu2 %vm297_vm0, %v6463_v17  ;;  %4869 = vmatmul.msk.f32.gmra.mxu3 %vm297_vm0, %v6285_v40 }
 0x131   : >> { %4902 = vmatmul.msk.f32.gmra.mxu0 %vm297_vm0, %v6282_v39  ;;  %4935 = vmatmul.msk.f32.gmra.mxu1 %vm297_vm0, %v6485_v19 }
 0x138   : >> { %4835 = vmatmul.msk.f32.gmra.mxu2 %vm297_vm0, %v6474_v18  ;;  %4870 = vmatmul.msk.f32.gmra.mxu3 %vm297_vm0, %v6299_v44 }
 0x139   : >> { %4903 = vmatmul.msk.f32.gmra.mxu0 %vm297_vm0, %v6296_v43  ;;  %4936 = vmatmul.msk.f32.gmra.mxu1 %vm297_vm0, %v6496_v20 }
 0x13e   : >> { %v6506_v21 = vpop.f32.mrf.mxu0  ;;  %v6508_v22 = vpop.f32.mrf.mxu1 }
 0x140   : >> { %4836 = vmatmul.msk.f32.gmra.mxu2 %vm297_vm0, %v6485_v19  ;;  %4871 = vmatmul.msk.f32.gmra.mxu3 %vm297_vm0, %v6313_v48 }
 0x141   : >> { %4904 = vmatmul.msk.f32.gmra.mxu0 %vm297_vm0, %v6310_v47  ;;  %4937 = vmatmul.msk.f32.gmra.mxu1 %vm297_vm0, %v6511_v23 }
 0x143   : >> { %v647_v24 = vpop.f32.mrf.mxu2  ;;  %v760_v25 = vpop.f32.mrf.mxu3 }
 0x144   : >> { %v6521_v26 = vadd.f32 %v760_v25, %v647_v24  ;;  %v6604_v24 = vld [vmem:[%s6279_s15 + $0xf1] sm:$0xff]  ;;  %v5117_v25 = vld [vmem:[%s8081_s3 + $0xc] sm:$0xf] }
 0x145   : >> { %8102 = vst [vmem:[#allocation11_spill] sm:$0xff] %v6604_v24  ;;  %5118 = vmatpush.msk.msrb.mxu0 %vm1885_vm3, %v5117_v25 }
 0x146   : >> { %v6523_v27 = vpop.f32.mrf.mxu0  ;;  %v6525_v28 = vpop.f32.mrf.mxu1 }
 0x148   : >> { %4837 = vmatmul.msk.f32.gmra.mxu2 %vm297_vm0, %v6496_v20  ;;  %4872 = vmatmul.msk.f32.gmra.mxu3 %vm297_vm0, %v6327_v52 }
 0x149   : >> { %4905 = vmatmul.msk.f32.gmra.mxu0 %vm297_vm0, %v6324_v51  ;;  %4938 = vmatmul.msk.f32.gmra.mxu1 %vm297_vm0, %v6528_v29 }
 0x14b   : >> { %v650_v30 = vpop.f32.mrf.mxu2  ;;  %v763_v31 = vpop.f32.mrf.mxu3 }
 0x14c   : >> { %v6538_v32 = vadd.f32 %v763_v31, %v650_v30 }
 0x14e   : >> { %v6540_v33 = vpop.f32.mrf.mxu0  ;;  %v6542_v34 = vpop.f32.mrf.mxu1 }
 0x150   : >> { %4838 = vmatmul.msk.f32.gmra.mxu2 %vm297_vm0, %v6511_v23  ;;  %4873 = vmatmul.msk.f32.gmra.mxu3 %vm297_vm0, %v6341_v56 }
 0x151   : >> { %4906 = vmatmul.msk.f32.gmra.mxu0 %vm297_vm0, %v6338_v55  ;;  %4939 = vmatmul.msk.f32.gmra.mxu1 %vm297_vm0, %v6545_v35 }
 0x153   : >> { %v653_v36 = vpop.f32.mrf.mxu2  ;;  %v766_v37 = vpop.f32.mrf.mxu3 }
 0x154   : >> { %v6555_v38 = vadd.f32 %v766_v37, %v653_v36  ;;  %v5151_v37 = vld [vmem:[%s8081_s3 + $0x10] sm:$0xf] }
 0x155   : >> { %5152 = vmatpush.msk.msrb.mxu1 %vm1885_vm3, %v5151_v37 }
 0x156   : >> { %v6557_v41 = vpop.f32.mrf.mxu0  ;;  %v6559_v42 = vpop.f32.mrf.mxu1 }
 0x158   : >> { %4839 = vmatmul.msk.f32.gmra.mxu2 %vm297_vm0, %v6528_v29  ;;  %4874 = vmatmul.msk.f32.gmra.mxu3 %vm297_vm0, %v6367_v62 }
 0x159   : >> { %4907 = vmatmul.msk.f32.gmra.mxu0 %vm297_vm0, %v6364_v61  ;;  %4940 = vmatmul.msk.f32.gmra.mxu1 %vm297_vm0, %v6562_v45 }
 0x15b   : >> { %v656_v46 = vpop.f32.mrf.mxu2  ;;  %v769_v49 = vpop.f32.mrf.mxu3 }
 0x15c   : >> { %v6572_v50 = vadd.f32 %v769_v49, %v656_v46  ;;  %v6624_v46 = vld [vmem:[%s6279_s15 + $0x107] sm:$0xff] }
 0x15d   : >> { %8104 = vst [vmem:[#allocation13_spill] sm:$0xff] %v6624_v46 }
 0x15e   : >> { %8100 = vst [vmem:[#allocation9_spill] sm:$0xff] %v6572_v50  ;;  %v6574_v53 = vpop.f32.mrf.mxu0  ;;  %v6576_v54 = vpop.f32.mrf.mxu1  ;;  %v1820_v50 = vld [vmem:[%s6671_s16 + $0x7] sm:$0xff] }
 0x160   : >> { %4840 = vmatmul.msk.f32.gmra.mxu2 %vm297_vm0, %v6545_v35  ;;  %4875 = vmatmul.msk.f32.gmra.mxu3 %vm297_vm0, %v6394_v4 }
 0x161   : >> { %4908 = vmatmul.msk.f32.gmra.mxu0 %vm297_vm0, %v6391_v3  ;;  %4941 = vmatmul.msk.f32.gmra.mxu1 %vm297_vm0, %v6579_v59 }
 0x163   : >> { %v659_v2 = vpop.f32.mrf.mxu2  ;;  %v772_v11 = vpop.f32.mrf.mxu3 }
 0x164   : >> { %v6597_v12 = vadd.f32 %v772_v11, %v659_v2  ;;  %v6635_v2 = vld [vmem:[%s6279_s15 + $0x109] sm:$0xff] }
 0x165   : >> { %8106 = vst [vmem:[#allocation15_spill] sm:$0xff] %v6635_v2 }
 0x166   : >> { %8101 = vst [vmem:[#allocation10_spill] sm:$0xff] %v6597_v12  ;;  %v6599_v13 = vpop.f32.mrf.mxu0  ;;  %v6601_v14 = vpop.f32.mrf.mxu1  ;;  %v6655_v12 = vld [vmem:[%s6279_s15 + $0x110] sm:$0xff] }
 0x167   : >> { %8109 = vst [vmem:[#allocation18_spill] sm:$0xff] %v6655_v12 }
 0x168   : >> { %4841 = vmatmul.msk.f32.gmra.mxu2 %vm297_vm0, %v6562_v45  ;;  %4876 = vmatmul.msk.f32.gmra.mxu3 %vm297_vm0, %v6414_v8 }
 0x169   : >> { %4909 = vmatmul.msk.f32.gmra.mxu0 %vm297_vm0, %v6411_v7  ;;  %4942 = vmatmul.msk.f32.gmra.mxu1 %vm297_vm0, %v6604_v24  ;;  %v1821_v7 = vld [vmem:[%s6671_s16 + $0xf] sm:$0xff] }
 0x16b   : >> { %v662_v30 = vpop.f32.mrf.mxu2  ;;  %v775_v31 = vpop.f32.mrf.mxu3 }
 0x16c   : >> { %v6618_v36 = vadd.f32 %v775_v31, %v662_v30  ;;  %v6648_v31 = vld [vmem:[%s6279_s15 + $0x10f] sm:$0xff] }
 0x16d   : >> { %8108 = vst [vmem:[#allocation17_spill] sm:$0xff] %v6648_v31 }
 0x16e   : >> { %8103 = vst [vmem:[#allocation12_spill] sm:$0xff] %v6618_v36  ;;  %v6627_v49 = vpop.f32.mrf.mxu0  ;;  %v6629_v60 = vpop.f32.mrf.mxu1 }
 0x170   : >> { %4842 = vmatmul.msk.f32.gmra.mxu2 %vm297_vm0, %v6579_v59  ;;  %4877 = vmatmul.msk.f32.gmra.mxu3 %vm297_vm0, %v6624_v46  ;;  %v6658_v46 = vld [vmem:[%s6279_s15 + $0x111] sm:$0xff] }
 0x171   : >> { %4910 = vmatmul.msk.f32.gmra.mxu0 %vm297_vm0, %v6632_v1  ;;  %4943 = vmatmul.msk.f32.gmra.mxu1 %vm297_vm0, %v6635_v2  ;;  %8110 = vst [vmem:[#allocation19_spill] sm:$0xff] %v6658_v46 }
 0x173   : >> { %v665_v11 = vpop.f32.mrf.mxu2  ;;  %v778_v25 = vpop.f32.mrf.mxu3 }
 0x174   : >> { %v6645_v30 = vadd.f32 %v778_v25, %v665_v11 }
 0x176   : >> { %8107 = vst [vmem:[#allocation16_spill] sm:$0xff] %v6645_v30  ;;  %v6650_v37 = vpop.f32.mrf.mxu0  ;;  %v6652_v36 = vpop.f32.mrf.mxu1 }
 0x178   : >> { %4843 = vmatmul.msk.f32.gmra.mxu2 %vm297_vm0, %v6604_v24  ;;  %4878 = vmatmul.msk.f32.gmra.mxu3 %vm297_vm0, %v6648_v31 }
 0x179   : >> { %4911 = vmatmul.msk.f32.gmra.mxu0 %vm297_vm0, %v6655_v12  ;;  %4944 = vmatmul.msk.f32.gmra.mxu1 %vm297_vm0, %v6658_v46 }
 0x17b   : >> { %v668_v11 = vpop.f32.mrf.mxu2  ;;  %v781_v25 = vpop.f32.mrf.mxu3 }
 0x17c   : >> { %v6668_v30 = vadd.f32 %v781_v25, %v668_v11  ;;  %v737_v11 = vadd.f32 %v6508_v22, %v6506_v21 }
 0x17e   : >> { %8111 = vst [vmem:[#allocation20_spill] sm:$0xff] %v6668_v30  ;;  %v1164_v2 = vpop.f32.mrf.mxu0  ;;  %v1311_v1 = vpop.f32.mrf.mxu1 }
 0x180   : >> { %4964 = vmatmul.msk.f32.vlgmr.msra.gmra.mxu2 %vm297_vm0, %v6347_v58  ;;  %4997 = vmatmul.msk.f32.vlgmr.msra.gmra.mxu3 %vm297_vm0, %v6344_v57  ;;  %v740_v57 = vadd.f32 %v6525_v28, %v6523_v27 }
 0x181   : >> { %5030 = vmatmul.msk.f32.vlgmr.msra.gmra.mxu0 %vm297_vm0, %v6443_v15  ;;  %5047 = vmatmul.msk.f32.vlgmr.msra.gmra.mxu1 %vm343_vm1, %v1820_v50 }
 0x183   : >> { %v867_v25 = vpop.f32.mrf.mxu2  ;;  %v1017_v30 = vpop.f32.mrf.mxu3 }
 0x184   : >> { %v915_v46 = vadd.f32 %v867_v25, %v737_v11  ;;  %v6711_v11 = vld [vmem:[%s6671_s16 + $0x2f] sm:$0xff] }
 0x186   : >> { %v1065_v12 = vadd.f32 %v1017_v30, %v915_v46  ;;  %v1167_v31 = vpop.f32.mrf.mxu0  ;;  %v1314_v24 = vpop.f32.mrf.mxu1 }
 0x188   : >> { %v1212_v58 = vadd.f32 %v1164_v2, %v1065_v12  ;;  %4965 = vmatmul.msk.f32.gmra.mxu2 %vm297_vm0, %v6373_v0  ;;  %4998 = vmatmul.msk.f32.gmra.mxu3 %vm297_vm0, %v6370_v63  ;;  %v6696_v2 = vld [vmem:[%s6671_s16 + $0x27] sm:$0xff] }
 0x189   : >> { %5031 = vmatmul.msk.f32.gmra.mxu0 %vm297_vm0, %v6453_v16  ;;  %5048 = vmatmul.msk.f32.gmra.mxu1 %vm343_vm1, %v1821_v7  ;;  %v743_v7 = vadd.f32 %v6542_v34, %v6540_v33 }
 0x18a   : >> { %v6693_v15 = vadd.f32 %v1311_v1, %v1212_v58 }
 0x18b   : >> { %v870_v21 = vpop.f32.mrf.mxu2  ;;  %v1020_v22 = vpop.f32.mrf.mxu3 }
 0x18c   : >> { %v916_v50 = vadd.f32 %v870_v21, %v740_v57  ;;  %v6726_v21 = vld [vmem:[%s6671_s16 + $0x47] sm:$0xff] }
 0x18e   : >> { %v1066_v12 = vadd.f32 %v1020_v22, %v916_v50  ;;  %v1170_v46 = vpop.f32.mrf.mxu0  ;;  %v1317_v0 = vpop.f32.mrf.mxu1 }
 0x190   : >> { %v1213_v63 = vadd.f32 %v1167_v31, %v1066_v12  ;;  %4966 = vmatmul.msk.f32.gmra.mxu2 %vm297_vm0, %v6400_v6  ;;  %4999 = vmatmul.msk.f32.gmra.mxu3 %vm297_vm0, %v6397_v5 }
 0x191   : >> { %5032 = vmatmul.msk.f32.gmra.mxu0 %vm297_vm0, %v6463_v17  ;;  %5049 = vmatmul.msk.f32.gmra.mxu1 %vm343_vm1, %v6696_v2  ;;  %v746_v17 = vadd.f32 %v6559_v42, %v6557_v41 }
 0x192   : >> { %v6708_v16 = vadd.f32 %v1314_v24, %v1213_v63 }
 0x193   : >> { %v873_v27 = vpop.f32.mrf.mxu2  ;;  %v1023_v28 = vpop.f32.mrf.mxu3 }
 0x194   : >> { %v917_v1 = vadd.f32 %v873_v27, %v743_v7 }
 0x196   : >> { %v1067_v30 = vadd.f32 %v1023_v28, %v917_v1  ;;  %v1173_v31 = vpop.f32.mrf.mxu0  ;;  %v1320_v6 = vpop.f32.mrf.mxu1  ;;  %v6756_v1 = vld [vmem:[%s6671_s16 + $0x67] sm:$0xff] }
 0x198   : >> { %v1214_v5 = vadd.f32 %v1170_v46, %v1067_v30  ;;  %4967 = vmatmul.msk.f32.gmra.mxu2 %vm297_vm0, %v6420_v10  ;;  %5000 = vmatmul.msk.f32.gmra.mxu3 %vm297_vm0, %v6417_v9 }
 0x199   : >> { %5033 = vmatmul.msk.f32.gmra.mxu0 %vm297_vm0, %v6474_v18  ;;  %5050 = vmatmul.msk.f32.gmra.mxu1 %vm343_vm1, %v6711_v11  ;;  %v749_v18 = vadd.f32 %v6576_v54, %v6574_v53 }
 0x19a   : >> { %v6723_v33 = vadd.f32 %v1317_v0, %v1214_v5  ;;  %v6741_v0 = vld [vmem:[%s6671_s16 + $0x4f] sm:$0xff] }
 0x19b   : >> { %v876_v34 = vpop.f32.mrf.mxu2  ;;  %v1026_v24 = vpop.f32.mrf.mxu3 }
 0x19c   : >> { %v918_v25 = vadd.f32 %v876_v34, %v746_v17  ;;  %v6771_v17 = vld [vmem:[%s6671_s16 + $0x6f] sm:$0xff] }
 0x19e   : >> { %v1068_v58 = vadd.f32 %v1026_v24, %v918_v25  ;;  %v1176_v57 = vpop.f32.mrf.mxu0  ;;  %v1323_v10 = vpop.f32.mrf.mxu1 }
 0x1a0   : >> { %v1215_v9 = vadd.f32 %v1173_v31, %v1068_v58  ;;  %4968 = vmatmul.msk.f32.gmra.mxu2 %vm297_vm0, %v6285_v40  ;;  %5001 = vmatmul.msk.f32.gmra.mxu3 %vm297_vm0, %v6282_v39 }
 0x1a1   : >> { %5034 = vmatmul.msk.f32.gmra.mxu0 %vm297_vm0, %v6485_v19  ;;  %5051 = vmatmul.msk.f32.gmra.mxu1 %vm343_vm1, %v6726_v21  ;;  %v752_v19 = vadd.f32 %v6601_v14, %v6599_v13 }
 0x1a2   : >> { %v6738_v41 = vadd.f32 %v1320_v6, %v1215_v9 }
 0x1a3   : >> { %v879_v42 = vpop.f32.mrf.mxu2  ;;  %v1029_v22 = vpop.f32.mrf.mxu3 }
 0x1a4   : >> { %v919_v50 = vadd.f32 %v879_v42, %v749_v18 }
 0x1a6   : >> { %v1069_v12 = vadd.f32 %v1029_v22, %v919_v50  ;;  %v1179_v46 = vpop.f32.mrf.mxu0  ;;  %v1326_v40 = vpop.f32.mrf.mxu1 }
 0x1a8   : >> { %v1216_v39 = vadd.f32 %v1176_v57, %v1069_v12  ;;  %4969 = vmatmul.msk.f32.gmra.mxu2 %vm297_vm0, %v6299_v44  ;;  %5002 = vmatmul.msk.f32.gmra.mxu3 %vm297_vm0, %v6296_v43  ;;  %v6786_v57 = vld [vmem:[%s6671_s16 + $0x87] sm:$0xff] }
 0x1a9   : >> { %5035 = vmatmul.msk.f32.gmra.mxu0 %vm297_vm0, %v6496_v20  ;;  %5052 = vmatmul.msk.f32.gmra.mxu1 %vm343_vm1, %v6741_v0  ;;  %v755_v20 = vadd.f32 %v6629_v60, %v6627_v49 }
 0x1aa   : >> { %v6753_v53 = vadd.f32 %v1323_v10, %v1216_v39 }
 0x1ab   : >> { %v882_v54 = vpop.f32.mrf.mxu2  ;;  %v1032_v63 = vpop.f32.mrf.mxu3 }
 0x1ac   : >> { %v920_v7 = vadd.f32 %v882_v54, %v752_v19 }
 0x1ae   : >> { %v1070_v27 = vadd.f32 %v1032_v63, %v920_v7  ;;  %v1182_v28 = vpop.f32.mrf.mxu0  ;;  %v1329_v44 = vpop.f32.mrf.mxu1 }
 0x1b0   : >> { %v1217_v43 = vadd.f32 %v1179_v46, %v1070_v27  ;;  %4970 = vmatmul.msk.f32.gmra.mxu2 %vm297_vm0, %v6313_v48  ;;  %5003 = vmatmul.msk.f32.gmra.mxu3 %vm297_vm0, %v6310_v47 }
 0x1b1   : >> { %5036 = vmatmul.msk.f32.gmra.mxu0 %vm297_vm0, %v6511_v23  ;;  %5053 = vmatmul.msk.f32.gmra.mxu1 %vm343_vm1, %v6756_v1  ;;  %v758_v23 = vadd.f32 %v6652_v36, %v6650_v37 }
 0x1b2   : >> { %v6768_v13 = vadd.f32 %v1326_v40, %v1217_v43  ;;  %v8114_v43 = vld [vmem:[#allocation9_spill] sm:$0xff] }
 0x1b3   : >> { %v885_v14 = vpop.f32.mrf.mxu2  ;;  %v1035_v30 = vpop.f32.mrf.mxu3 }
 0x1b4   : >> { %v921_v31 = vadd.f32 %v885_v14, %v755_v20 }
 0x1b6   : >> { %v1071_v6 = vadd.f32 %v1035_v30, %v921_v31  ;;  %v1185_v5 = vpop.f32.mrf.mxu0  ;;  %v1332_v48 = vpop.f32.mrf.mxu1 }
 0x1b8   : >> { %v1218_v47 = vadd.f32 %v1182_v28, %v1071_v6  ;;  %4971 = vmatmul.msk.f32.gmra.mxu2 %vm297_vm0, %v6327_v52  ;;  %5004 = vmatmul.msk.f32.gmra.mxu3 %vm297_vm0, %v6324_v51  ;;  %v6842_v6 = vld [vmem:[%s6671_s16 + $0xc7] sm:$0xff] }
 0x1b9   : >> { %5037 = vmatmul.msk.f32.gmra.mxu0 %vm297_vm0, %v6528_v29  ;;  %5054 = vmatmul.msk.f32.gmra.mxu1 %vm343_vm1, %v6771_v17 }
 0x1ba   : >> { %v6783_v49 = vadd.f32 %v1329_v44, %v1218_v47  ;;  %v5185_v47 = vld [vmem:[%s8081_s3 + $0x14] sm:$0xf] }
 0x1bb   : >> { %v888_v60 = vpop.f32.mrf.mxu2  ;;  %v1038_v34 = vpop.f32.mrf.mxu3  ;;  %5186 = vmatpush.msk.msra.mxu2 %vm1885_vm3, %v5185_v47  ;;  %v6903_v47 = vld [vmem:[%s6671_s16 + $0xef] sm:$0xff] }
 0x1bc   : >> { %v922_v24 = vadd.f32 %v888_v60, %v758_v23  ;;  %v8117_v23 = vld [vmem:[#allocation15_spill] sm:$0xff] }
 0x1be   : >> { %v1072_v25 = vadd.f32 %v1038_v34, %v922_v24  ;;  %v1188_v52 = vpop.f32.mrf.mxu0  ;;  %v1335_v58 = vpop.f32.mrf.mxu1  ;;  %v5221_v34 = vld [vmem:[%s8081_s3 + $0x18] sm:$0xf] }
 0x1bf   : >> { %5222 = vmatpush.msk.msra.mxu3 %vm1885_vm3, %v5221_v34 }
 0x1c0   : >> { %v1219_v51 = vadd.f32 %v1185_v5, %v1072_v25  ;;  %4972 = vmatmul.msk.f32.gmra.mxu2 %vm297_vm0, %v6341_v56  ;;  %5005 = vmatmul.msk.f32.gmra.mxu3 %vm297_vm0, %v6338_v55  ;;  %v6800_v56 = vld [vmem:[%s6671_s16 + $0x8f] sm:$0xff] }
 0x1c1   : >> { %5038 = vmatmul.msk.f32.gmra.mxu0 %vm297_vm0, %v6545_v35  ;;  %5055 = vmatmul.msk.f32.gmra.mxu1 %vm343_vm1, %v6786_v57  ;;  %v8115_v5 = vld [vmem:[#allocation13_spill] sm:$0xff] }
 0x1c2   : >> { %v6796_v29 = vadd.f32 %v1332_v48, %v1219_v51  ;;  %v8116_v48 = vld [vmem:[#allocation14_spill] sm:$0xff] }
 0x1c3   : >> { %v891_v36 = vpop.f32.mrf.mxu2  ;;  %v1041_v37 = vpop.f32.mrf.mxu3 }
 0x1c4   : >> { %v923_v10 = vadd.f32 %v891_v36, %v6521_v26 }
 0x1c6   : >> { %v1073_v9 = vadd.f32 %v1041_v37, %v923_v10  ;;  %v1191_v18 = vpop.f32.mrf.mxu0  ;;  %v1338_v42 = vpop.f32.mrf.mxu1  ;;  %v6864_v10 = vld [vmem:[%s6671_s16 + $0xcf] sm:$0xff] }
 0x1c8   : >> { %v1220_v22 = vadd.f32 %v1188_v52, %v1073_v9  ;;  %4973 = vmatmul.msk.f32.gmra.mxu2 %vm297_vm0, %v6367_v62  ;;  %5006 = vmatmul.msk.f32.gmra.mxu3 %vm297_vm0, %v6364_v61  ;;  %v6814_v62 = vld [vmem:[%s6671_s16 + $0xa7] sm:$0xff]  ;;  %v8118_v52 = vld [vmem:[#allocation10_spill] sm:$0xff] }
 0x1c9   : >> { %5039 = vmatmul.msk.f32.gmra.mxu0 %vm297_vm0, %v6562_v45  ;;  %5056 = vmatmul.msk.f32.gmra.mxu1 %vm343_vm1, %v6800_v56 }
 0x1ca   : >> { %v6810_v55 = vadd.f32 %v1335_v58, %v1220_v22  ;;  %v8121_v22 = vld [vmem:[#allocation19_spill] sm:$0xff] }
 0x1cb   : >> { %v894_v26 = vpop.f32.mrf.mxu2  ;;  %v1044_v35 = vpop.f32.mrf.mxu3 }
 0x1cc   : >> { %v924_v50 = vadd.f32 %v894_v26, %v6538_v32 }
 0x1ce   : >> { %v1074_v12 = vadd.f32 %v1044_v35, %v924_v50  ;;  %v1194_v46 = vpop.f32.mrf.mxu0  ;;  %v1341_v40 = vpop.f32.mrf.mxu1  ;;  %v5255_v35 = vld [vmem:[%s8081_s3 + $0x1c] sm:$0xf] }
 0x1cf   : >> { %5256 = vmatpush.msk.msra.mxu0 %vm1885_vm3, %v5255_v35 }
 0x1d0   : >> { %v1221_v39 = vadd.f32 %v1191_v18, %v1074_v12  ;;  %4974 = vmatmul.msk.f32.gmra.mxu2 %vm297_vm0, %v6394_v4  ;;  %5007 = vmatmul.msk.f32.gmra.mxu3 %vm297_vm0, %v6391_v3  ;;  %v6828_v4 = vld [vmem:[%s6671_s16 + $0xaf] sm:$0xff]  ;;  %v8112_v3 = vld [vmem:[#allocation8_spill] sm:$0xff] }
 0x1d1   : >> { %5040 = vmatmul.msk.f32.gmra.mxu0 %vm297_vm0, %v6579_v59  ;;  %5057 = vmatmul.msk.f32.gmra.mxu1 %vm343_vm1, %v6814_v62  ;;  %v8113_v59 = vld [vmem:[#allocation11_spill] sm:$0xff]  ;;  %v8119_v18 = vld [vmem:[#allocation17_spill] sm:$0xff]  ;;  %8124 = vst [vmem:[#allocation8_spill] sm:$0xff] %v6903_v47 }
 0x1d2   : >> { %v6824_v61 = vadd.f32 %v1338_v42, %v1221_v39  ;;  %v8120_v42 = vld [vmem:[#allocation18_spill] sm:$0xff]  ;;  %v5289_v39 = vld [vmem:[%s8081_s3 + $0x20] sm:$0xf] }
 0x1d3   : >> { %v897_v32 = vpop.f32.mrf.mxu2  ;;  %v1047_v45 = vpop.f32.mrf.mxu3  ;;  %5290 = vmatpush.msk.msra.mxu1 %vm1885_vm3, %v5289_v39  ;;  %v2121_v39 = vld [vmem:[%s6671_s16 + $0x11] sm:$0xff] }
 0x1d4   : >> { %v925_v19 = vadd.f32 %v897_v32, %v6555_v38  ;;  %v4961_v32 = vld [vmem:[%s6279_s15 + $0x127] sm:$0xff] }
 0x1d6   : >> { %v1075_v54 = vadd.f32 %v1047_v45, %v925_v19  ;;  %v1197_v63 = vpop.f32.mrf.mxu0  ;;  %v1344_v7 = vpop.f32.mrf.mxu1  ;;  %v4994_v45 = vld [vmem:[%s6279_s15 + $0x128] sm:$0xff] }
 0x1d8   : >> { %v1222_v27 = vadd.f32 %v1194_v46, %v1075_v54  ;;  %4975 = vmatmul.msk.f32.gmra.mxu2 %vm297_vm0, %v6414_v8  ;;  %5008 = vmatmul.msk.f32.gmra.mxu3 %vm297_vm0, %v8112_v3  ;;  %v8122_v46 = vld [vmem:[#allocation12_spill] sm:$0xff] }
 0x1d9   : >> { %5041 = vmatmul.msk.f32.gmra.mxu0 %vm297_vm0, %v8113_v59  ;;  %5058 = vmatmul.msk.f32.gmra.mxu1 %vm343_vm1, %v6828_v4 }
 0x1da   : >> { %v6838_v38 = vadd.f32 %v1341_v40, %v1222_v27  ;;  %v6889_v27 = vld [vmem:[%s6671_s16 + $0xe7] sm:$0xff] }
 0x1db   : >> { %v900_v28 = vpop.f32.mrf.mxu2  ;;  %v1050_v44 = vpop.f32.mrf.mxu3 }
 0x1dc   : >> { %v926_v20 = vadd.f32 %v900_v28, %v8114_v43  ;;  %v8123_v43 = vld [vmem:[#allocation16_spill] sm:$0xff] }
 0x1de   : >> { %v1076_v14 = vadd.f32 %v1050_v44, %v926_v20  ;;  %v1200_v30 = vpop.f32.mrf.mxu0  ;;  %v1347_v31 = vpop.f32.mrf.mxu1 }
 0x1e0   : >> { %v1223_v8 = vadd.f32 %v1197_v63, %v1076_v14  ;;  %4976 = vmatmul.msk.f32.gmra.mxu2 %vm297_vm0, %v8115_v5  ;;  %5009 = vmatmul.msk.f32.gmra.mxu3 %vm297_vm0, %v8116_v48  ;;  %v4962_v14 = vld [vmem:[%s6279_s15 + $0x12f] sm:$0xff] }
 0x1e1   : >> { %5042 = vmatmul.msk.f32.gmra.mxu0 %vm297_vm0, %v8117_v23  ;;  %5059 = vmatmul.msk.f32.gmra.mxu1 %vm343_vm1, %v6842_v6  ;;  %v5028_v48 = vld [vmem:[%s6279_s15 + $0x131] sm:$0xff] }
 0x1e2   : >> { %v6855_v60 = vadd.f32 %v1344_v7, %v1223_v8  ;;  %v5027_v7 = vld [vmem:[%s6279_s15 + $0x129] sm:$0xff] }
 0x1e3   : >> { %v903_v24 = vpop.f32.mrf.mxu2  ;;  %v1053_v25 = vpop.f32.mrf.mxu3 }
 0x1e4   : >> { %v927_v58 = vadd.f32 %v903_v24, %v8118_v52  ;;  %v8125_v52 = vld [vmem:[#allocation20_spill] sm:$0xff] }
 0x1e6   : >> { %v1077_v51 = vadd.f32 %v1053_v25, %v927_v58  ;;  %v1203_v36 = vpop.f32.mrf.mxu0  ;;  %v1350_v37 = vpop.f32.mrf.mxu1 }
 0x1e8   : >> { %v1224_v9 = vadd.f32 %v1200_v30, %v1077_v51  ;;  %4977 = vmatmul.msk.f32.gmra.mxu2 %vm297_vm0, %v8119_v18  ;;  %5010 = vmatmul.msk.f32.gmra.mxu3 %vm297_vm0, %v8120_v42  ;;  %v4995_v30 = vld [vmem:[%s6279_s15 + $0x130] sm:$0xff]  ;;  %v1970_v51 = vld [vmem:[%s6671_s16 + $0x8] sm:$0xff] }
 0x1e9   : >> { %5043 = vmatmul.msk.f32.gmra.mxu0 %vm297_vm0, %v8121_v22  ;;  %5060 = vmatmul.msk.f32.gmra.mxu1 %vm343_vm1, %v6864_v10  ;;  %v5135_v42 = vld [vmem:[%s6671_s16 + $0x28] sm:$0xff] }
 0x1ea   : >> { %v6874_v26 = vadd.f32 %v1347_v31, %v1224_v9 }
 0x1eb   : >> { %v906_v50 = vpop.f32.mrf.mxu2  ;;  %v1056_v12 = vpop.f32.mrf.mxu3 }
 0x1ec   : >> { %v928_v40 = vadd.f32 %v906_v50, %v8122_v46 }
 0x1ee   : >> { %v1078_v19 = vadd.f32 %v1056_v12, %v928_v40  ;;  %v1206_v54 = vpop.f32.mrf.mxu0  ;;  %v1353_v63 = vpop.f32.mrf.mxu1  ;;  %v1971_v40 = vld [vmem:[%s6671_s16 + $0x10] sm:$0xff] }
 0x1f0   : >> { %v1225_v3 = vadd.f32 %v1203_v36, %v1078_v19  ;;  %4978 = vmatmul.msk.f32.gmra.mxu2 %vm297_vm0, %v4961_v32  ;;  %5011 = vmatmul.msk.f32.gmra.mxu3 %vm297_vm0, %v4994_v45  ;;  %v2120_v36 = vld [vmem:[%s6671_s16 + $0x9] sm:$0xff] }
 0x1f1   : >> { %5044 = vmatmul.msk.f32.gmra.mxu0 %vm297_vm0, %v5027_v7  ;;  %5061 = vmatmul.msk.f32.gmra.mxu1 %vm343_vm1, %v6889_v27 }
 0x1f2   : >> { %v6896_v59 = vadd.f32 %v1350_v37, %v1225_v3 }
 0x1f3   : >> { %v909_v28 = vpop.f32.mrf.mxu2  ;;  %v1059_v44 = vpop.f32.mrf.mxu3 }
 0x1f4   : >> { %v929_v20 = vadd.f32 %v909_v28, %v8123_v43  ;;  %v6936_v28 = vld [vmem:[%s6671_s16 + $0x29] sm:$0xff] }
 0x1f6   : >> { %v1079_v31 = vadd.f32 %v1059_v44, %v929_v20  ;;  %v1209_v8 = vpop.f32.mrf.mxu0  ;;  %v1356_v5 = vpop.f32.mrf.mxu1 }
 0x1f8   : >> { %v1226_v23 = vadd.f32 %v1206_v54, %v1079_v31  ;;  %4979 = vmatmul.msk.f32.gmra.mxu2 %vm297_vm0, %v4962_v14  ;;  %5012 = vmatmul.msk.f32.gmra.mxu3 %vm297_vm0, %v4995_v30  ;;  %v5136_v54 = vld [vmem:[%s6671_s16 + $0x30] sm:$0xff]  ;;  %v6939_v14 = vld [vmem:[%s6671_s16 + $0x48] sm:$0xff] }
 0x1f9   : >> { %5045 = vmatmul.msk.f32.gmra.mxu0 %vm297_vm0, %v5028_v48  ;;  %5062 = vmatmul.msk.f32.gmra.mxu1 %vm343_vm1, %v6903_v47 }
 0x1fa   : >> { %v6910_v34 = vadd.f32 %v1353_v63, %v1226_v23 }
 0x1fb   : >> { %v912_v24 = vpop.f32.mrf.mxu2  ;;  %v1062_v25 = vpop.f32.mrf.mxu3 }
 0x1fc   : >> { %v930_v58 = vadd.f32 %v912_v24, %v8125_v52 }
 0x1fe   : >> { %v1080_v37 = vadd.f32 %v1062_v25, %v930_v58  ;;  %v1755_v9 = vpop.f32.mrf.mxu0  ;;  %v1906_v18 = vpop.f32.mrf.mxu1  ;;  %v6955_v25 = vld [vmem:[%s6671_s16 + $0x50] sm:$0xff] }
 0x200   : >> { %v1227_v22 = vadd.f32 %v1209_v8, %v1080_v37  ;;  %5065 = vmatmul.msk.f32.vlgmr.msrb.gmra.mxu2 %vm343_vm1, %v1970_v51  ;;  %5083 = vmatmul.msk.f32.vlgmr.msrb.gmra.mxu3 %vm343_vm1, %v2120_v36  ;;  %v6968_v37 = vld [vmem:[%s6671_s16 + $0x49] sm:$0xff] }
 0x201   : >> { %5119 = vmatmul.msk.f32.vlgmr.msrb.gmra.mxu0 %vm343_vm1, %v6696_v2  ;;  %5153 = vmatmul.msk.f32.vlgmr.msrb.gmra.mxu1 %vm343_vm1, %v5135_v42 }
 0x202   : >> { %v6921_v35 = vadd.f32 %v1356_v5, %v1227_v22  ;;  %v6952_v5 = vld [vmem:[%s6671_s16 + $0x31] sm:$0xff]  ;;  %v6971_v22 = vld [vmem:[%s6671_s16 + $0x68] sm:$0xff] }
 0x203   : >> { %v1461_v50 = vpop.f32.mrf.mxu2  ;;  %v1608_v12 = vpop.f32.mrf.mxu3 }
 0x204   : >> { %v1509_v46 = vadd.f32 %v1461_v50, %v6693_v15 }
 0x206   : >> { %v1656_v32 = vadd.f32 %v1608_v12, %v1509_v46  ;;  %v1758_v45 = vpop.f32.mrf.mxu0  ;;  %v1909_v19 = vpop.f32.mrf.mxu1 }
 0x208   : >> { %v1803_v63 = vadd.f32 %v1755_v9, %v1656_v32  ;;  %5066 = vmatmul.msk.f32.gmra.mxu2 %vm343_vm1, %v1971_v40  ;;  %5084 = vmatmul.msk.f32.gmra.mxu3 %vm343_vm1, %v2121_v39  ;;  %v6985_v39 = vld [vmem:[%s6671_s16 + $0x51] sm:$0xff] }
 0x209   : >> { %5120 = vmatmul.msk.f32.gmra.mxu0 %vm343_vm1, %v6711_v11  ;;  %5154 = vmatmul.msk.f32.gmra.mxu1 %vm343_vm1, %v5136_v54 }
 0x20a   : >> { %v6932_v2 = vadd.f32 %v1906_v18, %v1803_v63 }
 0x20b   : >> { %v1464_v15 = vpop.f32.mrf.mxu2  ;;  %v1611_v7 = vpop.f32.mrf.mxu3 }
 0x20c   : >> { %v1510_v3 = vadd.f32 %v1464_v15, %v6708_v16 }
 0x20e   : >> { %v1657_v44 = vadd.f32 %v1611_v7, %v1510_v3  ;;  %v1761_v43 = vpop.f32.mrf.mxu0  ;;  %v1912_v20 = vpop.f32.mrf.mxu1 }
 0x210   : >> { %v1804_v30 = vadd.f32 %v1758_v45, %v1657_v44  ;;  %5067 = vmatmul.msk.f32.gmra.mxu2 %vm343_vm1, %v5135_v42  ;;  %5085 = vmatmul.msk.f32.gmra.mxu3 %vm343_vm1, %v6936_v28  ;;  %v7002_v44 = vld [vmem:[%s6671_s16 + $0x69] sm:$0xff] }
 0x211   : >> { %5121 = vmatmul.msk.f32.gmra.mxu0 %vm343_vm1, %v6726_v21  ;;  %5155 = vmatmul.msk.f32.gmra.mxu1 %vm343_vm1, %v6939_v14 }
 0x212   : >> { %v6948_v16 = vadd.f32 %v1909_v19, %v1804_v30 }
 0x213   : >> { %v1467_v11 = vpop.f32.mrf.mxu2  ;;  %v1614_v31 = vpop.f32.mrf.mxu3 }
 0x214   : >> { %v1511_v8 = vadd.f32 %v1467_v11, %v6723_v33  ;;  %v7005_v11 = vld [vmem:[%s6671_s16 + $0x88] sm:$0xff] }
 0x216   : >> { %v1658_v48 = vadd.f32 %v1614_v31, %v1511_v8  ;;  %v1764_v23 = vpop.f32.mrf.mxu0  ;;  %v1915_v24 = vpop.f32.mrf.mxu1 }
 0x218   : >> { %v1805_v52 = vadd.f32 %v1761_v43, %v1658_v48  ;;  %5068 = vmatmul.msk.f32.gmra.mxu2 %vm343_vm1, %v5136_v54  ;;  %5086 = vmatmul.msk.f32.gmra.mxu3 %vm343_vm1, %v6952_v5  ;;  %v6988_v54 = vld [vmem:[%s6671_s16 + $0x70] sm:$0xff] }
 0x219   : >> { %5122 = vmatmul.msk.f32.gmra.mxu0 %vm343_vm1, %v6741_v0  ;;  %5156 = vmatmul.msk.f32.gmra.mxu1 %vm343_vm1, %v6955_v25 }
 0x21a   : >> { %v6964_v33 = vadd.f32 %v1912_v20, %v1805_v52 }
 0x21b   : >> { %v1470_v58 = vpop.f32.mrf.mxu2  ;;  %v1617_v51 = vpop.f32.mrf.mxu3 }
 0x21c   : >> { %v1512_v36 = vadd.f32 %v1470_v58, %v6738_v41 }
 0x21e   : >> { %v1659_v9 = vadd.f32 %v1617_v51, %v1512_v36  ;;  %v1767_v18 = vpop.f32.mrf.mxu0  ;;  %v1918_v42 = vpop.f32.mrf.mxu1  ;;  %v7022_v36 = vld [vmem:[%s6671_s16 + $0x90] sm:$0xff] }
 0x220   : >> { %v1806_v50 = vadd.f32 %v1764_v23, %v1659_v9  ;;  %5069 = vmatmul.msk.f32.gmra.mxu2 %vm343_vm1, %v6939_v14  ;;  %5087 = vmatmul.msk.f32.gmra.mxu3 %vm343_vm1, %v6968_v37 }
 0x221   : >> { %5123 = vmatmul.msk.f32.gmra.mxu0 %vm343_vm1, %v6756_v1  ;;  %5157 = vmatmul.msk.f32.gmra.mxu1 %vm343_vm1, %v6971_v22 }
 0x222   : >> { %v6981_v41 = vadd.f32 %v1915_v24, %v1806_v50  ;;  %v7019_v24 = vld [vmem:[%s6671_s16 + $0x71] sm:$0xff] }
 0x223   : >> { %v1473_v12 = vpop.f32.mrf.mxu2  ;;  %v1620_v46 = vpop.f32.mrf.mxu3 }
 0x224   : >> { %v1513_v40 = vadd.f32 %v1473_v12, %v6753_v53  ;;  %v7036_v12 = vld [vmem:[%s6671_s16 + $0x89] sm:$0xff] }
 0x226   : >> { %v1660_v32 = vadd.f32 %v1620_v46, %v1513_v40  ;;  %v1770_v45 = vpop.f32.mrf.mxu0  ;;  %v1921_v19 = vpop.f32.mrf.mxu1 }
 0x228   : >> { %v1807_v63 = vadd.f32 %v1767_v18, %v1660_v32  ;;  %5070 = vmatmul.msk.f32.gmra.mxu2 %vm343_vm1, %v6955_v25  ;;  %5088 = vmatmul.msk.f32.gmra.mxu3 %vm343_vm1, %v6985_v39 }
 0x229   : >> { %5124 = vmatmul.msk.f32.gmra.mxu0 %vm343_vm1, %v6771_v17  ;;  %5158 = vmatmul.msk.f32.gmra.mxu1 %vm343_vm1, %v6988_v54 }
 0x22a   : >> { %v6998_v53 = vadd.f32 %v1918_v42, %v1807_v63 }
 0x22b   : >> { %v1476_v15 = vpop.f32.mrf.mxu2  ;;  %v1623_v7 = vpop.f32.mrf.mxu3 }
 0x22c   : >> { %v1514_v3 = vadd.f32 %v1476_v15, %v6768_v13 }
 0x22e   : >> { %v1661_v43 = vadd.f32 %v1623_v7, %v1514_v3  ;;  %v1773_v20 = vpop.f32.mrf.mxu0  ;;  %v1924_v30 = vpop.f32.mrf.mxu1  ;;  %v7053_v3 = vld [vmem:[%s6671_s16 + $0x91] sm:$0xff] }
 0x230   : >> { %v1808_v31 = vadd.f32 %v1770_v45, %v1661_v43  ;;  %5071 = vmatmul.msk.f32.gmra.mxu2 %vm343_vm1, %v6971_v22  ;;  %5089 = vmatmul.msk.f32.gmra.mxu3 %vm343_vm1, %v7002_v44  ;;  %v7039_v45 = vld [vmem:[%s6671_s16 + $0xa8] sm:$0xff] }
 0x231   : >> { %5125 = vmatmul.msk.f32.gmra.mxu0 %vm343_vm1, %v6786_v57  ;;  %5159 = vmatmul.msk.f32.gmra.mxu1 %vm343_vm1, %v7005_v11 }
 0x232   : >> { %v7015_v13 = vadd.f32 %v1921_v19, %v1808_v31  ;;  %v7056_v31 = vld [vmem:[%s6671_s16 + $0xb0] sm:$0xff] }
 0x233   : >> { %v1479_v8 = vpop.f32.mrf.mxu2  ;;  %v1626_v48 = vpop.f32.mrf.mxu3 }
 0x234   : >> { %v1515_v23 = vadd.f32 %v1479_v8, %v6783_v49 }
 0x236   : >> { %v1662_v52 = vadd.f32 %v1626_v48, %v1515_v23  ;;  %v1776_v58 = vpop.f32.mrf.mxu0  ;;  %v1927_v51 = vpop.f32.mrf.mxu1 }
 0x238   : >> { %v1809_v9 = vadd.f32 %v1773_v20, %v1662_v52  ;;  %5072 = vmatmul.msk.f32.gmra.mxu2 %vm343_vm1, %v6988_v54  ;;  %5090 = vmatmul.msk.f32.gmra.mxu3 %vm343_vm1, %v7019_v24 }
 0x239   : >> { %5126 = vmatmul.msk.f32.gmra.mxu0 %vm343_vm1, %v6800_v56  ;;  %5160 = vmatmul.msk.f32.gmra.mxu1 %vm343_vm1, %v7022_v36 }
 0x23a   : >> { %v7032_v49 = vadd.f32 %v1924_v30, %v1809_v9 }
 0x23b   : >> { %v1482_v18 = vpop.f32.mrf.mxu2  ;;  %v1629_v42 = vpop.f32.mrf.mxu3 }
 0x23c   : >> { %v1516_v50 = vadd.f32 %v1482_v18, %v6796_v29 }
 0x23e   : >> { %v1663_v46 = vadd.f32 %v1629_v42, %v1516_v50  ;;  %v1779_v40 = vpop.f32.mrf.mxu0  ;;  %v1930_v32 = vpop.f32.mrf.mxu1  ;;  %v7073_v42 = vld [vmem:[%s6671_s16 + $0xc8] sm:$0xff] }
 0x240   : >> { %v1810_v19 = vadd.f32 %v1776_v58, %v1663_v46  ;;  %5073 = vmatmul.msk.f32.gmra.mxu2 %vm343_vm1, %v7005_v11  ;;  %5091 = vmatmul.msk.f32.gmra.mxu3 %vm343_vm1, %v7036_v12  ;;  %v7070_v58 = vld [vmem:[%s6671_s16 + $0xa9] sm:$0xff] }
 0x241   : >> { %5127 = vmatmul.msk.f32.gmra.mxu0 %vm343_vm1, %v6814_v62  ;;  %5161 = vmatmul.msk.f32.gmra.mxu1 %vm343_vm1, %v7039_v45 }
 0x242   : >> { %v7049_v29 = vadd.f32 %v1927_v51, %v1810_v19  ;;  %v7087_v19 = vld [vmem:[%s6671_s16 + $0xb1] sm:$0xff] }
 0x243   : >> { %v1485_v63 = vpop.f32.mrf.mxu2  ;;  %v1632_v15 = vpop.f32.mrf.mxu3 }
 0x244   : >> { %v1517_v7 = vadd.f32 %v1485_v63, %v6810_v55 }
 0x246   : >> { %v1664_v43 = vadd.f32 %v1632_v15, %v1517_v7  ;;  %v1782_v20 = vpop.f32.mrf.mxu0  ;;  %v1933_v30 = vpop.f32.mrf.mxu1 }
 0x248   : >> { %v1811_v8 = vadd.f32 %v1779_v40, %v1664_v43  ;;  %5074 = vmatmul.msk.f32.gmra.mxu2 %vm343_vm1, %v7022_v36  ;;  %5092 = vmatmul.msk.f32.gmra.mxu3 %vm343_vm1, %v7053_v3  ;;  %v7090_v43 = vld [vmem:[%s6671_s16 + $0xd0] sm:$0xff] }
 0x249   : >> { %5128 = vmatmul.msk.f32.gmra.mxu0 %vm343_vm1, %v6828_v4  ;;  %5162 = vmatmul.msk.f32.gmra.mxu1 %vm343_vm1, %v7056_v31 }
 0x24a   : >> { %v7066_v55 = vadd.f32 %v1930_v32, %v1811_v8 }
 0x24b   : >> { %v1488_v48 = vpop.f32.mrf.mxu2  ;;  %v1635_v23 = vpop.f32.mrf.mxu3 }
 0x24c   : >> { %v1518_v52 = vadd.f32 %v1488_v48, %v6824_v61 }
 0x24e   : >> { %v1665_v51 = vadd.f32 %v1635_v23, %v1518_v52  ;;  %v1785_v9 = vpop.f32.mrf.mxu0  ;;  %v1936_v18 = vpop.f32.mrf.mxu1  ;;  %v7104_v23 = vld [vmem:[%s6671_s16 + $0xc9] sm:$0xff] }
 0x250   : >> { %v1812_v50 = vadd.f32 %v1782_v20, %v1665_v51  ;;  %5075 = vmatmul.msk.f32.gmra.mxu2 %vm343_vm1, %v7039_v45  ;;  %5093 = vmatmul.msk.f32.gmra.mxu3 %vm343_vm1, %v7070_v58 }
 0x251   : >> { %5129 = vmatmul.msk.f32.gmra.mxu0 %vm343_vm1, %v6842_v6  ;;  %5163 = vmatmul.msk.f32.gmra.mxu1 %vm343_vm1, %v7073_v42 }
 0x252   : >> { %v7083_v61 = vadd.f32 %v1933_v30, %v1812_v50  ;;  %v7107_v50 = vld [vmem:[%s6671_s16 + $0xe8] sm:$0xff] }
 0x253   : >> { %v1491_v46 = vpop.f32.mrf.mxu2  ;;  %v1638_v40 = vpop.f32.mrf.mxu3 }
 0x254   : >> { %v1519_v32 = vadd.f32 %v1491_v46, %v6838_v38 }
 0x256   : >> { %v1666_v63 = vadd.f32 %v1638_v40, %v1519_v32  ;;  %v1788_v15 = vpop.f32.mrf.mxu0  ;;  %v1939_v7 = vpop.f32.mrf.mxu1 }
 0x258   : >> { %v1813_v20 = vadd.f32 %v1785_v9, %v1666_v63  ;;  %5076 = vmatmul.msk.f32.gmra.mxu2 %vm343_vm1, %v7056_v31  ;;  %5094 = vmatmul.msk.f32.gmra.mxu3 %vm343_vm1, %v7087_v19  ;;  %v7121_v63 = vld [vmem:[%s6671_s16 + $0xd1] sm:$0xff] }
 0x259   : >> { %5130 = vmatmul.msk.f32.gmra.mxu0 %vm343_vm1, %v6864_v10  ;;  %5164 = vmatmul.msk.f32.gmra.mxu1 %vm343_vm1, %v7090_v43 }
 0x25a   : >> { %v7100_v38 = vadd.f32 %v1936_v18, %v1813_v20 }
 0x25b   : >> { %v1494_v30 = vpop.f32.mrf.mxu2  ;;  %v1641_v8 = vpop.f32.mrf.mxu3 }
 0x25c   : >> { %8126 = vst [vmem:[#allocation11_spill] sm:$0xff] %v7100_v38  ;;  %v1520_v48 = vadd.f32 %v1494_v30, %v6855_v60  ;;  %v7164_v38 = vld [vmem:[%s6671_s16 + $0x110] sm:$0xff] }
 0x25e   : >> { %v1667_v52 = vadd.f32 %v1641_v8, %v1520_v48  ;;  %v1791_v51 = vpop.f32.mrf.mxu0  ;;  %v1942_v9 = vpop.f32.mrf.mxu1  ;;  %v7124_v8 = vld [vmem:[%s6671_s16 + $0xf0] sm:$0xff] }
 0x260   : >> { %v1814_v46 = vadd.f32 %v1788_v15, %v1667_v52  ;;  %5077 = vmatmul.msk.f32.gmra.mxu2 %vm343_vm1, %v7073_v42  ;;  %5095 = vmatmul.msk.f32.gmra.mxu3 %vm343_vm1, %v7104_v23 }
 0x261   : >> { %5131 = vmatmul.msk.f32.gmra.mxu0 %vm343_vm1, %v6889_v27  ;;  %5165 = vmatmul.msk.f32.gmra.mxu1 %vm343_vm1, %v7107_v50 }
 0x262   : >> { %v7117_v60 = vadd.f32 %v1939_v7, %v1814_v46 }
 0x263   : >> { %v1497_v18 = vpop.f32.mrf.mxu2  ;;  %v1644_v40 = vpop.f32.mrf.mxu3 }
 0x264   : >> { %8127 = vst [vmem:[#allocation9_spill] sm:$0xff] %v7117_v60  ;;  %v1521_v32 = vadd.f32 %v1497_v18, %v6874_v26  ;;  %v7144_v60 = vld [vmem:[%s6671_s16 + $0x108] sm:$0xff] }
 0x266   : >> { %v1668_v15 = vadd.f32 %v1644_v40, %v1521_v32  ;;  %v1794_v20 = vpop.f32.mrf.mxu0  ;;  %v1945_v30 = vpop.f32.mrf.mxu1 }
 0x268   : >> { %v1815_v48 = vadd.f32 %v1791_v51, %v1668_v15  ;;  %5078 = vmatmul.msk.f32.gmra.mxu2 %vm343_vm1, %v7090_v43  ;;  %5096 = vmatmul.msk.f32.gmra.mxu3 %vm343_vm1, %v7121_v63  ;;  %v7138_v51 = vld [vmem:[%s6671_s16 + $0xe9] sm:$0xff] }
 0x269   : >> { %5132 = vmatmul.msk.f32.gmra.mxu0 %vm343_vm1, %v6903_v47  ;;  %5166 = vmatmul.msk.f32.gmra.mxu1 %vm343_vm1, %v7124_v8  ;;  %8129 = vst [vmem:[#allocation14_spill] sm:$0xff] %v7138_v51  ;;  %v7141_v15 = vld [vmem:[%s6671_s16 + $0x107] sm:$0xff] }
 0x26a   : >> { %v7134_v26 = vadd.f32 %v1942_v9, %v1815_v48 }
 0x26b   : >> { %v1500_v7 = vpop.f32.mrf.mxu2  ;;  %v1647_v52 = vpop.f32.mrf.mxu3 }
 0x26c   : >> { %8128 = vst [vmem:[#allocation13_spill] sm:$0xff] %v7134_v26  ;;  %v1522_v46 = vadd.f32 %v1500_v7, %v6896_v59  ;;  %v7161_v26 = vld [vmem:[%s6671_s16 + $0x10f] sm:$0xff] }
 0x26e   : >> { %v1669_v18 = vadd.f32 %v1647_v52, %v1522_v46  ;;  %v1797_v40 = vpop.f32.mrf.mxu0  ;;  %v1948_v32 = vpop.f32.mrf.mxu1  ;;  %v7158_v52 = vld [vmem:[%s6671_s16 + $0xf1] sm:$0xff] }
 0x270   : >> { %v1816_v47 = vadd.f32 %v1794_v20, %v1669_v18  ;;  %5079 = vmatmul.msk.f32.gmra.mxu2 %vm343_vm1, %v7107_v50  ;;  %5097 = vmatmul.msk.f32.gmra.mxu3 %vm343_vm1, %v7138_v51 }
 0x271   : >> { %5133 = vmatmul.msk.f32.gmra.mxu0 %vm343_vm1, %v7141_v15  ;;  %5167 = vmatmul.msk.f32.gmra.mxu1 %vm343_vm1, %v7144_v60 }
 0x272   : >> { %v7154_v59 = vadd.f32 %v1945_v30, %v1816_v47 }
 0x273   : >> { %v1503_v9 = vpop.f32.mrf.mxu2  ;;  %v1650_v48 = vpop.f32.mrf.mxu3 }
 0x274   : >> { %v1523_v7 = vadd.f32 %v1503_v9, %v6910_v34 }
 0x276   : >> { %v1670_v20 = vadd.f32 %v1650_v48, %v1523_v7  ;;  %v1800_v46 = vpop.f32.mrf.mxu0  ;;  %v1951_v18 = vpop.f32.mrf.mxu1 }
 0x278   : >> { %v1817_v51 = vadd.f32 %v1797_v40, %v1670_v20  ;;  %5080 = vmatmul.msk.f32.gmra.mxu2 %vm343_vm1, %v7124_v8  ;;  %5098 = vmatmul.msk.f32.gmra.mxu3 %vm343_vm1, %v7158_v52 }
 0x279   : >> { %5134 = vmatmul.msk.f32.gmra.mxu0 %vm343_vm1, %v7161_v26  ;;  %5168 = vmatmul.msk.f32.gmra.mxu1 %vm343_vm1, %v7164_v38 }
 0x27a   : >> { %v7174_v47 = vadd.f32 %v1948_v32, %v1817_v51 }
 0x27b   : >> { %v1506_v34 = vpop.f32.mrf.mxu2  ;;  %v1653_v30 = vpop.f32.mrf.mxu3 }
 0x27c   : >> { %v1524_v9 = vadd.f32 %v1506_v34, %v6921_v35 }
 0x27e   : >> { %v1671_v48 = vadd.f32 %v1653_v30, %v1524_v9  ;;  %v2357_v40 = vpop.f32.mrf.mxu0  ;;  %v2507_v7 = vpop.f32.mrf.mxu1 }
 0x280   : >> { %v1818_v20 = vadd.f32 %v1800_v46, %v1671_v48  ;;  %5187 = vmatmul.msk.f32.vlgmr.msra.gmra.mxu2 %vm343_vm1, %v6936_v28  ;;  %5223 = vmatmul.msk.f32.vlgmr.msra.gmra.mxu3 %vm343_vm1, %v6726_v21 }
 0x281   : >> { %5257 = vmatmul.msk.f32.vlgmr.msra.gmra.mxu0 %vm343_vm1, %v6939_v14  ;;  %5291 = vmatmul.msk.f32.vlgmr.msra.gmra.mxu1 %vm343_vm1, %v6968_v37 }
 0x282   : >> { %v7185_v51 = vadd.f32 %v1951_v18, %v1818_v20 }
 0x283   : >> { %v2056_v32 = vpop.f32.mrf.mxu2  ;;  %v2206_v35 = vpop.f32.mrf.mxu3 }
 0x284   : >> { %v2104_v34 = vadd.f32 %v2056_v32, %v6932_v2 }
 0x286   : >> { %v2254_v30 = vadd.f32 %v2206_v35, %v2104_v34  ;;  %v2360_v46 = vpop.f32.mrf.mxu0  ;;  %v2510_v9 = vpop.f32.mrf.mxu1 }
 0x288   : >> { %v2405_v48 = vadd.f32 %v2357_v40, %v2254_v30  ;;  %5188 = vmatmul.msk.f32.gmra.mxu2 %vm343_vm1, %v6952_v5  ;;  %5224 = vmatmul.msk.f32.gmra.mxu3 %vm343_vm1, %v6741_v0 }
 0x289   : >> { %5258 = vmatmul.msk.f32.gmra.mxu0 %vm343_vm1, %v6955_v25  ;;  %5292 = vmatmul.msk.f32.gmra.mxu1 %vm343_vm1, %v6985_v39 }
 0x28a   : >> { %v7196_v21 = vadd.f32 %v2507_v7, %v2405_v48 }
 0x28b   : >> { %v2059_v28 = vpop.f32.mrf.mxu2  ;;  %v2209_v2 = vpop.f32.mrf.mxu3 }
 0x28c   : >> { %v2105_v14 = vadd.f32 %v2059_v28, %v6948_v16 }
 0x28e   : >> { %v2255_v18 = vadd.f32 %v2209_v2, %v2105_v14  ;;  %v2363_v40 = vpop.f32.mrf.mxu0  ;;  %v2513_v20 = vpop.f32.mrf.mxu1 }
 0x290   : >> { %v2406_v32 = vadd.f32 %v2360_v46, %v2255_v18  ;;  %5189 = vmatmul.msk.f32.gmra.mxu2 %vm343_vm1, %v6968_v37  ;;  %5225 = vmatmul.msk.f32.gmra.mxu3 %vm343_vm1, %v6756_v1 }
 0x291   : >> { %5259 = vmatmul.msk.f32.gmra.mxu0 %vm343_vm1, %v6971_v22  ;;  %5293 = vmatmul.msk.f32.gmra.mxu1 %vm343_vm1, %v7002_v44 }
 0x292   : >> { %v7207_v0 = vadd.f32 %v2510_v9, %v2406_v32 }
 0x293   : >> { %v2062_v5 = vpop.f32.mrf.mxu2  ;;  %v2212_v16 = vpop.f32.mrf.mxu3 }
 0x294   : >> { %v2106_v25 = vadd.f32 %v2062_v5, %v6964_v33 }
 0x296   : >> { %v2256_v7 = vadd.f32 %v2212_v16, %v2106_v25  ;;  %v2366_v35 = vpop.f32.mrf.mxu0  ;;  %v2516_v34 = vpop.f32.mrf.mxu1 }
 0x298   : >> { %v2407_v30 = vadd.f32 %v2363_v40, %v2256_v7  ;;  %5190 = vmatmul.msk.f32.gmra.mxu2 %vm343_vm1, %v6985_v39  ;;  %5226 = vmatmul.msk.f32.gmra.mxu3 %vm343_vm1, %v6771_v17 }
 0x299   : >> { %5260 = vmatmul.msk.f32.gmra.mxu0 %vm343_vm1, %v6988_v54  ;;  %5294 = vmatmul.msk.f32.gmra.mxu1 %vm343_vm1, %v7019_v24 }
 0x29a   : >> { %v7218_v1 = vadd.f32 %v2513_v20, %v2407_v30 }
 0x29b   : >> { %v2065_v37 = vpop.f32.mrf.mxu2  ;;  %v2215_v33 = vpop.f32.mrf.mxu3 }
 0x29c   : >> { %v2107_v22 = vadd.f32 %v2065_v37, %v6981_v41 }
 0x29e   : >> { %v2257_v46 = vadd.f32 %v2215_v33, %v2107_v22  ;;  %v2369_v9 = vpop.f32.mrf.mxu0  ;;  %v2519_v48 = vpop.f32.mrf.mxu1 }
 0x2a0   : >> { %v2408_v28 = vadd.f32 %v2366_v35, %v2257_v46  ;;  %5191 = vmatmul.msk.f32.gmra.mxu2 %vm343_vm1, %v7002_v44  ;;  %5227 = vmatmul.msk.f32.gmra.mxu3 %vm343_vm1, %v6786_v57 }
 0x2a1   : >> { %5261 = vmatmul.msk.f32.gmra.mxu0 %vm343_vm1, %v7005_v11  ;;  %5295 = vmatmul.msk.f32.gmra.mxu1 %vm343_vm1, %v7036_v12 }
 0x2a2   : >> { %v7229_v17 = vadd.f32 %v2516_v34, %v2408_v28 }
 0x2a3   : >> { %v2068_v39 = vpop.f32.mrf.mxu2  ;;  %v2218_v41 = vpop.f32.mrf.mxu3 }
 0x2a4   : >> { %v2108_v54 = vadd.f32 %v2068_v39, %v6998_v53 }
 0x2a6   : >> { %v2258_v2 = vadd.f32 %v2218_v41, %v2108_v54  ;;  %v2372_v14 = vpop.f32.mrf.mxu0  ;;  %v2522_v18 = vpop.f32.mrf.mxu1 }
 0x2a8   : >> { %v2409_v40 = vadd.f32 %v2369_v9, %v2258_v2  ;;  %5192 = vmatmul.msk.f32.gmra.mxu2 %vm343_vm1, %v7019_v24  ;;  %5228 = vmatmul.msk.f32.gmra.mxu3 %vm343_vm1, %v6800_v56 }
 0x2a9   : >> { %5262 = vmatmul.msk.f32.gmra.mxu0 %vm343_vm1, %v7022_v36  ;;  %5296 = vmatmul.msk.f32.gmra.mxu1 %vm343_vm1, %v7053_v3 }
 0x2aa   : >> { %v7240_v57 = vadd.f32 %v2519_v48, %v2409_v40 }
 0x2ab   : >> { %v2071_v44 = vpop.f32.mrf.mxu2  ;;  %v2221_v53 = vpop.f32.mrf.mxu3 }
 0x2ac   : >> { %v2109_v11 = vadd.f32 %v2071_v44, %v7015_v13 }
 0x2ae   : >> { %v2259_v20 = vadd.f32 %v2221_v53, %v2109_v11  ;;  %v2375_v32 = vpop.f32.mrf.mxu0  ;;  %v2525_v5 = vpop.f32.mrf.mxu1 }
 0x2b0   : >> { %v2410_v16 = vadd.f32 %v2372_v14, %v2259_v20  ;;  %5193 = vmatmul.msk.f32.gmra.mxu2 %vm343_vm1, %v7036_v12  ;;  %5229 = vmatmul.msk.f32.gmra.mxu3 %vm343_vm1, %v6814_v62  ;;  %v8131_v14 = vld [vmem:[#allocation11_spill] sm:$0xff] }
 0x2b1   : >> { %5263 = vmatmul.msk.f32.gmra.mxu0 %vm343_vm1, %v7039_v45  ;;  %5297 = vmatmul.msk.f32.gmra.mxu1 %vm343_vm1, %v7070_v58 }
 0x2b2   : >> { %v7251_v56 = vadd.f32 %v2522_v18, %v2410_v16 }
 0x2b3   : >> { %v2074_v24 = vpop.f32.mrf.mxu2  ;;  %v2224_v13 = vpop.f32.mrf.mxu3 }
 0x2b4   : >> { %v2110_v36 = vadd.f32 %v2074_v24, %v7032_v49 }
 0x2b6   : >> { %v2260_v25 = vadd.f32 %v2224_v13, %v2110_v36  ;;  %v2378_v7 = vpop.f32.mrf.mxu0  ;;  %v2528_v35 = vpop.f32.mrf.mxu1 }
 0x2b8   : >> { %v2411_v34 = vadd.f32 %v2375_v32, %v2260_v25  ;;  %5194 = vmatmul.msk.f32.gmra.mxu2 %vm343_vm1, %v7053_v3  ;;  %5230 = vmatmul.msk.f32.gmra.mxu3 %vm343_vm1, %v6828_v4  ;;  %v8133_v32 = vld [vmem:[#allocation9_spill] sm:$0xff] }
 0x2b9   : >> { %5264 = vmatmul.msk.f32.gmra.mxu0 %vm343_vm1, %v7056_v31  ;;  %5298 = vmatmul.msk.f32.gmra.mxu1 %vm343_vm1, %v7087_v19 }
 0x2ba   : >> { %v7262_v62 = vadd.f32 %v2525_v5, %v2411_v34 }
 0x2bb   : >> { %v2077_v12 = vpop.f32.mrf.mxu2  ;;  %v2227_v49 = vpop.f32.mrf.mxu3 }
 0x2bc   : >> { %v2111_v45 = vadd.f32 %v2077_v12, %v7049_v29 }
 0x2be   : >> { %v2261_v30 = vadd.f32 %v2227_v49, %v2111_v45  ;;  %v2381_v37 = vpop.f32.mrf.mxu0  ;;  %v2531_v33 = vpop.f32.mrf.mxu1 }
 0x2c0   : >> { %v2412_v22 = vadd.f32 %v2378_v7, %v2261_v30  ;;  %5195 = vmatmul.msk.f32.gmra.mxu2 %vm343_vm1, %v7070_v58  ;;  %5231 = vmatmul.msk.f32.gmra.mxu3 %vm343_vm1, %v6842_v6  ;;  %v5286_v30 = vld [vmem:[%s6671_s16 + $0x111] sm:$0xff] }
 0x2c1   : >> { %5265 = vmatmul.msk.f32.gmra.mxu0 %vm343_vm1, %v7073_v42  ;;  %5299 = vmatmul.msk.f32.gmra.mxu1 %vm343_vm1, %v7104_v23 }
 0x2c2   : >> { %v7273_v4 = vadd.f32 %v2528_v35, %v2412_v22  ;;  %v8134_v35 = vld [vmem:[#allocation13_spill] sm:$0xff] }
 0x2c3   : >> { %v2080_v3 = vpop.f32.mrf.mxu2  ;;  %v2230_v29 = vpop.f32.mrf.mxu3 }
 0x2c4   : >> { %v2112_v31 = vadd.f32 %v2080_v3, %v7066_v55  ;;  %v5219_v3 = vld [vmem:[%s6671_s16 + $0x127] sm:$0xff] }
 0x2c6   : >> { %v2262_v46 = vadd.f32 %v2230_v29, %v2112_v31  ;;  %v2384_v9 = vpop.f32.mrf.mxu0  ;;  %v2534_v48 = vpop.f32.mrf.mxu1 }
 0x2c8   : >> { %v2413_v28 = vadd.f32 %v2381_v37, %v2262_v46  ;;  %5196 = vmatmul.msk.f32.gmra.mxu2 %vm343_vm1, %v7087_v19  ;;  %5232 = vmatmul.msk.f32.gmra.mxu3 %vm343_vm1, %v6864_v10  ;;  %v8130_v10 = vld [vmem:[#allocation14_spill] sm:$0xff] }
 0x2c9   : >> { %5266 = vmatmul.msk.f32.gmra.mxu0 %vm343_vm1, %v7090_v43  ;;  %5300 = vmatmul.msk.f32.gmra.mxu1 %vm343_vm1, %v7121_v63 }
 0x2ca   : >> { %v7284_v6 = vadd.f32 %v2531_v33, %v2413_v28 }
 0x2cb   : >> { %v2083_v58 = vpop.f32.mrf.mxu2  ;;  %v2233_v55 = vpop.f32.mrf.mxu3 }
 0x2cc   : >> { %v2113_v42 = vadd.f32 %v2083_v58, %v7083_v61  ;;  %v5220_v58 = vld [vmem:[%s6671_s16 + $0x12f] sm:$0xff] }
 0x2ce   : >> { %v2263_v39 = vadd.f32 %v2233_v55, %v2113_v42  ;;  %v2387_v41 = vpop.f32.mrf.mxu0  ;;  %v2537_v54 = vpop.f32.mrf.mxu1 }
 0x2d0   : >> { %v2414_v2 = vadd.f32 %v2384_v9, %v2263_v39  ;;  %5197 = vmatmul.msk.f32.gmra.mxu2 %vm343_vm1, %v7104_v23  ;;  %5233 = vmatmul.msk.f32.gmra.mxu3 %vm343_vm1, %v6889_v27  ;;  %v8132_v27 = vld [vmem:[#allocation8_spill] sm:$0xff] }
 0x2d1   : >> { %5267 = vmatmul.msk.f32.gmra.mxu0 %vm343_vm1, %v7107_v50  ;;  %5301 = vmatmul.msk.f32.gmra.mxu1 %vm343_vm1, %v8130_v10 }
 0x2d2   : >> { %v7295_v19 = vadd.f32 %v2534_v48, %v2414_v2 }
 0x2d3   : >> { %v2086_v43 = vpop.f32.mrf.mxu2  ;;  %v2236_v61 = vpop.f32.mrf.mxu3 }
 0x2d4   : >> { %v2114_v18 = vadd.f32 %v2086_v43, %v8131_v14 }
 0x2d6   : >> { %v2264_v40 = vadd.f32 %v2236_v61, %v2114_v18  ;;  %v2390_v44 = vpop.f32.mrf.mxu0  ;;  %v2540_v53 = vpop.f32.mrf.mxu1 }
 0x2d8   : >> { %v2415_v23 = vadd.f32 %v2387_v41, %v2264_v40  ;;  %5198 = vmatmul.msk.f32.gmra.mxu2 %vm343_vm1, %v7121_v63  ;;  %5234 = vmatmul.msk.f32.gmra.mxu3 %vm343_vm1, %v8132_v27  ;;  %v5285_v63 = vld [vmem:[%s6671_s16 + $0x109] sm:$0xff] }
 0x2d9   : >> { %5268 = vmatmul.msk.f32.gmra.mxu0 %vm343_vm1, %v7124_v8  ;;  %5302 = vmatmul.msk.f32.gmra.mxu1 %vm343_vm1, %v7158_v52  ;;  %v5254_v41 = vld [vmem:[%s6671_s16 + $0x130] sm:$0xff] }
 0x2da   : >> { %v7306_v50 = vadd.f32 %v2537_v54, %v2415_v23  ;;  %v5288_v54 = vld [vmem:[%s6671_s16 + $0x131] sm:$0xff] }
 0x2db   : >> { %v2089_v11 = vpop.f32.mrf.mxu2  ;;  %v2239_v20 = vpop.f32.mrf.mxu3 }
 0x2dc   : >> { %v2115_v5 = vadd.f32 %v2089_v11, %v8133_v32 }
 0x2de   : >> { %v2265_v16 = vadd.f32 %v2239_v20, %v2115_v5  ;;  %v2393_v24 = vpop.f32.mrf.mxu0  ;;  %v2543_v13 = vpop.f32.mrf.mxu1 }
 0x2e0   : >> { %v2416_v36 = vadd.f32 %v2390_v44, %v2265_v16  ;;  %5199 = vmatmul.msk.f32.gmra.mxu2 %vm343_vm1, %v8130_v10  ;;  %5235 = vmatmul.msk.f32.gmra.mxu3 %vm343_vm1, %v7141_v15 }
 0x2e1   : >> { %5269 = vmatmul.msk.f32.gmra.mxu0 %vm343_vm1, %v7144_v60  ;;  %5303 = vmatmul.msk.f32.gmra.mxu1 %vm343_vm1, %v5285_v63 }
 0x2e2   : >> { %v7317_v8 = vadd.f32 %v2540_v53, %v2416_v36 }
 0x2e3   : >> { %v2092_v25 = vpop.f32.mrf.mxu2  ;;  %v2242_v7 = vpop.f32.mrf.mxu3 }
 0x2e4   : >> { %v2116_v34 = vadd.f32 %v2092_v25, %v8134_v35 }
 0x2e6   : >> { %v2266_v12 = vadd.f32 %v2242_v7, %v2116_v34  ;;  %v2396_v49 = vpop.f32.mrf.mxu0  ;;  %v2546_v45 = vpop.f32.mrf.mxu1 }
 0x2e8   : >> { %v2417_v37 = vadd.f32 %v2393_v24, %v2266_v12  ;;  %5200 = vmatmul.msk.f32.gmra.mxu2 %vm343_vm1, %v7158_v52  ;;  %5236 = vmatmul.msk.f32.gmra.mxu3 %vm343_vm1, %v7161_v26  ;;  %v5253_v52 = vld [vmem:[%s6671_s16 + $0x128] sm:$0xff]  ;;  %v7357_v24 = vld [vmem:[%s8082_s4] ss:$0 sm:$0xff] }
 0x2e9   : >> { %5270 = vmatmul.msk.f32.gmra.mxu0 %vm343_vm1, %v7164_v38  ;;  %5304 = vmatmul.msk.f32.gmra.mxu1 %vm343_vm1, %v5286_v30  ;;  %v5287_v26 = vld [vmem:[%s6671_s16 + $0x129] sm:$0xff] }
 0x2ea   : >> { %v7328_v60 = vadd.f32 %v2543_v13, %v2417_v37 }
 0x2eb   : >> { %v2095_v15 = vpop.f32.mrf.mxu2  ;;  %v2245_v33 = vpop.f32.mrf.mxu3 }
 0x2ec   : >> { %v2117_v22 = vadd.f32 %v2095_v15, %v7154_v59 }
 0x2ee   : >> { %v2267_v29 = vadd.f32 %v2245_v33, %v2117_v22  ;;  %v2399_v31 = vpop.f32.mrf.mxu0  ;;  %v2549_v46 = vpop.f32.mrf.mxu1 }
 0x2f0   : >> { %v2418_v9 = vadd.f32 %v2396_v49, %v2267_v29  ;;  %5201 = vmatmul.msk.f32.gmra.mxu2 %vm343_vm1, %v5285_v63  ;;  %5237 = vmatmul.msk.f32.gmra.mxu3 %vm343_vm1, %v5219_v3 }
 0x2f1   : >> { %5271 = vmatmul.msk.f32.gmra.mxu0 %vm343_vm1, %v5253_v52  ;;  %5305 = vmatmul.msk.f32.gmra.mxu1 %vm343_vm1, %v5287_v26 }
 0x2f2   : >> { %v7338_v38 = vadd.f32 %v2546_v45, %v2418_v9 }
 0x2f3   : >> { %v2098_v59 = vpop.f32.mrf.mxu2  ;;  %v2248_v48 = vpop.f32.mrf.mxu3 }
 0x2f4   : >> { %v2118_v28 = vadd.f32 %v2098_v59, %v7174_v47 }
 0x2f6   : >> { %v2268_v55 = vadd.f32 %v2248_v48, %v2118_v28  ;;  %v2402_v42 = vpop.f32.mrf.mxu0  ;;  %v2552_v39 = vpop.f32.mrf.mxu1 }
 0x2f8   : >> { %v2419_v2 = vadd.f32 %v2399_v31, %v2268_v55  ;;  %5202 = vmatmul.msk.f32.gmra.mxu2 %vm343_vm1, %v5286_v30  ;;  %5238 = vmatmul.msk.f32.gmra.mxu3 %vm343_vm1, %v5220_v58 }
 0x2f9   : >> { %5272 = vmatmul.msk.f32.gmra.mxu0 %vm343_vm1, %v5254_v41  ;;  %5306 = vmatmul.msk.f32.gmra.mxu1 %vm343_vm1, %v5288_v54 }
 0x2fa   : >> { %v7348_v10 = vadd.f32 %v2549_v46, %v2419_v2 }
 0x2fb   : >> { %v2101_v43 = vpop.f32.mrf.mxu2  ;;  %v2251_v61 = vpop.f32.mrf.mxu3 }
 0x2fc   : >> { %v2119_v47 = vadd.f32 %v2101_v43, %v7185_v51 }
 0x2fe   : >> { %v2269_v14 = vadd.f32 %v2251_v61, %v2119_v47  ;;  %v2958_v18 = vpop.f32.mrf.mxu0  ;;  %v3108_v40 = vpop.f32.mrf.mxu1 }
 0x300   : >> { %v2420_v44 = vadd.f32 %v2402_v42, %v2269_v14 }
 0x302   : >> { %v7351_v53 = vadd.f32 %v2552_v39, %v2420_v44 }
 0x303   : >> { %v2657_v23 = vpop.f32.mrf.mxu2  ;;  %v2808_v27 = vpop.f32.mrf.mxu3 }
 0x304   : >> { %v2705_v11 = vadd.f32 %v2657_v23, %v7196_v21 }
 0x306   : >> { %v2856_v20 = vadd.f32 %v2808_v27, %v2705_v11  ;;  %v2961_v32 = vpop.f32.mrf.mxu0  ;;  %v3111_v5 = vpop.f32.mrf.mxu1 }
 0x308   : >> { %v3006_v16 = vadd.f32 %v2958_v18, %v2856_v20 }
 0x30a   : >> { %v3156_v51 = vadd.f32 %v3108_v40, %v3006_v16 }
 0x30b   : >> { %v2660_v13 = vpop.f32.mrf.mxu2  ;;  %v2811_v63 = vpop.f32.mrf.mxu3 }
 0x30c   : >> { %v3175_v36 = vadd.f32 %v7357_v24, %v3156_v51  ;;  %v2706_v25 = vadd.f32 %v2660_v13, %v7207_v0 }
 0x30e   : >> { %v3191_v7 = vmax.f32 %v3175_v36, 0.0  ;;  %v2857_v35 = vadd.f32 %v2811_v63, %v2706_v25  ;;  %v2964_v34 = vpop.f32.mrf.mxu0  ;;  %v3114_v21 = vpop.f32.mrf.mxu1 }
 0x310   : >> { %5309 = vst.msk [vmem:[%s7362_s19 + $0x28] sm:$0xff] %vm389_vm2, %v3191_v7  ;;  %v3007_v12 = vadd.f32 %v2961_v32, %v2857_v35 }
 0x312   : >> { %v3157_v49 = vadd.f32 %v3111_v5, %v3007_v12 }
 0x313   : >> { %v2663_v45 = vpop.f32.mrf.mxu2  ;;  %v2814_v30 = vpop.f32.mrf.mxu3 }
 0x314   : >> { %v3176_v37 = vadd.f32 %v7357_v24, %v3157_v49  ;;  %v2707_v15 = vadd.f32 %v2663_v45, %v7218_v1 }
 0x316   : >> { %v3192_v0 = vmax.f32 %v3176_v37, 0.0  ;;  %v2858_v33 = vadd.f32 %v2814_v30, %v2707_v15  ;;  %v2967_v22 = vpop.f32.mrf.mxu0  ;;  %v3117_v3 = vpop.f32.mrf.mxu1 }
 0x318   : >> { %5310 = vst.msk [vmem:[%s7362_s19 + $0x30] sm:$0xff] %vm389_vm2, %v3192_v0  ;;  %v3008_v29 = vadd.f32 %v2964_v34, %v2858_v33 }
 0x31a   : >> { %v3158_v31 = vadd.f32 %v3114_v21, %v3008_v29 }
 0x31b   : >> { %v2666_v46 = vpop.f32.mrf.mxu2  ;;  %v2817_v52 = vpop.f32.mrf.mxu3 }
 0x31c   : >> { %v3177_v26 = vadd.f32 %v7357_v24, %v3158_v31  ;;  %v2708_v9 = vadd.f32 %v2666_v46, %v7229_v17 }
 0x31e   : >> { %v3193_v59 = vmax.f32 %v3177_v26, 0.0  ;;  %v2859_v48 = vadd.f32 %v2817_v52, %v2708_v9  ;;  %v2970_v28 = vpop.f32.mrf.mxu0  ;;  %v3120_v1 = vpop.f32.mrf.mxu1 }
 0x320   : >> { %5311 = vst.msk [vmem:[%s7362_s19 + $0x48] sm:$0xff] %vm389_vm2, %v3193_v59  ;;  %v3009_v58 = vadd.f32 %v2967_v22, %v2859_v48 }
 0x322   : >> { %v3159_v55 = vadd.f32 %v3117_v3, %v3009_v58 }
 0x323   : >> { %v2669_v42 = vpop.f32.mrf.mxu2  ;;  %v2820_v39 = vpop.f32.mrf.mxu3 }
 0x324   : >> { %v3178_v41 = vadd.f32 %v7357_v24, %v3159_v55  ;;  %v2709_v54 = vadd.f32 %v2669_v42, %v7240_v57 }
 0x326   : >> { %v3194_v2 = vmax.f32 %v3178_v41, 0.0  ;;  %v2860_v43 = vadd.f32 %v2820_v39, %v2709_v54  ;;  %v2973_v61 = vpop.f32.mrf.mxu0  ;;  %v3123_v17 = vpop.f32.mrf.mxu1 }
 0x328   : >> { %5312 = vst.msk [vmem:[%s7362_s19 + $0x50] sm:$0xff] %vm389_vm2, %v3194_v2  ;;  %v3010_v47 = vadd.f32 %v2970_v28, %v2860_v43 }
 0x32a   : >> { %v3160_v14 = vadd.f32 %v3120_v1, %v3010_v47 }
 0x32b   : >> { %v2672_v18 = vpop.f32.mrf.mxu2  ;;  %v2823_v40 = vpop.f32.mrf.mxu3 }
 0x32c   : >> { %v3179_v44 = vadd.f32 %v7357_v24, %v3160_v14  ;;  %v2710_v23 = vadd.f32 %v2672_v18, %v7251_v56 }
 0x32e   : >> { %v3195_v27 = vmax.f32 %v3179_v44, 0.0  ;;  %v2861_v11 = vadd.f32 %v2823_v40, %v2710_v23  ;;  %v2976_v20 = vpop.f32.mrf.mxu0  ;;  %v3126_v57 = vpop.f32.mrf.mxu1 }
 0x330   : >> { %5313 = vst.msk [vmem:[%s7362_s19 + $0x68] sm:$0xff] %vm389_vm2, %v3195_v27  ;;  %v3011_v32 = vadd.f32 %v2973_v61, %v2861_v11 }
 0x332   : >> { %v3161_v5 = vadd.f32 %v3123_v17, %v3011_v32 }
 0x333   : >> { %v2675_v16 = vpop.f32.mrf.mxu2  ;;  %v2826_v51 = vpop.f32.mrf.mxu3 }
 0x334   : >> { %v3180_v13 = vadd.f32 %v7357_v24, %v3161_v5  ;;  %v2711_v63 = vadd.f32 %v2675_v16, %v7262_v62 }
 0x336   : >> { %v3196_v36 = vmax.f32 %v3180_v13, 0.0  ;;  %v2862_v25 = vadd.f32 %v2826_v51, %v2711_v63  ;;  %v2979_v7 = vpop.f32.mrf.mxu0  ;;  %v3129_v56 = vpop.f32.mrf.mxu1 }
 0x338   : >> { %5314 = vst.msk [vmem:[%s7362_s19 + $0x70] sm:$0xff] %vm389_vm2, %v3196_v36  ;;  %v3012_v35 = vadd.f32 %v2976_v20, %v2862_v25 }
 0x33a   : >> { %v3162_v34 = vadd.f32 %v3126_v57, %v3012_v35 }
 0x33b   : >> { %v2678_v21 = vpop.f32.mrf.mxu2  ;;  %v2829_v12 = vpop.f32.mrf.mxu3 }
 0x33c   : >> { %v3181_v49 = vadd.f32 %v7357_v24, %v3162_v34  ;;  %v2712_v45 = vadd.f32 %v2678_v21, %v7273_v4 }
 0x33e   : >> { %v3197_v30 = vmax.f32 %v3181_v49, 0.0  ;;  %v2863_v37 = vadd.f32 %v2829_v12, %v2712_v45  ;;  %v2982_v15 = vpop.f32.mrf.mxu0  ;;  %v3132_v62 = vpop.f32.mrf.mxu1 }
 0x340   : >> { %5315 = vst.msk [vmem:[%s7362_s19 + $0x88] sm:$0xff] %vm389_vm2, %v3197_v30  ;;  %v3013_v0 = vadd.f32 %v2979_v7, %v2863_v37 }
 0x342   : >> { %v3163_v33 = vadd.f32 %v3129_v56, %v3013_v0 }
 0x343   : >> { %v2681_v22 = vpop.f32.mrf.mxu2  ;;  %v2832_v3 = vpop.f32.mrf.mxu3 }
 0x344   : >> { %v3182_v29 = vadd.f32 %v7357_v24, %v3163_v33  ;;  %v2713_v31 = vadd.f32 %v2681_v22, %v7284_v6 }
 0x346   : >> { %v3198_v46 = vmax.f32 %v3182_v29, 0.0  ;;  %v2864_v52 = vadd.f32 %v2832_v3, %v2713_v31  ;;  %v2985_v26 = vpop.f32.mrf.mxu0  ;;  %v3135_v4 = vpop.f32.mrf.mxu1 }
 0x348   : >> { %5316 = vst.msk [vmem:[%s7362_s19 + $0x90] sm:$0xff] %vm389_vm2, %v3198_v46  ;;  %v3014_v9 = vadd.f32 %v2982_v15, %v2864_v52 }
 0x34a   : >> { %v3164_v59 = vadd.f32 %v3132_v62, %v3014_v9 }
 0x34b   : >> { %v2684_v48 = vpop.f32.mrf.mxu2  ;;  %v2835_v28 = vpop.f32.mrf.mxu3 }
 0x34c   : >> { %v3183_v1 = vadd.f32 %v7357_v24, %v3164_v59  ;;  %v2714_v58 = vadd.f32 %v2684_v48, %v7295_v19 }
 0x34e   : >> { %v3199_v55 = vmax.f32 %v3183_v1, 0.0  ;;  %v2865_v42 = vadd.f32 %v2835_v28, %v2714_v58  ;;  %v2988_v39 = vpop.f32.mrf.mxu0  ;;  %v3138_v6 = vpop.f32.mrf.mxu1 }
 0x350   : >> { %5317 = vst.msk [vmem:[%s7362_s19 + $0xa8] sm:$0xff] %vm389_vm2, %v3199_v55  ;;  %v3015_v41 = vadd.f32 %v2985_v26, %v2865_v42 }
 0x352   : >> { %v3165_v54 = vadd.f32 %v3135_v4, %v3015_v41 }
 0x353   : >> { %v2687_v2 = vpop.f32.mrf.mxu2  ;;  %v2838_v43 = vpop.f32.mrf.mxu3 }
 0x354   : >> { %v3184_v61 = vadd.f32 %v7357_v24, %v3165_v54  ;;  %v2715_v17 = vadd.f32 %v2687_v2, %v7306_v50 }
 0x356   : >> { %v3200_v47 = vmax.f32 %v3184_v61, 0.0  ;;  %v2866_v14 = vadd.f32 %v2838_v43, %v2715_v17  ;;  %v2991_v18 = vpop.f32.mrf.mxu0  ;;  %v3141_v19 = vpop.f32.mrf.mxu1 }
 0x358   : >> { %5318 = vst.msk [vmem:[%s7362_s19 + $0xb0] sm:$0xff] %vm389_vm2, %v3200_v47  ;;  %v3016_v40 = vadd.f32 %v2988_v39, %v2866_v14 }
 0x35a   : >> { %v3166_v44 = vadd.f32 %v3138_v6, %v3016_v40 }
 0x35b   : >> { %v2690_v23 = vpop.f32.mrf.mxu2  ;;  %v2841_v27 = vpop.f32.mrf.mxu3 }
 0x35c   : >> { %v3185_v11 = vadd.f32 %v7357_v24, %v3166_v44  ;;  %v2716_v20 = vadd.f32 %v2690_v23, %v7317_v8 }
 0x35e   : >> { %v3201_v57 = vmax.f32 %v3185_v11, 0.0  ;;  %v2867_v32 = vadd.f32 %v2841_v27, %v2716_v20  ;;  %v2994_v5 = vpop.f32.mrf.mxu0  ;;  %v3144_v16 = vpop.f32.mrf.mxu1 }
 0x360   : >> { %5319 = vst.msk [vmem:[%s7362_s19 + $0xc8] sm:$0xff] %vm389_vm2, %v3201_v57  ;;  %v3017_v50 = vadd.f32 %v2991_v18, %v2867_v32 }
 0x362   : >> { %v3167_v51 = vadd.f32 %v3141_v19, %v3017_v50 }
 0x363   : >> { %v2693_v13 = vpop.f32.mrf.mxu2  ;;  %v2844_v63 = vpop.f32.mrf.mxu3 }
 0x364   : >> { %v3186_v36 = vadd.f32 %v7357_v24, %v3167_v51  ;;  %v2717_v25 = vadd.f32 %v2693_v13, %v7328_v60 }
 0x366   : >> { %v3202_v7 = vmax.f32 %v3186_v36, 0.0  ;;  %v2868_v56 = vadd.f32 %v2844_v63, %v2717_v25  ;;  %v2997_v35 = vpop.f32.mrf.mxu0  ;;  %v3147_v21 = vpop.f32.mrf.mxu1 }
 0x368   : >> { %5320 = vst.msk [vmem:[%s7362_s19 + $0xd0] sm:$0xff] %vm389_vm2, %v3202_v7  ;;  %v3018_v8 = vadd.f32 %v2994_v5, %v2868_v56 }
 0x36a   : >> { %v3168_v34 = vadd.f32 %v3144_v16, %v3018_v8 }
 0x36b   : >> { %v2696_v12 = vpop.f32.mrf.mxu2  ;;  %v2847_v49 = vpop.f32.mrf.mxu3 }
 0x36c   : >> { %v3187_v45 = vadd.f32 %v7357_v24, %v3168_v34  ;;  %v2718_v30 = vadd.f32 %v2696_v12, %v7338_v38 }
 0x36e   : >> { %v3203_v37 = vmax.f32 %v3187_v45, 0.0  ;;  %v2869_v15 = vadd.f32 %v2847_v49, %v2718_v30  ;;  %v3000_v0 = vpop.f32.mrf.mxu0  ;;  %v3150_v31 = vpop.f32.mrf.mxu1 }
 0x370   : >> { %5321 = vst.msk [vmem:[%s7362_s19 + $0xe8] sm:$0xff] %vm389_vm2, %v3203_v37  ;;  %v3019_v60 = vadd.f32 %v2997_v35, %v2869_v15 }
 0x372   : >> { %v3169_v62 = vadd.f32 %v3147_v21, %v3019_v60 }
 0x373   : >> { %v2699_v33 = vpop.f32.mrf.mxu2  ;;  %v2850_v22 = vpop.f32.mrf.mxu3 }
 0x374   : >> { %v3188_v3 = vadd.f32 %v7357_v24, %v3169_v62  ;;  %v2719_v29 = vadd.f32 %v2699_v33, %v7348_v10 }
 0x376   : >> { %v3204_v46 = vmax.f32 %v3188_v3, 0.0  ;;  %v2870_v52 = vadd.f32 %v2850_v22, %v2719_v29  ;;  %v3003_v28 = vpop.f32.mrf.mxu0  ;;  %v3153_v55 = vpop.f32.mrf.mxu1 }
 0x378   : >> { %5322 = vst.msk [vmem:[%s7362_s19 + $0xf0] sm:$0xff] %vm389_vm2, %v3204_v46  ;;  %v3020_v38 = vadd.f32 %v3000_v0, %v2870_v52 }
 0x37a   : >> { %v3170_v26 = vadd.f32 %v3150_v31, %v3020_v38 }
 0x37b   : >> { %v2702_v4 = vpop.f32.mrf.mxu2  ;;  %v2853_v9 = vpop.f32.mrf.mxu3 }
 0x37c   : >> { %v3189_v59 = vadd.f32 %v7357_v24, %v3170_v26  ;;  %v2720_v48 = vadd.f32 %v2702_v4, %v7351_v53 }
 0x37e   : >> { %v3205_v1 = vmax.f32 %v3189_v59, 0.0  ;;  %v2871_v58 = vadd.f32 %v2853_v9, %v2720_v48 }
 0x380   : >> { %5323 = vst.msk [vmem:[%s7362_s19 + $0x108] sm:$0xff] %vm389_vm2, %v3205_v1  ;;  %v3021_v10 = vadd.f32 %v3003_v28, %v2871_v58 }
 0x382   : >> { %v3171_v42 = vadd.f32 %v3153_v55, %v3021_v10 }
 0x384   : >> { %v3190_v39 = vadd.f32 %v7357_v24, %v3171_v42  ;;  %517 = sbr.rel (!%p515_p12) target bundleno = 187 (0xbb), region = 160 }
 0x386   : >> { %v3206_v6 = vmax.f32 %v3190_v39, 0.0 }
 0x388   : >> { %5324 = vst.msk [vmem:[%s7362_s19 + $0x110] sm:$0xff] %vm389_vm2, %v3206_v6 }
 0x389 LB: >> { %v5328_v53 = vld [vmem:[%s8083_s5 + $0x18] sm:$0xff]  ;;  %v5327_v24 = vld [vmem:[%s8083_s5 + $0x10] sm:$0xff]  ;;  %v5362_v41 = vld [vmem:[%s8083_s5 + $0x28] sm:$0xff]  ;;  %s5604_s17 = sshll.u32 %s5771_s9, 8  ;;  %s5607_s18 = sshll.u32 %s5771_s9, 7  ;;  %s5771_s9 = sphi %s7428_s9, %s3229_s9  }
 0x38a   : >> { %5611 = vmatpush.msra.mxu1 %v5328_v53  ;;  %5612 = vmatpush.msra.mxu2 %v5328_v53  ;;  %v5398_v54 = vld [vmem:[%s8083_s5 + $0x38] sm:$0xff]  ;;  %v3251_v2 = vld [vmem:[%s8083_s5 + $0x8] sm:$0xff]  ;;  %s7449_s29 = scalar_lea.vmem [#allocation4], %s5604_s17  ;;  %v5361_v14 = vld [vmem:[%s8083_s5 + $0x20] sm:$0xff]  ;;  %s7977_s21 = scalar_lea.vmem %s286_s23, %s5607_s18 [#allocation5] }
 0x38b   : >> { %5613 = vmatpush.msra.mxu3 %v5328_v53  ;;  %3333 = vmatpush.msra.mxu0 %v5328_v53  ;;  %v5432_v18 = vld [vmem:[%s8083_s5 + $0x48] sm:$0xff]  ;;  %v5397_v19 = vld [vmem:[%s8083_s5 + $0x30] sm:$0xff]  ;;  %v3250_v40 = vld [vmem:[%s8083_s5] sm:$0xff]  ;;  %s3229_s9 = sadd.s32 1, %s5771_s9  }
 0x38c   : >> { %5614 = vmatpush.msra.mxu1 %v5327_v24  ;;  %5615 = vmatpush.msra.mxu2 %v5327_v24  ;;  %v5431_v44 = vld [vmem:[%s8083_s5 + $0x40] sm:$0xff]  ;;  %v5502_v23 = vld [vmem:[%s8083_s5 + $0x68] sm:$0xff]  ;;  %v5536_v20 = vld [vmem:[%s8083_s5 + $0x78] sm:$0xff]  ;;  %p3226_p13 = scmp.ge.s32.totalorder %s3229_s9, 2  }
 0x38d   : >> { %5616 = vmatpush.msra.mxu3 %v5327_v24  ;;  %3334 = vmatpush.msra.mxu0 %v5327_v24  ;;  %v5466_v32 = vld [vmem:[%s8083_s5 + $0x58] sm:$0xff]  ;;  %v5570_v50 = vld [vmem:[%s8083_s5 + $0x88] sm:$0xff]  ;;  %v5501_v0 = vld [vmem:[%s8083_s5 + $0x60] sm:$0xff]  ;;  %s5608_s20 = sshll.u32 (%p3226_p13), %s5837_s28, 8  ;;  %s4605_s16 = sshll.u32 (%p3226_p13), %s286_s23, 4  ;;  %s4606_s16 = int_to_ptr.vmem [resolvable:$true] %s4605_s16 }
 0x38e   : >> { %3578 = vmatpush.msrb.mxu2 %v5362_v41  ;;  %3446 = vmatpush.msrb.mxu1 %v3251_v2  ;;  %v5535_v33 = vld [vmem:[%s8083_s5 + $0x70] sm:$0xff]  ;;  %v5569_v31 = vld [vmem:[%s8083_s5 + $0x80] sm:$0xff]  ;;  %s4604_s15 = scalar_lea.hbm (%p3226_p13), %s8085_s7, %s5608_s20 }
 0x38f   : >> { %v7452_v43 = vld [vmem:[%s7449_s29 + $0x48] sm:$0xff]  ;;  %3729 = vmatpush.msrb.mxu3 %v5398_v54  ;;  %3877 = vmatpush.msrb.mxu0 %v5432_v18  ;;  %v7487_v27 = vld [vmem:[%s7449_s29 + $0x50] sm:$0xff]  ;;  %s4607_s19 = sshll.u32 (%p3226_p13), %s4604_s15, 4  ;;  %s4608_s19 = int_to_ptr.hbm [resolvable:$true] %s4607_s19 }
 0x390   : >> { %v7455_v61 = vld [vmem:[%s7449_s29 + $0x88] sm:$0xff]  ;;  %5333 = vmatmul.msk.f32.vlgmr.msra.gmra.mxu1 %vm389_vm2, %v7452_v43  ;;  %3579 = vmatpush.msrb.mxu2 %v5361_v14  ;;  %v7490_v11 = vld [vmem:[%s7449_s29 + $0x90] sm:$0xff]  ;;  %s5699_s22 = sshra.s32 (%p3226_p13), %s4608_s19, 4  ;;  %s5700_s22 = int_to_ptr.hbm [resolvable:$true] %s5699_s22 }
 0x391   : >> { %v7458_v17 = vld [vmem:[%s7449_s29 + $0xc8] sm:$0xff]  ;;  %5337 = vmatmul.msk.f32.vlgmr.msra.gmra.mxu2 %vm389_vm2, %v7455_v61  ;;  %3730 = vmatpush.msrb.mxu3 %v5397_v19  ;;  %v7496_v57 = vld [vmem:[%s7449_s29 + $0xd0] sm:$0xff]  ;;  %s5701_s9 = scalar_lea.hbm (%p3226_p13), %s5700_s22, 256  ;;  %p5706_p3 = scmp.lt.s32.totalorder (%p3226_p13), %s5700_s22, %s8085_s7 }
 0x392   : >> { %v3252_v47 = vld [vmem:[%s7449_s29 + $0x8] sm:$0xff]  ;;  %5341 = vmatmul.msk.f32.vlgmr.msra.gmra.mxu3 %vm389_vm2, %v7458_v17  ;;  %3447 = vmatpush.msrb.mxu1 %v3250_v40  ;;  %v3253_v5 = vld [vmem:[%s7449_s29 + $0x10] sm:$0xff]  ;;  %p5702_p0 = scmp.ne.s32.totalorder (%p3226_p13), %s5700_s22, %s5701_s9 }
 0x393   : >> { %5329 = vmatmul.msk.f32.vlgmr.msra.gmra.mxu0 %vm389_vm2, %v3252_v47  ;;  %4176 = vmatpush.msra.mxu2 %v5502_v23  ;;  %v7513_v16 = vld [vmem:[%s7449_s29 + $0x68] sm:$0xff]  ;;  %v7530_v36 = vld [vmem:[%s7449_s29 + $0x70] sm:$0xff] }
 0x394   : >> { %3878 = vmatpush.msrb.mxu0 %v5431_v44  ;;  %4324 = vmatpush.msra.mxu3 %v5536_v20  ;;  %v7516_v51 = vld [vmem:[%s7449_s29 + $0xa8] sm:$0xff]  ;;  %v7533_v25 = vld [vmem:[%s7449_s29 + $0xb0] sm:$0xff]  ;;  %p5703_p1 = pnand (%p3226_p13), %p5702_p0, %p5854_p5 }
 0x395   : >> { %4025 = vmatpush.msra.mxu1 %v5466_v32  ;;  %v7519_v13 = vld [vmem:[%s7449_s29 + $0xe8] sm:$0xff]  ;;  %v7536_v7 = vld [vmem:[%s7449_s29 + $0xf0] sm:$0xff]  ;;  %4177 = vmatpush.msra.mxu2 %v5501_v0 }
 0x396   : >> { %4472 = vmatpush.msra.mxu0 %v5570_v50  ;;  %v3254_v63 = vld [vmem:[%s7449_s29 + $0x28] sm:$0xff]  ;;  %v3255_v56 = vld [vmem:[%s7449_s29 + $0x30] sm:$0xff]  ;;  %4325 = vmatpush.msra.mxu3 %v5535_v33  ;;  %p5704_p2 = pneg (%p3226_p13), %p5703_p1 }
 0x397   : >> { %v3234_v8 = vld [vmem:[%s7449_s29 + $0x7] sm:$0xff]  ;;  %v3235_v21 = vld [vmem:[%s7449_s29 + $0xf] sm:$0xff] }
 0x398   : >> { %5334 = vmatmul.msk.f32.gmra.mxu1 %vm389_vm2, %v7487_v27  ;;  %v3497_v35 = vld [vmem:[%s7449_s29 + $0x9] sm:$0xff]  ;;  %v3498_v12 = vld [vmem:[%s7449_s29 + $0x11] sm:$0xff]  ;;  %4473 = vmatpush.msra.mxu0 %v5569_v31 }
 0x399   : >> { %5338 = vmatmul.msk.f32.gmra.mxu2 %vm389_vm2, %v7490_v11  ;;  %v5381_v34 = vld [vmem:[%s7449_s29 + $0x27] sm:$0xff]  ;;  %v5382_v49 = vld [vmem:[%s7449_s29 + $0x2f] sm:$0xff] }
 0x39a   : >> { %5342 = vmatmul.msk.f32.gmra.mxu3 %vm389_vm2, %v7496_v57  ;;  %v7561_v45 = vld [vmem:[%s7449_s29 + $0x29] sm:$0xff]  ;;  %v7574_v37 = vld [vmem:[%s7449_s29 + $0x31] sm:$0xff] }
 0x39b   : >> { %5330 = vmatmul.msk.f32.gmra.mxu0 %vm389_vm2, %v3253_v5  ;;  %v7564_v30 = vld [vmem:[%s7449_s29 + $0x47] sm:$0xff]  ;;  %v7577_v15 = vld [vmem:[%s7449_s29 + $0x4f] sm:$0xff] }
 0x39c   : >> { %v7587_v60 = vld [vmem:[%s7449_s29 + $0x49] sm:$0xff]  ;;  %v7610_v3 = vld [vmem:[%s7449_s29 + $0x51] sm:$0xff] }
 0x39d   : >> { %v7590_v62 = vld [vmem:[%s7449_s29 + $0x67] sm:$0xff]  ;;  %v5465_v22 = vld [vmem:[%s8083_s5 + $0x50] sm:$0xff] }
 0x39e   : >> { %4026 = vmatpush.msra.mxu1 %v5465_v22  ;;  %v7613_v29 = vld [vmem:[%s7449_s29 + $0x6f] sm:$0xff]  ;;  %v7630_v52 = vld [vmem:[%s7449_s29 + $0x87] sm:$0xff] }
 0x39f   : >> { %v7627_v46 = vld [vmem:[%s7449_s29 + $0x69] sm:$0xff]  ;;  %v7641_v38 = vld [vmem:[%s7449_s29 + $0x71] sm:$0xff] }
 0x3a0   : >> { %5335 = vmatmul.msk.f32.gmra.mxu1 %vm389_vm2, %v7513_v16  ;;  %v7644_v26 = vld [vmem:[%s7449_s29 + $0x8f] sm:$0xff]  ;;  %v7658_v9 = vld [vmem:[%s7449_s29 + $0xa7] sm:$0xff] }
 0x3a1   : >> { %5339 = vmatmul.msk.f32.gmra.mxu2 %vm389_vm2, %v7516_v51  ;;  %v7655_v4 = vld [vmem:[%s7449_s29 + $0x89] sm:$0xff]  ;;  %v7669_v59 = vld [vmem:[%s7449_s29 + $0x91] sm:$0xff] }
 0x3a2   : >> { %5343 = vmatmul.msk.f32.gmra.mxu3 %vm389_vm2, %v7519_v13  ;;  %v7672_v48 = vld [vmem:[%s7449_s29 + $0xaf] sm:$0xff]  ;;  %v7686_v1 = vld [vmem:[%s7449_s29 + $0xc7] sm:$0xff] }
 0x3a3   : >> { %5331 = vmatmul.msk.f32.gmra.mxu0 %vm389_vm2, %v3254_v63  ;;  %v7683_v28 = vld [vmem:[%s7449_s29 + $0xa9] sm:$0xff]  ;;  %v7697_v58 = vld [vmem:[%s7449_s29 + $0xb1] sm:$0xff] }
 0x3a4   : >> { %v7700_v55 = vld [vmem:[%s7449_s29 + $0xcf] sm:$0xff]  ;;  %v7716_v39 = vld [vmem:[%s7449_s29 + $0xe7] sm:$0xff] }
 0x3a5   : >> { %v7713_v42 = vld [vmem:[%s7449_s29 + $0xc9] sm:$0xff]  ;;  %v7733_v54 = vld [vmem:[%s7449_s29 + $0xd1] sm:$0xff] }
 0x3a6   : >> { %v7736_v2 = vld [vmem:[%s7449_s29 + $0xef] sm:$0xff]  ;;  %v7756_v44 = vld [vmem:[%s7449_s29 + $0x107] sm:$0xff] }
 0x3a7   : >> { %v7753_v40 = vld [vmem:[%s7449_s29 + $0xe9] sm:$0xff] }
 0x3a8   : >> { %5336 = vmatmul.msk.f32.gmra.mxu1 %vm389_vm2, %v7530_v36  ;;  %v7763_v20 = vld [vmem:[%s7449_s29 + $0x108] sm:$0xff] }
 0x3a9   : >> { %5340 = vmatmul.msk.f32.gmra.mxu2 %vm389_vm2, %v7533_v25 }
 0x3aa   : >> { %5344 = vmatmul.msk.f32.gmra.mxu3 %vm389_vm2, %v7536_v7 }
 0x3ab   : >> { %5332 = vmatmul.msk.f32.gmra.mxu0 %vm389_vm2, %v3255_v56 }
 0x3b0   : >> { %5345 = vmatmul.msk.f32.vlgmr.msrb.gmra.mxu1 %vm389_vm2, %v3234_v8 }
 0x3b1   : >> { %5363 = vmatmul.msk.f32.vlgmr.msrb.gmra.mxu2 %vm389_vm2, %v3497_v35  ;;  %v7786_v35 = vld [vmem:[%s7449_s29 + $0x110] sm:$0xff] }
 0x3b2   : >> { %5399 = vmatmul.msk.f32.vlgmr.msrb.gmra.mxu3 %vm389_vm2, %v5381_v34 }
 0x3b3   : >> { %5433 = vmatmul.msk.f32.vlgmr.msrb.gmra.mxu0 %vm389_vm2, %v3254_v63  ;;  %v7776_v63 = vld [vmem:[%s7449_s29 + $0xf1] sm:$0xff] }
 0x3b8   : >> { %5346 = vmatmul.msk.f32.gmra.mxu1 %vm389_vm2, %v3235_v21 }
 0x3b9   : >> { %5364 = vmatmul.msk.f32.gmra.mxu2 %vm389_vm2, %v3498_v12 }
 0x3ba   : >> { %5400 = vmatmul.msk.f32.gmra.mxu3 %vm389_vm2, %v5382_v49 }
 0x3bb   : >> { %5434 = vmatmul.msk.f32.gmra.mxu0 %vm389_vm2, %v3255_v56  ;;  %v7779_v56 = vld [vmem:[%s7449_s29 + $0x10f] sm:$0xff] }
 0x3c0   : >> { %5347 = vmatmul.msk.f32.gmra.mxu1 %vm389_vm2, %v5381_v34 }
 0x3c1   : >> { %5365 = vmatmul.msk.f32.gmra.mxu2 %vm389_vm2, %v7561_v45 }
 0x3c2   : >> { %5401 = vmatmul.msk.f32.gmra.mxu3 %vm389_vm2, %v7564_v30 }
 0x3c3   : >> { %5435 = vmatmul.msk.f32.gmra.mxu0 %vm389_vm2, %v7452_v43 }
 0x3c8   : >> { %5348 = vmatmul.msk.f32.gmra.mxu1 %vm389_vm2, %v5382_v49 }
 0x3c9   : >> { %5366 = vmatmul.msk.f32.gmra.mxu2 %vm389_vm2, %v7574_v37 }
 0x3ca   : >> { %5402 = vmatmul.msk.f32.gmra.mxu3 %vm389_vm2, %v7577_v15 }
 0x3cb   : >> { %5436 = vmatmul.msk.f32.gmra.mxu0 %vm389_vm2, %v7487_v27 }
 0x3d0   : >> { %5349 = vmatmul.msk.f32.gmra.mxu1 %vm389_vm2, %v7564_v30 }
 0x3d1   : >> { %5367 = vmatmul.msk.f32.gmra.mxu2 %vm389_vm2, %v7587_v60 }
 0x3d2   : >> { %5403 = vmatmul.msk.f32.gmra.mxu3 %vm389_vm2, %v7590_v62 }
 0x3d3   : >> { %5437 = vmatmul.msk.f32.gmra.mxu0 %vm389_vm2, %v7513_v16 }
 0x3d8   : >> { %5350 = vmatmul.msk.f32.gmra.mxu1 %vm389_vm2, %v7577_v15 }
 0x3d9   : >> { %5368 = vmatmul.msk.f32.gmra.mxu2 %vm389_vm2, %v7610_v3 }
 0x3da   : >> { %5404 = vmatmul.msk.f32.gmra.mxu3 %vm389_vm2, %v7613_v29 }
 0x3db   : >> { %5438 = vmatmul.msk.f32.gmra.mxu0 %vm389_vm2, %v7530_v36 }
 0x3e0   : >> { %5351 = vmatmul.msk.f32.gmra.mxu1 %vm389_vm2, %v7590_v62 }
 0x3e1   : >> { %5369 = vmatmul.msk.f32.gmra.mxu2 %vm389_vm2, %v7627_v46 }
 0x3e2   : >> { %5405 = vmatmul.msk.f32.gmra.mxu3 %vm389_vm2, %v7630_v52 }
 0x3e3   : >> { %5439 = vmatmul.msk.f32.gmra.mxu0 %vm389_vm2, %v7455_v61 }
 0x3e8   : >> { %5352 = vmatmul.msk.f32.gmra.mxu1 %vm389_vm2, %v7613_v29 }
 0x3e9   : >> { %5370 = vmatmul.msk.f32.gmra.mxu2 %vm389_vm2, %v7641_v38 }
 0x3ea   : >> { %5406 = vmatmul.msk.f32.gmra.mxu3 %vm389_vm2, %v7644_v26 }
 0x3eb   : >> { %5440 = vmatmul.msk.f32.gmra.mxu0 %vm389_vm2, %v7490_v11 }
 0x3f0   : >> { %5353 = vmatmul.msk.f32.gmra.mxu1 %vm389_vm2, %v7630_v52 }
 0x3f1   : >> { %5371 = vmatmul.msk.f32.gmra.mxu2 %vm389_vm2, %v7655_v4 }
 0x3f2   : >> { %5407 = vmatmul.msk.f32.gmra.mxu3 %vm389_vm2, %v7658_v9 }
 0x3f3   : >> { %5441 = vmatmul.msk.f32.gmra.mxu0 %vm389_vm2, %v7516_v51 }
 0x3f8   : >> { %5354 = vmatmul.msk.f32.gmra.mxu1 %vm389_vm2, %v7644_v26 }
 0x3f9   : >> { %5372 = vmatmul.msk.f32.gmra.mxu2 %vm389_vm2, %v7669_v59 }
 0x3fa   : >> { %5408 = vmatmul.msk.f32.gmra.mxu3 %vm389_vm2, %v7672_v48 }
 0x3fb   : >> { %5442 = vmatmul.msk.f32.gmra.mxu0 %vm389_vm2, %v7533_v25 }
 0x400   : >> { %5355 = vmatmul.msk.f32.gmra.mxu1 %vm389_vm2, %v7658_v9 }
 0x401   : >> { %5373 = vmatmul.msk.f32.gmra.mxu2 %vm389_vm2, %v7683_v28 }
 0x402   : >> { %5409 = vmatmul.msk.f32.gmra.mxu3 %vm389_vm2, %v7686_v1 }
 0x403   : >> { %5443 = vmatmul.msk.f32.gmra.mxu0 %vm389_vm2, %v7458_v17 }
 0x408   : >> { %5356 = vmatmul.msk.f32.gmra.mxu1 %vm389_vm2, %v7672_v48 }
 0x409   : >> { %5374 = vmatmul.msk.f32.gmra.mxu2 %vm389_vm2, %v7697_v58 }
 0x40a   : >> { %5410 = vmatmul.msk.f32.gmra.mxu3 %vm389_vm2, %v7700_v55 }
 0x40b   : >> { %5444 = vmatmul.msk.f32.gmra.mxu0 %vm389_vm2, %v7496_v57 }
 0x40d   : >> { %v7710_v10 = vpop.f32.mrf.mxu1 }
 0x410   : >> { %5357 = vmatmul.msk.f32.gmra.mxu1 %vm389_vm2, %v7686_v1  ;;  %v3336_v6 = vpop.f32.mrf.mxu0 }
 0x411   : >> { %5375 = vmatmul.msk.f32.gmra.mxu2 %vm389_vm2, %v7713_v42 }
 0x412   : >> { %5411 = vmatmul.msk.f32.gmra.mxu3 %vm389_vm2, %v7716_v39 }
 0x413   : >> { %5445 = vmatmul.msk.f32.gmra.mxu0 %vm389_vm2, %v7519_v13 }
 0x414   : >> { %v7724_v53 = vpop.f32.mrf.mxu2 }
 0x415   : >> { %v7728_v24 = vpop.f32.mrf.mxu3  ;;  %v7730_v41 = vpop.f32.mrf.mxu1 }
 0x418   : >> { %5358 = vmatmul.msk.f32.gmra.mxu1 %vm389_vm2, %v7700_v55  ;;  %v3339_v47 = vpop.f32.mrf.mxu0 }
 0x419   : >> { %5376 = vmatmul.msk.f32.gmra.mxu2 %vm389_vm2, %v7733_v54 }
 0x41a   : >> { %5412 = vmatmul.msk.f32.gmra.mxu3 %vm389_vm2, %v7736_v2 }
 0x41b   : >> { %5446 = vmatmul.msk.f32.gmra.mxu0 %vm389_vm2, %v7536_v7 }
 0x41c   : >> { %v7744_v14 = vpop.f32.mrf.mxu2 }
 0x41d   : >> { %v7748_v18 = vpop.f32.mrf.mxu3  ;;  %v7750_v19 = vpop.f32.mrf.mxu1 }
 0x41e   : >> { %8135 = vst [vmem:[#allocation21_spill] sm:$0xff] %v7748_v18 }
 0x420   : >> { %5359 = vmatmul.msk.f32.gmra.mxu1 %vm389_vm2, %v7716_v39  ;;  %v3342_v23 = vpop.f32.mrf.mxu0 }
 0x421   : >> { %5377 = vmatmul.msk.f32.gmra.mxu2 %vm389_vm2, %v7753_v40 }
 0x422   : >> { %5413 = vmatmul.msk.f32.gmra.mxu3 %vm389_vm2, %v7756_v44 }
 0x423   : >> { %5447 = vmatmul.msk.f32.gmra.mxu0 %vm389_vm2, %v7763_v20 }
 0x424   : >> { %v7767_v32 = vpop.f32.mrf.mxu2 }
 0x425   : >> { %v7771_v5 = vpop.f32.mrf.mxu3  ;;  %v7773_v50 = vpop.f32.mrf.mxu1 }
 0x426   : >> { %8136 = vst [vmem:[#allocation22_spill] sm:$0xff] %v7771_v5 }
 0x428   : >> { %5360 = vmatmul.msk.f32.gmra.mxu1 %vm389_vm2, %v7736_v2  ;;  %v3345_v8 = vpop.f32.mrf.mxu0 }
 0x429   : >> { %5378 = vmatmul.msk.f32.gmra.mxu2 %vm389_vm2, %v7776_v63 }
 0x42a   : >> { %5414 = vmatmul.msk.f32.gmra.mxu3 %vm389_vm2, %v7779_v56 }
 0x42b   : >> { %5448 = vmatmul.msk.f32.gmra.mxu0 %vm389_vm2, %v7786_v35 }
 0x42c   : >> { %v7790_v34 = vpop.f32.mrf.mxu2 }
 0x42d   : >> { %v7794_v21 = vpop.f32.mrf.mxu3  ;;  %v3449_v12 = vpop.f32.mrf.mxu1 }
 0x42e   : >> { %8137 = vst [vmem:[#allocation23_spill] sm:$0xff] %v7794_v21  ;;  %v3450_v0 = vadd.f32 %v3449_v12, %v3336_v6 }
 0x430   : >> { %5467 = vmatmul.msk.f32.vlgmr.msra.gmra.mxu1 %vm389_vm2, %v7561_v45  ;;  %v3880_v49 = vpop.f32.mrf.mxu0 }
 0x431   : >> { %5503 = vmatmul.msk.f32.vlgmr.msra.gmra.mxu2 %vm389_vm2, %v7564_v30 }
 0x432   : >> { %5537 = vmatmul.msk.f32.vlgmr.msra.gmra.mxu3 %vm389_vm2, %v7452_v43 }
 0x433   : >> { %5571 = vmatmul.msk.f32.vlgmr.msra.gmra.mxu0 %vm389_vm2, %v7587_v60 }
 0x434   : >> { %v3581_v33 = vpop.f32.mrf.mxu2 }
 0x435   : >> { %v3629_v22 = vadd.f32 %v3581_v33, %v3450_v0  ;;  %v3732_v31 = vpop.f32.mrf.mxu3  ;;  %v3452_v5 = vpop.f32.mrf.mxu1 }
 0x436   : >> { %v3453_v43 = vadd.f32 %v3452_v5, %v3339_v47 }
 0x437   : >> { %v3780_v21 = vadd.f32 %v3732_v31, %v3629_v22 }
 0x438   : >> { %5468 = vmatmul.msk.f32.gmra.mxu1 %vm389_vm2, %v7574_v37  ;;  %v3883_v45 = vpop.f32.mrf.mxu0 }
 0x439   : >> { %v7804_v18 = vadd.f32 %v3880_v49, %v3780_v21  ;;  %5504 = vmatmul.msk.f32.gmra.mxu2 %vm389_vm2, %v7577_v15 }
 0x43a   : >> { %5538 = vmatmul.msk.f32.gmra.mxu3 %vm389_vm2, %v7487_v27 }
 0x43b   : >> { %5572 = vmatmul.msk.f32.gmra.mxu0 %vm389_vm2, %v7610_v3 }
 0x43c   : >> { %v3584_v30 = vpop.f32.mrf.mxu2 }
 0x43d   : >> { %v3630_v6 = vadd.f32 %v3584_v30, %v3453_v43  ;;  %v3735_v12 = vpop.f32.mrf.mxu3  ;;  %v3455_v0 = vpop.f32.mrf.mxu1 }
 0x43e   : >> { %v3456_v27 = vadd.f32 %v3455_v0, %v3342_v23 }
 0x43f   : >> { %v3781_v21 = vadd.f32 %v3735_v12, %v3630_v6 }
 0x440   : >> { %5469 = vmatmul.msk.f32.gmra.mxu1 %vm389_vm2, %v7587_v60  ;;  %v3886_v37 = vpop.f32.mrf.mxu0 }
 0x441   : >> { %v7814_v49 = vadd.f32 %v3883_v45, %v3781_v21  ;;  %5505 = vmatmul.msk.f32.gmra.mxu2 %vm389_vm2, %v7590_v62 }
 0x442   : >> { %5539 = vmatmul.msk.f32.gmra.mxu3 %vm389_vm2, %v7513_v16 }
 0x443   : >> { %5573 = vmatmul.msk.f32.gmra.mxu0 %vm389_vm2, %v7627_v46 }
 0x444   : >> { %v3587_v15 = vpop.f32.mrf.mxu2 }
 0x445   : >> { %v3631_v47 = vadd.f32 %v3587_v15, %v3456_v27  ;;  %v3738_v5 = vpop.f32.mrf.mxu3  ;;  %v3458_v33 = vpop.f32.mrf.mxu1 }
 0x446   : >> { %v3459_v16 = vadd.f32 %v3458_v33, %v3345_v8 }
 0x447   : >> { %v3782_v22 = vadd.f32 %v3738_v5, %v3631_v47 }
 0x448   : >> { %5470 = vmatmul.msk.f32.gmra.mxu1 %vm389_vm2, %v7610_v3  ;;  %v3889_v60 = vpop.f32.mrf.mxu0 }
 0x449   : >> { %v7824_v31 = vadd.f32 %v3886_v37, %v3782_v22  ;;  %5506 = vmatmul.msk.f32.gmra.mxu2 %vm389_vm2, %v7613_v29 }
 0x44a   : >> { %5540 = vmatmul.msk.f32.gmra.mxu3 %vm389_vm2, %v7530_v36 }
 0x44b   : >> { %5574 = vmatmul.msk.f32.gmra.mxu0 %vm389_vm2, %v7641_v38 }
 0x44c   : >> { %v3590_v62 = vpop.f32.mrf.mxu2 }
 0x44d   : >> { %v3632_v23 = vadd.f32 %v3590_v62, %v3459_v16  ;;  %v3741_v45 = vpop.f32.mrf.mxu3  ;;  %v3461_v43 = vpop.f32.mrf.mxu1 }
 0x44e   : >> { %v3462_v36 = vadd.f32 %v3461_v43, %v7710_v10 }
 0x44f   : >> { %v3783_v30 = vadd.f32 %v3741_v45, %v3632_v23 }
 0x450   : >> { %5471 = vmatmul.msk.f32.gmra.mxu1 %vm389_vm2, %v7627_v46  ;;  %v3892_v3 = vpop.f32.mrf.mxu0 }
 0x451   : >> { %v7834_v6 = vadd.f32 %v3889_v60, %v3783_v30  ;;  %5507 = vmatmul.msk.f32.gmra.mxu2 %vm389_vm2, %v7630_v52 }
 0x452   : >> { %5541 = vmatmul.msk.f32.gmra.mxu3 %vm389_vm2, %v7455_v61 }
 0x453   : >> { %5575 = vmatmul.msk.f32.gmra.mxu0 %vm389_vm2, %v7655_v4 }
 0x454   : >> { %v3593_v29 = vpop.f32.mrf.mxu2 }
 0x455   : >> { %v3633_v8 = vadd.f32 %v3593_v29, %v3462_v36  ;;  %v3744_v12 = vpop.f32.mrf.mxu3  ;;  %v3464_v0 = vpop.f32.mrf.mxu1 }
 0x456   : >> { %v3465_v61 = vadd.f32 %v3464_v0, %v7730_v41 }
 0x457   : >> { %v3784_v21 = vadd.f32 %v3744_v12, %v3633_v8 }
 0x458   : >> { %5472 = vmatmul.msk.f32.gmra.mxu1 %vm389_vm2, %v7641_v38  ;;  %v3895_v46 = vpop.f32.mrf.mxu0 }
 0x459   : >> { %v7845_v37 = vadd.f32 %v3892_v3, %v3784_v21  ;;  %5508 = vmatmul.msk.f32.gmra.mxu2 %vm389_vm2, %v7644_v26 }
 0x45a   : >> { %5542 = vmatmul.msk.f32.gmra.mxu3 %vm389_vm2, %v7490_v11 }
 0x45b   : >> { %5576 = vmatmul.msk.f32.gmra.mxu0 %vm389_vm2, %v7669_v59 }
 0x45c   : >> { %v3596_v52 = vpop.f32.mrf.mxu2 }
 0x45d   : >> { %v3634_v10 = vadd.f32 %v3596_v52, %v3465_v61  ;;  %v3747_v27 = vpop.f32.mrf.mxu3  ;;  %v3467_v15 = vpop.f32.mrf.mxu1 }
 0x45e   : >> { %v3468_v11 = vadd.f32 %v3467_v15, %v7750_v19 }
 0x45f   : >> { %v3785_v47 = vadd.f32 %v3747_v27, %v3634_v10 }
 0x460   : >> { %5473 = vmatmul.msk.f32.gmra.mxu1 %vm389_vm2, %v7655_v4  ;;  %v3898_v38 = vpop.f32.mrf.mxu0 }
 0x461   : >> { %v7856_v5 = vadd.f32 %v3895_v46, %v3785_v47  ;;  %5509 = vmatmul.msk.f32.gmra.mxu2 %vm389_vm2, %v7658_v9 }
 0x462   : >> { %5543 = vmatmul.msk.f32.gmra.mxu3 %vm389_vm2, %v7516_v51 }
 0x463   : >> { %5577 = vmatmul.msk.f32.gmra.mxu0 %vm389_vm2, %v7683_v28 }
 0x464   : >> { %v3599_v26 = vpop.f32.mrf.mxu2 }
 0x465   : >> { %v3635_v41 = vadd.f32 %v3599_v26, %v3468_v11  ;;  %v3750_v33 = vpop.f32.mrf.mxu3  ;;  %v3470_v22 = vpop.f32.mrf.mxu1 }
 0x466   : >> { %v3471_v51 = vadd.f32 %v3470_v22, %v7773_v50 }
 0x467   : >> { %v3786_v60 = vadd.f32 %v3750_v33, %v3635_v41 }
 0x468   : >> { %5474 = vmatmul.msk.f32.gmra.mxu1 %vm389_vm2, %v7669_v59  ;;  %v3901_v4 = vpop.f32.mrf.mxu0 }
 0x469   : >> { %v7867_v16 = vadd.f32 %v3898_v38, %v3786_v60  ;;  %5510 = vmatmul.msk.f32.gmra.mxu2 %vm389_vm2, %v7672_v48 }
 0x46a   : >> { %5544 = vmatmul.msk.f32.gmra.mxu3 %vm389_vm2, %v7533_v25 }
 0x46b   : >> { %5578 = vmatmul.msk.f32.gmra.mxu0 %vm389_vm2, %v7697_v58 }
 0x46c   : >> { %v3602_v9 = vpop.f32.mrf.mxu2 }
 0x46d   : >> { %v3636_v19 = vadd.f32 %v3602_v9, %v3471_v51  ;;  %v3753_v62 = vpop.f32.mrf.mxu3  ;;  %v3473_v23 = vpop.f32.mrf.mxu1 }
 0x46e   : >> { %v3474_v25 = vadd.f32 %v3473_v23, %v7724_v53  ;;  %v5567_v23 = vld [vmem:[%s7449_s29 + $0x129] sm:$0xff] }
 0x46f   : >> { %v3787_v45 = vadd.f32 %v3753_v62, %v3636_v19  ;;  %v5499_v19 = vld [vmem:[%s7449_s29 + $0x127] sm:$0xff] }
 0x470   : >> { %5475 = vmatmul.msk.f32.gmra.mxu1 %vm389_vm2, %v7683_v28  ;;  %v3904_v59 = vpop.f32.mrf.mxu0  ;;  %v5533_v62 = vld [vmem:[%s7449_s29 + $0x128] sm:$0xff] }
 0x471   : >> { %v7878_v43 = vadd.f32 %v3901_v4, %v3787_v45  ;;  %5511 = vmatmul.msk.f32.gmra.mxu2 %vm389_vm2, %v7686_v1  ;;  %v8139_v45 = vld [vmem:[#allocation22_spill] sm:$0xff] }
 0x472   : >> { %5545 = vmatmul.msk.f32.gmra.mxu3 %vm389_vm2, %v7458_v17 }
 0x473   : >> { %5579 = vmatmul.msk.f32.gmra.mxu0 %vm389_vm2, %v7713_v42 }
 0x474   : >> { %v3605_v48 = vpop.f32.mrf.mxu2 }
 0x475   : >> { %v3637_v50 = vadd.f32 %v3605_v48, %v3474_v25  ;;  %v3756_v30 = vpop.f32.mrf.mxu3  ;;  %v3476_v3 = vpop.f32.mrf.mxu1 }
 0x476   : >> { %v3477_v17 = vadd.f32 %v3476_v3, %v7744_v14  ;;  %v5500_v3 = vld [vmem:[%s7449_s29 + $0x12f] sm:$0xff] }
 0x477   : >> { %v3788_v36 = vadd.f32 %v3756_v30, %v3637_v50 }
 0x478   : >> { %5476 = vmatmul.msk.f32.gmra.mxu1 %vm389_vm2, %v7697_v58  ;;  %v3907_v28 = vpop.f32.mrf.mxu0 }
 0x479   : >> { %v7889_v29 = vadd.f32 %v3904_v59, %v3788_v36  ;;  %5512 = vmatmul.msk.f32.gmra.mxu2 %vm389_vm2, %v7700_v55 }
 0x47a   : >> { %5546 = vmatmul.msk.f32.gmra.mxu3 %vm389_vm2, %v7496_v57 }
 0x47b   : >> { %5580 = vmatmul.msk.f32.gmra.mxu0 %vm389_vm2, %v7733_v54 }
 0x47c   : >> { %v3608_v1 = vpop.f32.mrf.mxu2 }
 0x47d   : >> { %v3638_v53 = vadd.f32 %v3608_v1, %v3477_v17  ;;  %v3759_v8 = vpop.f32.mrf.mxu3  ;;  %v3479_v12 = vpop.f32.mrf.mxu1 }
 0x47e   : >> { %v3480_v57 = vadd.f32 %v3479_v12, %v7767_v32 }
 0x47f   : >> { %v3789_v0 = vadd.f32 %v3759_v8, %v3638_v53  ;;  %v5568_v53 = vld [vmem:[%s7449_s29 + $0x131] sm:$0xff] }
 0x480   : >> { %5477 = vmatmul.msk.f32.gmra.mxu1 %vm389_vm2, %v7713_v42  ;;  %v3910_v58 = vpop.f32.mrf.mxu0  ;;  %v8140_v8 = vld [vmem:[#allocation23_spill] sm:$0xff] }
 0x481   : >> { %v7900_v21 = vadd.f32 %v3907_v28, %v3789_v0  ;;  %5513 = vmatmul.msk.f32.gmra.mxu2 %vm389_vm2, %v7716_v39  ;;  %v5534_v28 = vld [vmem:[%s7449_s29 + $0x130] sm:$0xff] }
 0x482   : >> { %5547 = vmatmul.msk.f32.gmra.mxu3 %vm389_vm2, %v7519_v13 }
 0x483   : >> { %5581 = vmatmul.msk.f32.gmra.mxu0 %vm389_vm2, %v7753_v40 }
 0x484   : >> { %v3611_v55 = vpop.f32.mrf.mxu2 }
 0x485   : >> { %v3639_v14 = vadd.f32 %v3611_v55, %v3480_v57  ;;  %v3762_v46 = vpop.f32.mrf.mxu3  ;;  %v3482_v61 = vpop.f32.mrf.mxu1 }
 0x486   : >> { %v3483_v42 = vadd.f32 %v3482_v61, %v7790_v34 }
 0x487   : >> { %v3790_v52 = vadd.f32 %v3762_v46, %v3639_v14 }
 0x488   : >> { %5478 = vmatmul.msk.f32.gmra.mxu1 %vm389_vm2, %v7733_v54  ;;  %v3913_v13 = vpop.f32.mrf.mxu0  ;;  %v5565_v54 = vld [vmem:[%s7449_s29 + $0x109] sm:$0xff] }
 0x489   : >> { %v7911_v10 = vadd.f32 %v3910_v58, %v3790_v52  ;;  %5514 = vmatmul.msk.f32.gmra.mxu2 %vm389_vm2, %v7736_v2 }
 0x48a   : >> { %5548 = vmatmul.msk.f32.gmra.mxu3 %vm389_vm2, %v7536_v7 }
 0x48b   : >> { %5582 = vmatmul.msk.f32.gmra.mxu0 %vm389_vm2, %v7776_v63 }
 0x48c   : >> { %v3614_v39 = vpop.f32.mrf.mxu2 }
 0x48d   : >> { %v3640_v32 = vadd.f32 %v3614_v39, %v3483_v42  ;;  %v3765_v27 = vpop.f32.mrf.mxu3  ;;  %v3485_v15 = vpop.f32.mrf.mxu1 }
 0x48e   : >> { %v3486_v2 = vadd.f32 %v3485_v15, %v7728_v24  ;;  %v5566_v24 = vld [vmem:[%s7449_s29 + $0x111] sm:$0xff]  ;;  %v7970_v15 = vld [vmem:[%s8084_s6] ss:$0 sm:$0xff]  ;;  %s4593_s29 = scalar_lea.sflag (%p3226_p13), [#allocation6], %s284_s13 }
 0x48f   : >> { %v3791_v47 = vadd.f32 %v3765_v27, %v3640_v32 }
 0x490   : >> { %5479 = vmatmul.msk.f32.gmra.mxu1 %vm389_vm2, %v7753_v40  ;;  %v3916_v7 = vpop.f32.mrf.mxu0 }
 0x491   : >> { %v7922_v38 = vadd.f32 %v3913_v13, %v3791_v47  ;;  %5515 = vmatmul.msk.f32.gmra.mxu2 %vm389_vm2, %v7756_v44 }
 0x492   : >> { %5549 = vmatmul.msk.f32.gmra.mxu3 %vm389_vm2, %v7763_v20  ;;  %v8138_v20 = vld [vmem:[#allocation21_spill] sm:$0xff] }
 0x493   : >> { %5583 = vmatmul.msk.f32.gmra.mxu0 %vm389_vm2, %v5565_v54 }
 0x494   : >> { %v3617_v34 = vpop.f32.mrf.mxu2 }
 0x495   : >> { %v3641_v11 = vadd.f32 %v3617_v34, %v3486_v2  ;;  %v3768_v26 = vpop.f32.mrf.mxu3  ;;  %v3488_v41 = vpop.f32.mrf.mxu1 }
 0x496   : >> { %v3489_v22 = vadd.f32 %v3488_v41, %v8138_v20 }
 0x497   : >> { %v3792_v40 = vadd.f32 %v3768_v26, %v3641_v11 }
 0x498   : >> { %5480 = vmatmul.msk.f32.gmra.mxu1 %vm389_vm2, %v7776_v63  ;;  %v3919_v44 = vpop.f32.mrf.mxu0 }
 0x499   : >> { %v7933_v33 = vadd.f32 %v3916_v7, %v3792_v40  ;;  %5516 = vmatmul.msk.f32.gmra.mxu2 %vm389_vm2, %v7779_v56 }
 0x49a   : >> { %5550 = vmatmul.msk.f32.gmra.mxu3 %vm389_vm2, %v7786_v35 }
 0x49b   : >> { %5584 = vmatmul.msk.f32.gmra.mxu0 %vm389_vm2, %v5566_v24 }
 0x49c   : >> { %v3620_v60 = vpop.f32.mrf.mxu2 }
 0x49d   : >> { %v3642_v4 = vadd.f32 %v3620_v60, %v3489_v22  ;;  %v3771_v51 = vpop.f32.mrf.mxu3  ;;  %v3491_v9 = vpop.f32.mrf.mxu1 }
 0x49e   : >> { %v3492_v59 = vadd.f32 %v3491_v9, %v8139_v45 }
 0x49f   : >> { %v3793_v63 = vadd.f32 %v3771_v51, %v3642_v4 }
 0x4a0   : >> { %5481 = vmatmul.msk.f32.gmra.mxu1 %vm389_vm2, %v5565_v54  ;;  %v3922_v35 = vpop.f32.mrf.mxu0 }
 0x4a1   : >> { %v7946_v56 = vadd.f32 %v3919_v44, %v3793_v63  ;;  %5517 = vmatmul.msk.f32.gmra.mxu2 %vm389_vm2, %v5499_v19 }
 0x4a2   : >> { %5551 = vmatmul.msk.f32.gmra.mxu3 %vm389_vm2, %v5533_v62 }
 0x4a3   : >> { %5585 = vmatmul.msk.f32.gmra.mxu0 %vm389_vm2, %v5567_v23 }
 0x4a4   : >> { %v3623_v25 = vpop.f32.mrf.mxu2 }
 0x4a5   : >> { %v3643_v48 = vadd.f32 %v3623_v25, %v3492_v59  ;;  %v3774_v50 = vpop.f32.mrf.mxu3  ;;  %v3494_v30 = vpop.f32.mrf.mxu1 }
 0x4a6   : >> { %v3495_v12 = vadd.f32 %v3494_v30, %v8140_v8 }
 0x4a7   : >> { %v3794_v36 = vadd.f32 %v3774_v50, %v3643_v48 }
 0x4a8   : >> { %5482 = vmatmul.msk.f32.gmra.mxu1 %vm389_vm2, %v5566_v24  ;;  %v3925_v1 = vpop.f32.mrf.mxu0 }
 0x4a9   : >> { %v7956_v17 = vadd.f32 %v3922_v35, %v3794_v36  ;;  %5518 = vmatmul.msk.f32.gmra.mxu2 %vm389_vm2, %v5500_v3 }
 0x4aa   : >> { %5552 = vmatmul.msk.f32.gmra.mxu3 %vm389_vm2, %v5534_v28 }
 0x4ab   : >> { %5586 = vmatmul.msk.f32.gmra.mxu0 %vm389_vm2, %v5568_v53 }
 0x4ac   : >> { %v3626_v0 = vpop.f32.mrf.mxu2 }
 0x4ad   : >> { %v3644_v58 = vadd.f32 %v3626_v0, %v3495_v12  ;;  %v3777_v57 = vpop.f32.mrf.mxu3  ;;  %v4028_v55 = vpop.f32.mrf.mxu1 }
 0x4ae   : >> { %v4076_v52 = vadd.f32 %v4028_v55, %v7804_v18 }
 0x4af   : >> { %v3795_v14 = vadd.f32 %v3777_v57, %v3644_v58 }
 0x4b0   : >> { %v4475_v61 = vpop.f32.mrf.mxu0 }
 0x4b1   : >> { %v7964_v46 = vadd.f32 %v3925_v1, %v3795_v14 }
 0x4b4   : >> { %v4179_v13 = vpop.f32.mrf.mxu2 }
 0x4b5   : >> { %v4227_v42 = vadd.f32 %v4179_v13, %v4076_v52  ;;  %v4327_v39 = vpop.f32.mrf.mxu3  ;;  %v4031_v32 = vpop.f32.mrf.mxu1 }
 0x4b6   : >> { %v4077_v54 = vadd.f32 %v4031_v32, %v7814_v49 }
 0x4b7   : >> { %v4375_v27 = vadd.f32 %v4327_v39, %v4227_v42 }
 0x4b8   : >> { %v4478_v7 = vpop.f32.mrf.mxu0 }
 0x4b9   : >> { %v4523_v47 = vadd.f32 %v4475_v61, %v4375_v27 }
 0x4bb   : >> { %v4542_v2 = vadd.f32 %v7970_v15, %v4523_v47 }
 0x4bc   : >> { %v4182_v18 = vpop.f32.mrf.mxu2 }
 0x4bd   : >> { %v4558_v34 = vmax.f32 %v4542_v2, 0.0  ;;  %v4228_v11 = vadd.f32 %v4182_v18, %v4077_v54  ;;  %v4330_v26 = vpop.f32.mrf.mxu3  ;;  %v4034_v41 = vpop.f32.mrf.mxu1 }
 0x4be   : >> { %v4078_v20 = vadd.f32 %v4034_v41, %v7824_v31 }
 0x4bf   : >> { %4576 = vst.msk [vmem:[%s7977_s21] sm:$0xff] %vm389_vm2, %v4558_v34  ;;  %v4376_v40 = vadd.f32 %v4330_v26, %v4228_v11 }
 0x4c0   : >> { %v4481_v24 = vpop.f32.mrf.mxu0 }
 0x4c1   : >> { %v4524_v44 = vadd.f32 %v4478_v7, %v4376_v40 }
 0x4c3   : >> { %v4543_v49 = vadd.f32 %v7970_v15, %v4524_v44 }
 0x4c4   : >> { %v4185_v22 = vpop.f32.mrf.mxu2 }
 0x4c5   : >> { %v4559_v60 = vmax.f32 %v4543_v49, 0.0  ;;  %v4229_v4 = vadd.f32 %v4185_v22, %v4078_v20  ;;  %v4333_v51 = vpop.f32.mrf.mxu3  ;;  %v4037_v9 = vpop.f32.mrf.mxu1 }
 0x4c6   : >> { %v4079_v35 = vadd.f32 %v4037_v9, %v7834_v6 }
 0x4c7   : >> { %4577 = vst.msk [vmem:[%s7977_s21 + $0x8] sm:$0xff] %vm389_vm2, %v4559_v60  ;;  %v4377_v19 = vadd.f32 %v4333_v51, %v4229_v4 }
 0x4c8   : >> { %v4484_v62 = vpop.f32.mrf.mxu0 }
 0x4c9   : >> { %v4525_v63 = vadd.f32 %v4481_v24, %v4377_v19 }
 0x4cb   : >> { %v4544_v23 = vadd.f32 %v7970_v15, %v4525_v63 }
 0x4cc   : >> { %v4188_v45 = vpop.f32.mrf.mxu2 }
 0x4cd   : >> { %v4560_v31 = vmax.f32 %v4544_v23, 0.0  ;;  %v4230_v59 = vadd.f32 %v4188_v45, %v4079_v35  ;;  %v4336_v25 = vpop.f32.mrf.mxu3  ;;  %v4040_v48 = vpop.f32.mrf.mxu1 }
 0x4ce   : >> { %v4080_v36 = vadd.f32 %v4040_v48, %v7845_v37 }
 0x4cf   : >> { %4578 = vst.msk [vmem:[%s7977_s21 + $0x10] sm:$0xff] %vm389_vm2, %v4560_v31  ;;  %v4378_v50 = vadd.f32 %v4336_v25, %v4230_v59 }
 0x4d0   : >> { %v4487_v3 = vpop.f32.mrf.mxu0 }
 0x4d1   : >> { %v4526_v30 = vadd.f32 %v4484_v62, %v4378_v50 }
 0x4d3   : >> { %v4545_v28 = vadd.f32 %v7970_v15, %v4526_v30 }
 0x4d4   : >> { %v4191_v1 = vpop.f32.mrf.mxu2 }
 0x4d5   : >> { %v4561_v6 = vmax.f32 %v4545_v28, 0.0  ;;  %v4231_v53 = vadd.f32 %v4191_v1, %v4080_v36  ;;  %v4339_v8 = vpop.f32.mrf.mxu3  ;;  %v4043_v12 = vpop.f32.mrf.mxu1 }
 0x4d6   : >> { %v4081_v55 = vadd.f32 %v4043_v12, %v7856_v5 }
 0x4d7   : >> { %4579 = vst.msk [vmem:[%s7977_s21 + $0x18] sm:$0xff] %vm389_vm2, %v4561_v6  ;;  %v4379_v0 = vadd.f32 %v4339_v8, %v4231_v53 }
 0x4d8   : >> { %v4490_v57 = vpop.f32.mrf.mxu0 }
 0x4d9   : >> { %v4527_v58 = vadd.f32 %v4487_v3, %v4379_v0 }
 0x4db   : >> { %v4546_v14 = vadd.f32 %v7970_v15, %v4527_v58 }
 0x4dc   : >> { %v4194_v61 = vpop.f32.mrf.mxu2 }
 0x4dd   : >> { %v4562_v37 = vmax.f32 %v4546_v14, 0.0  ;;  %v4232_v52 = vadd.f32 %v4194_v61, %v4081_v55  ;;  %v4342_v13 = vpop.f32.mrf.mxu3  ;;  %v4046_v42 = vpop.f32.mrf.mxu1 }
 0x4de   : >> { %v4082_v47 = vadd.f32 %v4046_v42, %v7867_v16 }
 0x4df   : >> { %4580 = vst.msk [vmem:[%s7977_s21 + $0x20] sm:$0xff] %vm389_vm2, %v4562_v37  ;;  %v4380_v39 = vadd.f32 %v4342_v13, %v4232_v52 }
 0x4e0   : >> { %v4493_v27 = vpop.f32.mrf.mxu0 }
 0x4e1   : >> { %v4528_v32 = vadd.f32 %v4490_v57, %v4380_v39 }
 0x4e3   : >> { %v4547_v7 = vadd.f32 %v7970_v15, %v4528_v32 }
 0x4e4   : >> { %v4197_v54 = vpop.f32.mrf.mxu2 }
 0x4e5   : >> { %v4563_v5 = vmax.f32 %v4547_v7, 0.0  ;;  %v4233_v2 = vadd.f32 %v4197_v54, %v4082_v47  ;;  %v4345_v18 = vpop.f32.mrf.mxu3  ;;  %v4049_v34 = vpop.f32.mrf.mxu1 }
 0x4e6   : >> { %v4083_v40 = vadd.f32 %v4049_v34, %v7878_v43 }
 0x4e7   : >> { %4581 = vst.msk [vmem:[%s7977_s21 + $0x28] sm:$0xff] %vm389_vm2, %v4563_v5  ;;  %v4381_v11 = vadd.f32 %v4345_v18, %v4233_v2 }
 0x4e8   : >> { %v4496_v41 = vpop.f32.mrf.mxu0 }
 0x4e9   : >> { %v4529_v26 = vadd.f32 %v4493_v27, %v4381_v11 }
 0x4eb   : >> { %v4548_v44 = vadd.f32 %v7970_v15, %v4529_v26 }
 0x4ec   : >> { %v4200_v24 = vpop.f32.mrf.mxu2 }
 0x4ed   : >> { %v4564_v16 = vmax.f32 %v4548_v44, 0.0  ;;  %v4234_v20 = vadd.f32 %v4200_v24, %v4083_v40  ;;  %v4348_v49 = vpop.f32.mrf.mxu3  ;;  %v4052_v22 = vpop.f32.mrf.mxu1 }
 0x4ee   : >> { %v4084_v9 = vadd.f32 %v4052_v22, %v7889_v29 }
 0x4ef   : >> { %4582 = vst.msk [vmem:[%s7977_s21 + $0x30] sm:$0xff] %vm389_vm2, %v4564_v16  ;;  %v4382_v60 = vadd.f32 %v4348_v49, %v4234_v20 }
 0x4f0   : >> { %v4499_v51 = vpop.f32.mrf.mxu0 }
 0x4f1   : >> { %v4530_v4 = vadd.f32 %v4496_v41, %v4382_v60 }
 0x4f3   : >> { %v4549_v19 = vadd.f32 %v7970_v15, %v4530_v4 }
 0x4f4   : >> { %v4203_v63 = vpop.f32.mrf.mxu2 }
 0x4f5   : >> { %v4565_v43 = vmax.f32 %v4549_v19, 0.0  ;;  %v4235_v62 = vadd.f32 %v4203_v63, %v4084_v9  ;;  %v4351_v35 = vpop.f32.mrf.mxu3  ;;  %v4055_v23 = vpop.f32.mrf.mxu1 }
 0x4f6   : >> { %v4085_v25 = vadd.f32 %v4055_v23, %v7900_v21 }
 0x4f7   : >> { %4583 = vst.msk [vmem:[%s7977_s21 + $0x38] sm:$0xff] %vm389_vm2, %v4565_v43  ;;  %v4383_v45 = vadd.f32 %v4351_v35, %v4235_v62 }
 0x4f8   : >> { %v4502_v59 = vpop.f32.mrf.mxu0 }
 0x4f9   : >> { %v4531_v31 = vadd.f32 %v4499_v51, %v4383_v45 }
 0x4fb   : >> { %v4550_v48 = vadd.f32 %v7970_v15, %v4531_v31 }
 0x4fc   : >> { %v4206_v50 = vpop.f32.mrf.mxu2 }
 0x4fd   : >> { %v4566_v29 = vmax.f32 %v4550_v48, 0.0  ;;  %v4236_v30 = vadd.f32 %v4206_v50, %v4085_v25  ;;  %v4354_v3 = vpop.f32.mrf.mxu3  ;;  %v4058_v36 = vpop.f32.mrf.mxu1 }
 0x4fe   : >> { %v4086_v53 = vadd.f32 %v4058_v36, %v7911_v10 }
 0x4ff   : >> { %4584 = vst.msk [vmem:[%s7977_s21 + $0x40] sm:$0xff] %vm389_vm2, %v4566_v29  ;;  %v4384_v28 = vadd.f32 %v4354_v3, %v4236_v30 }
 0x500   : >> { %v4505_v6 = vpop.f32.mrf.mxu0 }
 0x501   : >> { %v4532_v1 = vadd.f32 %v4502_v59, %v4384_v28 }
 0x503   : >> { %v4551_v8 = vadd.f32 %v7970_v15, %v4532_v1 }
 0x504   : >> { %v4209_v12 = vpop.f32.mrf.mxu2 }
 0x505   : >> { %v4567_v21 = vmax.f32 %v4551_v8, 0.0  ;;  %v4237_v0 = vadd.f32 %v4209_v12, %v4086_v53  ;;  %v4357_v58 = vpop.f32.mrf.mxu3  ;;  %v4061_v57 = vpop.f32.mrf.mxu1 }
 0x506   : >> { %v4087_v37 = vadd.f32 %v4061_v57, %v7922_v38 }
 0x507   : >> { %4585 = vst.msk [vmem:[%s7977_s21 + $0x48] sm:$0xff] %vm389_vm2, %v4567_v21  ;;  %v4385_v55 = vadd.f32 %v4357_v58, %v4237_v0 }
 0x508   : >> { %v4508_v61 = vpop.f32.mrf.mxu0 }
 0x509   : >> { %v4533_v14 = vadd.f32 %v4505_v6, %v4385_v55 }
 0x50b   : >> { %v4552_v52 = vadd.f32 %v7970_v15, %v4533_v14 }
 0x50c   : >> { %v4212_v13 = vpop.f32.mrf.mxu2 }
 0x50d   : >> { %v4568_v10 = vmax.f32 %v4552_v52, 0.0  ;;  %v4238_v42 = vadd.f32 %v4212_v13, %v4087_v37  ;;  %v4360_v39 = vpop.f32.mrf.mxu3  ;;  %v4064_v32 = vpop.f32.mrf.mxu1 }
 0x50e   : >> { %v4088_v54 = vadd.f32 %v4064_v32, %v7933_v33 }
 0x50f   : >> { %4586 = vst.msk [vmem:[%s7977_s21 + $0x50] sm:$0xff] %vm389_vm2, %v4568_v10  ;;  %v4386_v27 = vadd.f32 %v4360_v39, %v4238_v42 }
 0x510   : >> { %v4511_v7 = vpop.f32.mrf.mxu0 }
 0x511   : >> { %v4534_v47 = vadd.f32 %v4508_v61, %v4386_v27 }
 0x513   : >> { %v4553_v5 = vadd.f32 %v7970_v15, %v4534_v47 }
 0x514   : >> { %v4215_v2 = vpop.f32.mrf.mxu2 }
 0x515   : >> { %v4569_v38 = vmax.f32 %v4553_v5, 0.0  ;;  %v4239_v18 = vadd.f32 %v4215_v2, %v4088_v54  ;;  %v4363_v34 = vpop.f32.mrf.mxu3  ;;  %v4067_v11 = vpop.f32.mrf.mxu1 }
 0x516   : >> { %v4089_v44 = vadd.f32 %v4067_v11, %v7946_v56 }
 0x517   : >> { %4587 = vst.msk [vmem:[%s7977_s21 + $0x58] sm:$0xff] %vm389_vm2, %v4569_v38  ;;  %v4387_v26 = vadd.f32 %v4363_v34, %v4239_v18 }
 0x518   : >> { %v4514_v40 = vpop.f32.mrf.mxu0 }
 0x519   : >> { %v4535_v41 = vadd.f32 %v4511_v7, %v4387_v26 }
 0x51b   : >> { %v4554_v24 = vadd.f32 %v7970_v15, %v4535_v41 }
 0x51c   : >> { %v4218_v16 = vpop.f32.mrf.mxu2 }
 0x51d   : >> { %v4570_v33 = vmax.f32 %v4554_v24, 0.0  ;;  %v4240_v20 = vadd.f32 %v4218_v16, %v4089_v44  ;;  %v4366_v49 = vpop.f32.mrf.mxu3  ;;  %v4070_v22 = vpop.f32.mrf.mxu1 }
 0x51e   : >> { %v4090_v51 = vadd.f32 %v4070_v22, %v7956_v17 }
 0x51f   : >> { %4588 = vst.msk [vmem:[%s7977_s21 + $0x60] sm:$0xff] %vm389_vm2, %v4570_v33  ;;  %v4388_v60 = vadd.f32 %v4366_v49, %v4240_v20 }
 0x520   : >> { %v4517_v63 = vpop.f32.mrf.mxu0 }
 0x521   : >> { %v4536_v4 = vadd.f32 %v4514_v40, %v4388_v60 }
 0x523   : >> { %v4555_v9 = vadd.f32 %v7970_v15, %v4536_v4 }
 0x524   : >> { %v4221_v19 = vpop.f32.mrf.mxu2 }
 0x525   : >> { %v4571_v56 = vmax.f32 %v4555_v9, 0.0  ;;  %v4241_v43 = vadd.f32 %v4221_v19, %v4090_v51  ;;  %v4369_v62 = vpop.f32.mrf.mxu3  ;;  %v4073_v23 = vpop.f32.mrf.mxu1 }
 0x526   : >> { %v4091_v31 = vadd.f32 %v4073_v23, %v7964_v46 }
 0x527   : >> { %4589 = vst.msk [vmem:[%s7977_s21 + $0x68] sm:$0xff] %vm389_vm2, %v4571_v56  ;;  %v4389_v35 = vadd.f32 %v4369_v62, %v4241_v43 }
 0x528   : >> { %v4520_v29 = vpop.f32.mrf.mxu0 }
 0x529   : >> { %v4537_v45 = vadd.f32 %v4517_v63, %v4389_v35 }
 0x52b   : >> { %v4556_v59 = vadd.f32 %v7970_v15, %v4537_v45 }
 0x52c   : >> { %v4224_v25 = vpop.f32.mrf.mxu2 }
 0x52d   : >> { %v4572_v17 = vmax.f32 %v4556_v59, 0.0  ;;  %v4242_v48 = vadd.f32 %v4224_v25, %v4091_v31  ;;  %v4372_v50 = vpop.f32.mrf.mxu3 }
 0x52f   : >> { %4590 = vst.msk [vmem:[%s7977_s21 + $0x70] sm:$0xff] %vm389_vm2, %v4572_v17  ;;  %v4390_v30 = vadd.f32 %v4372_v50, %v4242_v48 }
 0x531   : >> { %v4538_v3 = vadd.f32 %v4520_v29, %v4390_v30 }
 0x533   : >> { %v4557_v36 = vadd.f32 %v7970_v15, %v4538_v3  ;;  %3228 = sbr.rel (!%p3226_p13) target bundleno = 905 (0x389), region = 171 }
 0x535   : >> { %v4573_v28 = vmax.f32 %v4557_v36, 0.0 }
 0x537   : >> { %4591 = vst.msk [vmem:[%s7977_s21 + $0x78] sm:$0xff] %vm389_vm2, %v4573_v28  ;;  %s5705_s21 = scalar_lea.hbm (%p3226_p13), %s8085_s7, 512 }
 0x538   : > { %p5707_p4 = scmp.lt.s32.totalorder %s5705_s21, %s5701_s9 }
 0x53a   : > { %p5708_p7 = por %p5707_p4, %p5706_p3 }
 0x53c   : > { %p5709_p8 = pnand %p5708_p7, %p5704_p2 }
 0x53e   : > { %5712 = shalt.err (!%p5709_p8)
}
 0x53f   : > { %s5774_s13 = smov 128   ;;  %s5775_s14 = smov 8  }
 0x540   : > { %5617 = dma.vmem_to_hbm [thread:$0]  (%p5854_p5), %s4606_s16, 4096, %s4608_s19, %s4593_s29, %s5774_s13, %s5774_s13, %s5775_s14  }
 0x541 PF: > { %p5623_p9 = scmp.ge.s32.totalorder %s5759_s27, 2  ;;  %s4622_s23 = sand.u32 1, %s5747_s24  }
 0x542   : > { %s4623_s17 = scalar_lea.sflag [#allocation6], %s4622_s23 }
 0x543   : > { %p5620_p10 = pnand %p5623_p9, %p5858_p6 }
 0x545   : > { %p5621_p11 = pneg %p5620_p10 }
 0x547   : > { %5742 = dma.done.wait (%p5621_p11), %s4623_s17, 4096  }
 0x548   : > { %5744 = vsyncadd (%p5621_p11), %s4623_s17, 4294963200  ;;  %p17_p12 = scmp.ge.s32.totalorder %s5841_s30, 4   ;;  %s8141_s24 = smov %s5751_s25 }
 0x549   : > { %s8142_s25 = smov %s5755_s26  ;;  %s8143_s26 = smov %s5852_s10 }
 0x54a   : > { %s8144_s27 = smov %s5841_s30  ;;  %19 = sbr.rel (!%p17_p12) target bundleno = 3 (0x3), region = 182 }
 0x54f   :  { %4629 = vsyncpa [#allocation6], 1 }
 0x550   :  { %4631 = vsyncpa [#allocation6 + $0x1], 1 }

</bundles_post_ra>
